<compile_context>
chip_gen: v6e
topology: v6e:2x2x1
jax: 0.10.0
libtpu: 0.0.40
codegen_flags: <defaults>
</compile_context>

<pallas_src>
import functools

import numpy as np
import jax
import jax.numpy as jnp
from jax import lax
from jax.experimental import pallas as pl
from jax.experimental.pallas import tpu as pltpu


# --------------------- host-side constant index matrices --------------------
# All activations inside the kernel use the "masked Wp layout": a (C, H*Wp)
# array with Wp = W + 2 columns per image row; columns [W, Wp) are zero.

def _np_pool_select(H, W):
    """(Lm, Ho*Wpo) 0/1 matrix: select the top-left of every 2x2 window out of
    the shifted-max vector and scatter into the next level's masked layout."""
    Wp = W + 2
    L = H * Wp
    Lm = L - Wp - 1
    Ho, Wo = H // 2, W // 2
    Wpo = Wo + 2
    S = np.zeros((Lm, Ho * Wpo), np.float32)
    for yo in range(Ho):
        for xo in range(Wo):
            S[(2 * yo) * Wp + 2 * xo, yo * Wpo + xo] = 1.0
    return S


def _np_skip_gather(Hb, Wb):
    """(L_enc, 4*Ls) 0/1 matrix: gather the encoder skip (big res, masked
    layout) into tap-major columns aligned with the transposed-conv taps."""
    Wpb = Wb + 2
    Hs, Ws = Hb // 2, Wb // 2
    Wps = Ws + 2
    Ls = Hs * Wps
    G = np.zeros((Hb * Wpb, 4 * Ls), np.float32)
    for t in range(4):
        i, j = t // 2, t % 2
        for y in range(Hs):
            for x in range(Ws):
                G[(2 * y + i) * Wpb + (2 * x + j), t * Ls + y * Wps + x] = 1.0
    return G


def _np_up_scatter(Hb, Wb):
    """(4*Ls, Hb*Wpb) 0/1 matrix: interleave tap-major columns into the 2x
    upsampled masked layout (pad columns get exactly zero)."""
    Wpb = Wb + 2
    Hs, Ws = Hb // 2, Wb // 2
    Wps = Ws + 2
    Ls = Hs * Wps
    P = np.zeros((4 * Ls, Hb * Wpb), np.float32)
    for t in range(4):
        i, j = t // 2, t % 2
        for y in range(Hs):
            for x in range(Ws):
                P[t * Ls + y * Wps + x, (2 * y + i) * Wpb + (2 * x + j)] = 1.0
    return P


# --------------------------- in-kernel helpers ------------------------------

def _pad_flat(xm, W):
    """Masked (C, H*Wp) -> fully zero-padded flat image for a 3x3 conv."""
    C, _ = xm.shape
    Wp = W + 2
    left = jnp.zeros((C, Wp + 1), jnp.float32)
    right = jnp.zeros((C, 2 * Wp), jnp.float32)
    return jnp.concatenate([left, xm, right], axis=1)


def _mask_cols(x, H, W):
    """Zero the (garbage) pad columns of a (C, H*Wp) value."""
    Wp = W + 2
    col = lax.broadcasted_iota(jnp.int32, (1, H * Wp), 1) % Wp
    return jnp.where(col < W, x, 0.0)


def _conv3x3(xm, w_ref, b_ref, H, W, relu=True):
    """'same' 3x3 conv in the masked layout.

    xm: (Cin, H*Wp); w_ref: (Cout, 9*Cin) row-ordered [tap-major, Cin-minor];
    b_ref: (Cout, 1).  One (Cout, 9*Cin) x (9*Cin, L) MXU matmul (im2col built
    from 9 shifted lane slices); Cin==1 uses VPU broadcast-MACs instead.
    """
    Cin, _ = xm.shape
    w = w_ref[...]
    b = b_ref[...]
    Wp = W + 2
    L = H * Wp
    xp = _pad_flat(xm, W)
    if Cin == 1:
        acc = None
        for kh in range(3):
            for kw in range(3):
                t = kh * 3 + kw
                off = kh * Wp + kw
                part = w[:, t:t + 1] * xp[:, off:off + L]        # (Cout, L)
                acc = part if acc is None else acc + part
        out = acc + b
    else:
        cols = []
        for kh in range(3):
            for kw in range(3):
                off = kh * Wp + kw
                cols.append(xp[:, off:off + L])
        im2col = jnp.concatenate(cols, axis=0)                   # (9*Cin, L)
        out = jnp.dot(w, im2col, preferred_element_type=jnp.float32) + b
    if relu:
        out = jnp.maximum(out, 0.0)
    return _mask_cols(out, H, W)


def _conv1x1(x, w_ref, b_ref, relu=False):
    out = jnp.dot(w_ref[...], x, preferred_element_type=jnp.float32) + b_ref[...]
    return jnp.maximum(out, 0.0) if relu else out


def _maxpool_to_next(xm, H, W, s_ref):
    """2x2/stride-2 maxpool + repad: elementwise max of 4 shifted slices then
    one selection matmul into the next level's masked layout."""
    Wp = W + 2
    L = H * Wp
    Lm = L - Wp - 1
    m = jnp.maximum(jnp.maximum(xm[:, 0:Lm], xm[:, 1:1 + Lm]),
                    jnp.maximum(xm[:, Wp:Wp + Lm], xm[:, Wp + 1:Wp + 1 + Lm]))
    return jnp.dot(m, s_ref[...], preferred_element_type=jnp.float32)


# ------------------------------ fused kernel --------------------------------

def _unet_kernel(*refs, treedef, depth, H, W):
    x_ref, out_ref = refs[0], refs[-1]
    tp = jax.tree_util.tree_unflatten(treedef, list(refs[1:-1]))

    x = x_ref[0]                               # (in_ch, H*(W+2)) masked image
    hh, ww = H, W
    enc = []

    # ------------------------------ encoder ---------------------------------
    for i in range(depth):
        for c in tp["down"][i]:
            x = _conv3x3(x, c["w"], c["b"], hh, ww, relu=True)
        enc.append((x, hh, ww))
        if i < depth - 1:
            x = _maxpool_to_next(x, hh, ww, tp["pool"][i])
            hh, ww = hh // 2, ww // 2

    # ------------------------------ decoder ---------------------------------
    for d in range(depth - 1):
        up = tp["up"][d]
        skip, hb, wb = enc[depth - 2 - d]
        # ConvTranspose2d(k=2, s=2): one small matmul per tap, taps stacked
        # along lanes (tap-major columns).
        bt = up["up"]["b"][...]
        fu = jnp.concatenate(
            [jnp.dot(t[...], x, preferred_element_type=jnp.float32) + bt
             for t in up["up"]["taps"]], axis=1)                 # (Co, 4*Ls)
        # Skip connection gathered into the same tap-major column order.
        fd = jnp.dot(skip, up["G"][...], preferred_element_type=jnp.float32)
        # Attention gate: identity * (sigmoid(psi(relu(wx(fu)+wg(fd)))) + 1).
        a = (_conv1x1(fu, up["wx"]["w"], up["wx"]["b"])
             + _conv1x1(fd, up["wg"]["w"], up["wg"]["b"]))
        a = jnp.maximum(a, 0.0)
        gate = jax.nn.sigmoid(_conv1x1(a, up["psi"]["w"], up["psi"]["b"]))
        att = fu * (gate + 1.0)
        cat = jnp.concatenate([fu, att], axis=0)                 # (2*Co, 4*Ls)
        # Interleave taps into the 2x-upsampled masked layout (MXU scatter).
        x = jnp.dot(cat, up["P"][...], preferred_element_type=jnp.float32)
        hh, ww = hb, wb
        for c in up["block"]:
            x = _conv3x3(x, c["w"], c["b"], hh, ww, relu=True)

    # ----------------------------- final 1x1 --------------------------------
    out_ref[0] = _conv1x1(x, tp["final"]["w"], tp["final"]["b"])


# ------------------------- params & kernel wrapper ---------------------------

def _init_conv(key, kh, kw, cin, cout):
    kw_key, kb_key = jax.random.split(key)
    scale = 1.0 / float(kh * kw * cin) ** 0.5
    w = jax.random.normal(kw_key, (kh, kw, cin, cout), jnp.float32) * scale
    b = jax.random.normal(kb_key, (1, cout), jnp.float32) * 0.05
    return w, b


def init_params(key, in_ch, out_ch, fc, depth, conv_per_block, ksize):
    params = {"down": [], "up": []}
    outs = in_ch
    for i in range(depth):
        ins = in_ch if i == 0 else outs
        outs = fc * (2 ** i)
        blk = []
        for j in range(conv_per_block):
            key, sub = jax.random.split(key)
            blk.append(_init_conv(sub, ksize, ksize, ins if j == 0 else outs, outs))
        params["down"].append({"block": blk})
    for i in range(depth - 1):
        ins = outs
        outs = ins // 2
        key, k1, k2, k3, k4 = jax.random.split(key, 5)
        up = {
            "upconv": _init_conv(k1, 2, 2, ins, outs),
            "attn": {
                "wx": _init_conv(k2, 1, 1, outs, outs),
                "wg": _init_conv(k3, 1, 1, outs, outs),
                "psi": _init_conv(k4, 1, 1, outs, outs),
            },
            "block": [],
        }
        for j in range(conv_per_block):
            key, sub = jax.random.split(key)
            cin = outs * 2 if j == 0 else outs
            up["block"].append(_init_conv(sub, ksize, ksize, cin, outs))
        params["up"].append(up)
    key, sub = jax.random.split(key)
    params["final"] = _init_conv(sub, 1, 1, outs, out_ch)
    return params


def _prep_conv(w, b):
    """(kh,kw,cin,cout),(1,cout) -> {'w': (cout, kh*kw*cin), 'b': (cout,1)}."""
    kh, kw, cin, cout = w.shape
    w2 = w.reshape(kh * kw * cin, cout).T      # [co, t*cin + ci] = w[kh,kw,ci,co]
    return {"w": w2, "b": b.reshape(cout, 1)}


def _prep_upconv(w, b):
    """(2,2,cin,cout),(1,cout) -> 4 tap matrices (cout,cin) in t=i*2+j order."""
    cout = w.shape[-1]
    taps = [w[i, j].T for i in range(2) for j in range(2)]
    return {"taps": taps, "b": b.reshape(cout, 1)}


def _prepare_kernel_params(params, H, W, depth):
    tp = {"down": [], "pool": [], "up": [], "final": None}
    hh, ww = H, W
    for i in range(depth):
        tp["down"].append([_prep_conv(w, b) for (w, b) in params["down"][i]["block"]])
        if i < depth - 1:
            tp["pool"].append(jnp.asarray(_np_pool_select(hh, ww)))
            hh, ww = hh // 2, ww // 2
    for d in range(depth - 1):
        up = params["up"][d]
        hb, wb = hh * 2, ww * 2
        tp["up"].append({
            "up": _prep_upconv(*up["upconv"]),
            "wx": _prep_conv(*up["attn"]["wx"]),
            "wg": _prep_conv(*up["attn"]["wg"]),
            "psi": _prep_conv(*up["attn"]["psi"]),
            "G": jnp.asarray(_np_skip_gather(hb, wb)),
            "P": jnp.asarray(_np_up_scatter(hb, wb)),
            "block": [_prep_conv(w, b) for (w, b) in up["block"]],
        })
        hh, ww = hb, wb
    tp["final"] = _prep_conv(*params["final"])
    return tp


def attention_unet_forward(params, x_nchw, *, depth):
    """Whole AttentionUNet forward in one pallas_call.  x: (N, Cin, H, W)."""
    N, in_ch, H, W = x_nchw.shape
    Wp = W + 2
    out_ch = params["final"][0].shape[-1]

    tp = _prepare_kernel_params(params, H, W, depth)
    leaves, treedef = jax.tree_util.tree_flatten(tp)

    # input -> masked flat layout (N, Cin, H*Wp) with zero pad columns
    xf = jnp.pad(x_nchw.astype(jnp.float32), ((0, 0), (0, 0), (0, 0), (0, 2)))
    xf = xf.reshape(N, in_ch, H * Wp)

    in_specs = [pl.BlockSpec((1, in_ch, H * Wp), lambda n: (n, 0, 0))]
    for leaf in leaves:
        nd = leaf.ndim
        in_specs.append(pl.BlockSpec(leaf.shape, lambda n, _nd=nd: (0,) * _nd))

    kern = functools.partial(_unet_kernel, treedef=treedef, depth=depth, H=H, W=W)
    out = pl.pallas_call(
        kern,
        out_shape=jax.ShapeDtypeStruct((N, out_ch, H * Wp), jnp.float32),
        grid=(N,),
        in_specs=in_specs,
        out_specs=pl.BlockSpec((1, out_ch, H * Wp), lambda n: (n, 0, 0)),
        compiler_params=pltpu.CompilerParams(dimension_semantics=("parallel",)),
    )(xf, *leaves)

    # drop the pad columns; output is already NCHW
    return out.reshape(N, out_ch, H, Wp)[:, :, :, :W]


# --------------------------- pure-JAX reference -----------------------------

def _ref_conv2d(x, w, b, relu):
    N, H, W, Cin = x.shape
    KH, KW, _, Cout = w.shape
    ph, pw = (KH - 1) // 2, (KW - 1) // 2
    xp = jnp.pad(x, ((0, 0), (ph, ph), (pw, pw), (0, 0)))
    acc = jnp.zeros((N, H, W, Cout), jnp.float32)
    for kh in range(KH):
        for kw in range(KW):
            acc = acc + jnp.einsum('nhwc,cd->nhwd',
                                   xp[:, kh:kh + H, kw:kw + W, :], w[kh, kw])
    acc = acc + b.reshape(1, 1, 1, Cout)
    return jnp.maximum(acc, 0.0) if relu else acc


def _ref_maxpool(x):
    N, H, W, C = x.shape
    return jnp.max(x.reshape(N, H // 2, 2, W // 2, 2, C), axis=(2, 4))


def _ref_upconv(x, w, b):
    N, H, W, Cin = x.shape
    Cout = w.shape[-1]
    y = jnp.einsum('nhwc,ijcd->nhiwjd', x, w)
    return y.reshape(N, 2 * H, 2 * W, Cout) + b.reshape(1, 1, 1, Cout)


def reference_forward(params, x_nchw, *, depth):
    x = jnp.transpose(x_nchw, (0, 2, 3, 1)).astype(jnp.float32)
    enc = []
    for i in range(depth):
        for (w, b) in params["down"][i]["block"]:
            x = _ref_conv2d(x, w, b, True)
        enc.append(x)
        if i < depth - 1:
            x = _ref_maxpool(x)
    for i in range(depth - 1):
        fd = enc[-(i + 2)]
        up = params["up"][i]
        wt, bt = up["upconv"]
        fu = _ref_upconv(x, wt, bt)
        (wx, bx) = up["attn"]["wx"]
        (wg, bg) = up["attn"]["wg"]
        (wq, bq) = up["attn"]["psi"]
        h = jnp.maximum(_ref_conv2d(fu, wx, bx, False)
                        + _ref_conv2d(fd, wg, bg, False), 0.0)
        gate = jax.nn.sigmoid(_ref_conv2d(h, wq, bq, False))
        a = fu * (gate + 1.0)
        x = jnp.concatenate([fu, a], axis=-1)
        for (w, b) in up["block"]:
            x = _ref_conv2d(x, w, b, True)
    wf, bf = params["final"]
    x = _ref_conv2d(x, wf, bf, False)
    return jnp.transpose(x, (0, 3, 1, 2))


# ---------------------------------- main -------------------------------------

if __name__ == "__main__":
    IN_CH, OUT_CH, FC, DEPTH, CPB, KSIZE = 1, 2, 8, 3, 2, 3
    N, H, W = 2, 16, 16

    key = jax.random.PRNGKey(0)
    pkey, xkey = jax.random.split(key)
    params = init_params(pkey, IN_CH, OUT_CH, FC, DEPTH, CPB, KSIZE)
    x = jax.random.normal(xkey, (N, IN_CH, H, W), jnp.float32)

    fwd = jax.jit(functools.partial(attention_unet_forward, depth=DEPTH))
    out = jax.block_until_ready(fwd(params, x))
    assert out.shape == (N, OUT_CH, H, W), out.shape

    ref = jax.block_until_ready(reference_forward(params, x, depth=DEPTH))
    max_err = float(jnp.max(jnp.abs(out - ref)))
    if not bool(jnp.allclose(out, ref, atol=1e-3, rtol=1e-3)):
        raise AssertionError(f"Pallas / reference mismatch, max abs err={max_err}")

    print("KERNEL_OK")
</pallas_src>

<mosaic_0001>
module attributes {stable_mosaic.version = 11 : i64} {
  func.func @_unet_kernel(%arg0: i32, %arg1: memref<1x1x288xf32, #tpu.memory_space<vmem>>, %arg2: memref<8x1xf32, #tpu.memory_space<vmem>>, %arg3: memref<8x9xf32, #tpu.memory_space<vmem>>, %arg4: memref<8x1xf32, #tpu.memory_space<vmem>>, %arg5: memref<8x72xf32, #tpu.memory_space<vmem>>, %arg6: memref<16x1xf32, #tpu.memory_space<vmem>>, %arg7: memref<16x72xf32, #tpu.memory_space<vmem>>, %arg8: memref<16x1xf32, #tpu.memory_space<vmem>>, %arg9: memref<16x144xf32, #tpu.memory_space<vmem>>, %arg10: memref<32x1xf32, #tpu.memory_space<vmem>>, %arg11: memref<32x144xf32, #tpu.memory_space<vmem>>, %arg12: memref<32x1xf32, #tpu.memory_space<vmem>>, %arg13: memref<32x288xf32, #tpu.memory_space<vmem>>, %arg14: memref<2x1xf32, #tpu.memory_space<vmem>>, %arg15: memref<2x8xf32, #tpu.memory_space<vmem>>, %arg16: memref<269x80xf32, #tpu.memory_space<vmem>>, %arg17: memref<69x24xf32, #tpu.memory_space<vmem>>, %arg18: memref<80x96xf32, #tpu.memory_space<vmem>>, %arg19: memref<96x80xf32, #tpu.memory_space<vmem>>, %arg20: memref<16x1xf32, #tpu.memory_space<vmem>>, %arg21: memref<16x288xf32, #tpu.memory_space<vmem>>, %arg22: memref<16x1xf32, #tpu.memory_space<vmem>>, %arg23: memref<16x144xf32, #tpu.memory_space<vmem>>, %arg24: memref<16x1xf32, #tpu.memory_space<vmem>>, %arg25: memref<16x16xf32, #tpu.memory_space<vmem>>, %arg26: memref<16x1xf32, #tpu.memory_space<vmem>>, %arg27: memref<16x32xf32, #tpu.memory_space<vmem>>, %arg28: memref<16x32xf32, #tpu.memory_space<vmem>>, %arg29: memref<16x32xf32, #tpu.memory_space<vmem>>, %arg30: memref<16x32xf32, #tpu.memory_space<vmem>>, %arg31: memref<16x1xf32, #tpu.memory_space<vmem>>, %arg32: memref<16x16xf32, #tpu.memory_space<vmem>>, %arg33: memref<16x1xf32, #tpu.memory_space<vmem>>, %arg34: memref<16x16xf32, #tpu.memory_space<vmem>>, %arg35: memref<288x320xf32, #tpu.memory_space<vmem>>, %arg36: memref<320x288xf32, #tpu.memory_space<vmem>>, %arg37: memref<8x1xf32, #tpu.memory_space<vmem>>, %arg38: memref<8x144xf32, #tpu.memory_space<vmem>>, %arg39: memref<8x1xf32, #tpu.memory_space<vmem>>, %arg40: memref<8x72xf32, #tpu.memory_space<vmem>>, %arg41: memref<8x1xf32, #tpu.memory_space<vmem>>, %arg42: memref<8x8xf32, #tpu.memory_space<vmem>>, %arg43: memref<8x1xf32, #tpu.memory_space<vmem>>, %arg44: memref<8x16xf32, #tpu.memory_space<vmem>>, %arg45: memref<8x16xf32, #tpu.memory_space<vmem>>, %arg46: memref<8x16xf32, #tpu.memory_space<vmem>>, %arg47: memref<8x16xf32, #tpu.memory_space<vmem>>, %arg48: memref<8x1xf32, #tpu.memory_space<vmem>>, %arg49: memref<8x8xf32, #tpu.memory_space<vmem>>, %arg50: memref<8x1xf32, #tpu.memory_space<vmem>>, %arg51: memref<8x8xf32, #tpu.memory_space<vmem>>, %arg52: memref<1x2x288xf32, #tpu.memory_space<vmem>>) attributes {dimension_semantics = [#tpu.dimension_semantics<parallel>], iteration_bounds = array<i64: 2>, scalar_prefetch = 0 : i64, scratch_operands = 0 : i64, tpu.core_type = #tpu.core_type<tc>, window_params = [{transform_indices = @transform_0, window_bounds = array<i64: 1, 1, 288>}, {pipeline_mode = #tpu.pipeline_mode<synchronous>, transform_indices = @transform_1, window_bounds = array<i64: 8, 1>}, {pipeline_mode = #tpu.pipeline_mode<synchronous>, transform_indices = @transform_2, window_bounds = array<i64: 8, 9>}, {pipeline_mode = #tpu.pipeline_mode<synchronous>, transform_indices = @transform_3, window_bounds = array<i64: 8, 1>}, {pipeline_mode = #tpu.pipeline_mode<synchronous>, transform_indices = @transform_4, window_bounds = array<i64: 8, 72>}, {pipeline_mode = #tpu.pipeline_mode<synchronous>, transform_indices = @transform_5, window_bounds = array<i64: 16, 1>}, {pipeline_mode = #tpu.pipeline_mode<synchronous>, transform_indices = @transform_6, window_bounds = array<i64: 16, 72>}, {pipeline_mode = #tpu.pipeline_mode<synchronous>, transform_indices = @transform_7, window_bounds = array<i64: 16, 1>}, {pipeline_mode = #tpu.pipeline_mode<synchronous>, transform_indices = @transform_8, window_bounds = array<i64: 16, 144>}, {pipeline_mode = #tpu.pipeline_mode<synchronous>, transform_indices = @transform_9, window_bounds = array<i64: 32, 1>}, {pipeline_mode = #tpu.pipeline_mode<synchronous>, transform_indices = @transform_10, window_bounds = array<i64: 32, 144>}, {pipeline_mode = #tpu.pipeline_mode<synchronous>, transform_indices = @transform_11, window_bounds = array<i64: 32, 1>}, {pipeline_mode = #tpu.pipeline_mode<synchronous>, transform_indices = @transform_12, window_bounds = array<i64: 32, 288>}, {pipeline_mode = #tpu.pipeline_mode<synchronous>, transform_indices = @transform_13, window_bounds = array<i64: 2, 1>}, {pipeline_mode = #tpu.pipeline_mode<synchronous>, transform_indices = @transform_14, window_bounds = array<i64: 2, 8>}, {pipeline_mode = #tpu.pipeline_mode<synchronous>, transform_indices = @transform_15, window_bounds = array<i64: 269, 80>}, {pipeline_mode = #tpu.pipeline_mode<synchronous>, transform_indices = @transform_16, window_bounds = array<i64: 69, 24>}, {pipeline_mode = #tpu.pipeline_mode<synchronous>, transform_indices = @transform_17, window_bounds = array<i64: 80, 96>}, {pipeline_mode = #tpu.pipeline_mode<synchronous>, transform_indices = @transform_18, window_bounds = array<i64: 96, 80>}, {pipeline_mode = #tpu.pipeline_mode<synchronous>, transform_indices = @transform_19, window_bounds = array<i64: 16, 1>}, {pipeline_mode = #tpu.pipeline_mode<synchronous>, transform_indices = @transform_20, window_bounds = array<i64: 16, 288>}, {pipeline_mode = #tpu.pipeline_mode<synchronous>, transform_indices = @transform_21, window_bounds = array<i64: 16, 1>}, {pipeline_mode = #tpu.pipeline_mode<synchronous>, transform_indices = @transform_22, window_bounds = array<i64: 16, 144>}, {pipeline_mode = #tpu.pipeline_mode<synchronous>, transform_indices = @transform_23, window_bounds = array<i64: 16, 1>}, {pipeline_mode = #tpu.pipeline_mode<synchronous>, transform_indices = @transform_24, window_bounds = array<i64: 16, 16>}, {pipeline_mode = #tpu.pipeline_mode<synchronous>, transform_indices = @transform_25, window_bounds = array<i64: 16, 1>}, {pipeline_mode = #tpu.pipeline_mode<synchronous>, transform_indices = @transform_26, window_bounds = array<i64: 16, 32>}, {pipeline_mode = #tpu.pipeline_mode<synchronous>, transform_indices = @transform_27, window_bounds = array<i64: 16, 32>}, {pipeline_mode = #tpu.pipeline_mode<synchronous>, transform_indices = @transform_28, window_bounds = array<i64: 16, 32>}, {pipeline_mode = #tpu.pipeline_mode<synchronous>, transform_indices = @transform_29, window_bounds = array<i64: 16, 32>}, {pipeline_mode = #tpu.pipeline_mode<synchronous>, transform_indices = @transform_30, window_bounds = array<i64: 16, 1>}, {pipeline_mode = #tpu.pipeline_mode<synchronous>, transform_indices = @transform_31, window_bounds = array<i64: 16, 16>}, {pipeline_mode = #tpu.pipeline_mode<synchronous>, transform_indices = @transform_32, window_bounds = array<i64: 16, 1>}, {pipeline_mode = #tpu.pipeline_mode<synchronous>, transform_indices = @transform_33, window_bounds = array<i64: 16, 16>}, {pipeline_mode = #tpu.pipeline_mode<synchronous>, transform_indices = @transform_34, window_bounds = array<i64: 288, 320>}, {pipeline_mode = #tpu.pipeline_mode<synchronous>, transform_indices = @transform_35, window_bounds = array<i64: 320, 288>}, {pipeline_mode = #tpu.pipeline_mode<synchronous>, transform_indices = @transform_36, window_bounds = array<i64: 8, 1>}, {pipeline_mode = #tpu.pipeline_mode<synchronous>, transform_indices = @transform_37, window_bounds = array<i64: 8, 144>}, {pipeline_mode = #tpu.pipeline_mode<synchronous>, transform_indices = @transform_38, window_bounds = array<i64: 8, 1>}, {pipeline_mode = #tpu.pipeline_mode<synchronous>, transform_indices = @transform_39, window_bounds = array<i64: 8, 72>}, {pipeline_mode = #tpu.pipeline_mode<synchronous>, transform_indices = @transform_40, window_bounds = array<i64: 8, 1>}, {pipeline_mode = #tpu.pipeline_mode<synchronous>, transform_indices = @transform_41, window_bounds = array<i64: 8, 8>}, {pipeline_mode = #tpu.pipeline_mode<synchronous>, transform_indices = @transform_42, window_bounds = array<i64: 8, 1>}, {pipeline_mode = #tpu.pipeline_mode<synchronous>, transform_indices = @transform_43, window_bounds = array<i64: 8, 16>}, {pipeline_mode = #tpu.pipeline_mode<synchronous>, transform_indices = @transform_44, window_bounds = array<i64: 8, 16>}, {pipeline_mode = #tpu.pipeline_mode<synchronous>, transform_indices = @transform_45, window_bounds = array<i64: 8, 16>}, {pipeline_mode = #tpu.pipeline_mode<synchronous>, transform_indices = @transform_46, window_bounds = array<i64: 8, 16>}, {pipeline_mode = #tpu.pipeline_mode<synchronous>, transform_indices = @transform_47, window_bounds = array<i64: 8, 1>}, {pipeline_mode = #tpu.pipeline_mode<synchronous>, transform_indices = @transform_48, window_bounds = array<i64: 8, 8>}, {pipeline_mode = #tpu.pipeline_mode<synchronous>, transform_indices = @transform_49, window_bounds = array<i64: 8, 1>}, {pipeline_mode = #tpu.pipeline_mode<synchronous>, transform_indices = @transform_50, window_bounds = array<i64: 8, 8>}, {transform_indices = @transform_51, window_bounds = array<i64: 1, 2, 288>}]} {
    %c0 = arith.constant 0 : index
    %c0_0 = arith.constant 0 : index
    %c0_1 = arith.constant 0 : index
    %0 = vector.load %arg1[%c0, %c0_0, %c0_1] : memref<1x1x288xf32, #tpu.memory_space<vmem>>, vector<1x1x288xf32>
    %1 = vector.shape_cast %0 : vector<1x1x288xf32> to vector<1x288xf32>
    %c0_2 = arith.constant 0 : index
    %c0_3 = arith.constant 0 : index
    %2 = vector.load %arg3[%c0_2, %c0_3] : memref<8x9xf32, #tpu.memory_space<vmem>>, vector<8x9xf32>
    %c0_4 = arith.constant 0 : index
    %c0_5 = arith.constant 0 : index
    %3 = vector.load %arg2[%c0_4, %c0_5] : memref<8x1xf32, #tpu.memory_space<vmem>>, vector<8x1xf32>
    %cst = arith.constant 0.000000e+00 : f32
    %4 = vector.broadcast %cst : f32 to vector<1x19xf32>
    %cst_6 = arith.constant 0.000000e+00 : f32
    %5 = vector.broadcast %cst_6 : f32 to vector<1x36xf32>
    %6 = tpu.concatenate %4, %1, %5 in 1 : vector<1x19xf32>, vector<1x288xf32>, vector<1x36xf32> -> vector<1x343xf32>
    %7 = vector.extract_strided_slice %2 {offsets = [0, 0], sizes = [8, 1], strides = [1, 1]} : vector<8x9xf32> to vector<8x1xf32>
    %8 = vector.extract_strided_slice %6 {offsets = [0, 0], sizes = [1, 288], strides = [1, 1]} : vector<1x343xf32> to vector<1x288xf32>
    %9 = vector.broadcast %7 : vector<8x1xf32> to vector<8x288xf32>
    %10 = vector.broadcast %8 : vector<1x288xf32> to vector<8x288xf32>
    %11 = arith.mulf %9, %10 : vector<8x288xf32>
    %12 = vector.extract_strided_slice %2 {offsets = [0, 1], sizes = [8, 1], strides = [1, 1]} : vector<8x9xf32> to vector<8x1xf32>
    %13 = vector.extract_strided_slice %6 {offsets = [0, 1], sizes = [1, 288], strides = [1, 1]} : vector<1x343xf32> to vector<1x288xf32>
    %14 = vector.broadcast %12 : vector<8x1xf32> to vector<8x288xf32>
    %15 = vector.broadcast %13 : vector<1x288xf32> to vector<8x288xf32>
    %16 = arith.mulf %14, %15 : vector<8x288xf32>
    %17 = arith.addf %11, %16 : vector<8x288xf32>
    %18 = vector.extract_strided_slice %2 {offsets = [0, 2], sizes = [8, 1], strides = [1, 1]} : vector<8x9xf32> to vector<8x1xf32>
    %19 = vector.extract_strided_slice %6 {offsets = [0, 2], sizes = [1, 288], strides = [1, 1]} : vector<1x343xf32> to vector<1x288xf32>
    %20 = vector.broadcast %18 : vector<8x1xf32> to vector<8x288xf32>
    %21 = vector.broadcast %19 : vector<1x288xf32> to vector<8x288xf32>
    %22 = arith.mulf %20, %21 : vector<8x288xf32>
    %23 = arith.addf %17, %22 : vector<8x288xf32>
    %24 = vector.extract_strided_slice %2 {offsets = [0, 3], sizes = [8, 1], strides = [1, 1]} : vector<8x9xf32> to vector<8x1xf32>
    %25 = vector.extract_strided_slice %6 {offsets = [0, 18], sizes = [1, 288], strides = [1, 1]} : vector<1x343xf32> to vector<1x288xf32>
    %26 = vector.broadcast %24 : vector<8x1xf32> to vector<8x288xf32>
    %27 = vector.broadcast %25 : vector<1x288xf32> to vector<8x288xf32>
    %28 = arith.mulf %26, %27 : vector<8x288xf32>
    %29 = arith.addf %23, %28 : vector<8x288xf32>
    %30 = vector.extract_strided_slice %2 {offsets = [0, 4], sizes = [8, 1], strides = [1, 1]} : vector<8x9xf32> to vector<8x1xf32>
    %31 = vector.extract_strided_slice %6 {offsets = [0, 19], sizes = [1, 288], strides = [1, 1]} : vector<1x343xf32> to vector<1x288xf32>
    %32 = vector.broadcast %30 : vector<8x1xf32> to vector<8x288xf32>
    %33 = vector.broadcast %31 : vector<1x288xf32> to vector<8x288xf32>
    %34 = arith.mulf %32, %33 : vector<8x288xf32>
    %35 = arith.addf %29, %34 : vector<8x288xf32>
    %36 = vector.extract_strided_slice %2 {offsets = [0, 5], sizes = [8, 1], strides = [1, 1]} : vector<8x9xf32> to vector<8x1xf32>
    %37 = vector.extract_strided_slice %6 {offsets = [0, 20], sizes = [1, 288], strides = [1, 1]} : vector<1x343xf32> to vector<1x288xf32>
    %38 = vector.broadcast %36 : vector<8x1xf32> to vector<8x288xf32>
    %39 = vector.broadcast %37 : vector<1x288xf32> to vector<8x288xf32>
    %40 = arith.mulf %38, %39 : vector<8x288xf32>
    %41 = arith.addf %35, %40 : vector<8x288xf32>
    %42 = vector.extract_strided_slice %2 {offsets = [0, 6], sizes = [8, 1], strides = [1, 1]} : vector<8x9xf32> to vector<8x1xf32>
    %43 = vector.extract_strided_slice %6 {offsets = [0, 36], sizes = [1, 288], strides = [1, 1]} : vector<1x343xf32> to vector<1x288xf32>
    %44 = vector.broadcast %42 : vector<8x1xf32> to vector<8x288xf32>
    %45 = vector.broadcast %43 : vector<1x288xf32> to vector<8x288xf32>
    %46 = arith.mulf %44, %45 : vector<8x288xf32>
    %47 = arith.addf %41, %46 : vector<8x288xf32>
    %48 = vector.extract_strided_slice %2 {offsets = [0, 7], sizes = [8, 1], strides = [1, 1]} : vector<8x9xf32> to vector<8x1xf32>
    %49 = vector.extract_strided_slice %6 {offsets = [0, 37], sizes = [1, 288], strides = [1, 1]} : vector<1x343xf32> to vector<1x288xf32>
    %50 = vector.broadcast %48 : vector<8x1xf32> to vector<8x288xf32>
    %51 = vector.broadcast %49 : vector<1x288xf32> to vector<8x288xf32>
    %52 = arith.mulf %50, %51 : vector<8x288xf32>
    %53 = arith.addf %47, %52 : vector<8x288xf32>
    %54 = vector.extract_strided_slice %2 {offsets = [0, 8], sizes = [8, 1], strides = [1, 1]} : vector<8x9xf32> to vector<8x1xf32>
    %55 = vector.extract_strided_slice %6 {offsets = [0, 38], sizes = [1, 288], strides = [1, 1]} : vector<1x343xf32> to vector<1x288xf32>
    %56 = vector.broadcast %54 : vector<8x1xf32> to vector<8x288xf32>
    %57 = vector.broadcast %55 : vector<1x288xf32> to vector<8x288xf32>
    %58 = arith.mulf %56, %57 : vector<8x288xf32>
    %59 = arith.addf %53, %58 : vector<8x288xf32>
    %60 = vector.broadcast %3 : vector<8x1xf32> to vector<8x288xf32>
    %61 = arith.addf %59, %60 : vector<8x288xf32>
    %cst_7 = arith.constant 0.000000e+00 : f32
    %62 = vector.broadcast %cst_7 : f32 to vector<8x288xf32>
    %63 = arith.maximumf %61, %62 : vector<8x288xf32>
    %64 = tpu.iota {dimensions = array<i32: 1>} : vector<1x288xi32>
    %c18_i32 = arith.constant 18 : i32
    %c0_i32 = arith.constant 0 : i32
    %65 = arith.cmpi eq, %c18_i32, %c0_i32 : i32
    %c1_i32 = arith.constant 1 : i32
    %66 = arith.select %65, %c1_i32, %c18_i32 : i32
    %67 = vector.broadcast %66 : i32 to vector<1x288xi32>
    %68 = arith.remsi %64, %67 : vector<1x288xi32>
    %c0_i32_8 = arith.constant 0 : i32
    %69 = vector.broadcast %c0_i32_8 : i32 to vector<1x288xi32>
    %70 = arith.cmpi ne, %68, %69 : vector<1x288xi32>
    %c0_i32_9 = arith.constant 0 : i32
    %71 = vector.broadcast %c0_i32_9 : i32 to vector<1x288xi32>
    %72 = arith.cmpi slt, %68, %71 : vector<1x288xi32>
    %c0_i32_10 = arith.constant 0 : i32
    %73 = arith.cmpi slt, %66, %c0_i32_10 : i32
    %74 = vector.broadcast %73 : i1 to vector<1x288xi1>
    %75 = vector.broadcast %74 : vector<1x288xi1> to vector<1x288xi1>
    %76 = arith.xori %72, %75 : vector<1x288xi1>
    %77 = arith.andi %76, %70 : vector<1x288xi1>
    %78 = vector.broadcast %66 : i32 to vector<1x288xi32>
    %79 = arith.addi %68, %78 : vector<1x288xi32>
    %80 = arith.select %77, %79, %68 : vector<1x288xi1>, vector<1x288xi32>
    %c16_i32 = arith.constant 16 : i32
    %81 = vector.broadcast %c16_i32 : i32 to vector<1x288xi32>
    %82 = arith.cmpi slt, %80, %81 : vector<1x288xi32>
    %cst_11 = arith.constant 0.000000e+00 : f32
    %83 = vector.shape_cast %82 : vector<1x288xi1> to vector<1x288xi1>
    %84 = vector.broadcast %83 : vector<1x288xi1> to vector<8x288xi1>
    %85 = vector.broadcast %cst_11 : f32 to vector<8x288xf32>
    %86 = arith.select %84, %63, %85 : vector<8x288xi1>, vector<8x288xf32>
    %c0_12 = arith.constant 0 : index
    %c0_13 = arith.constant 0 : index
    %87 = vector.load %arg5[%c0_12, %c0_13] : memref<8x72xf32, #tpu.memory_space<vmem>>, vector<8x72xf32>
    %c0_14 = arith.constant 0 : index
    %c0_15 = arith.constant 0 : index
    %88 = vector.load %arg4[%c0_14, %c0_15] : memref<8x1xf32, #tpu.memory_space<vmem>>, vector<8x1xf32>
    %cst_16 = arith.constant 0.000000e+00 : f32
    %89 = vector.broadcast %cst_16 : f32 to vector<8x19xf32>
    %cst_17 = arith.constant 0.000000e+00 : f32
    %90 = vector.broadcast %cst_17 : f32 to vector<8x36xf32>
    %91 = tpu.concatenate %89, %86, %90 in 1 : vector<8x19xf32>, vector<8x288xf32>, vector<8x36xf32> -> vector<8x343xf32>
    %92 = vector.extract_strided_slice %91 {offsets = [0, 0], sizes = [8, 288], strides = [1, 1]} : vector<8x343xf32> to vector<8x288xf32>
    %93 = vector.extract_strided_slice %91 {offsets = [0, 1], sizes = [8, 288], strides = [1, 1]} : vector<8x343xf32> to vector<8x288xf32>
    %94 = vector.extract_strided_slice %91 {offsets = [0, 2], sizes = [8, 288], strides = [1, 1]} : vector<8x343xf32> to vector<8x288xf32>
    %95 = vector.extract_strided_slice %91 {offsets = [0, 18], sizes = [8, 288], strides = [1, 1]} : vector<8x343xf32> to vector<8x288xf32>
    %96 = vector.extract_strided_slice %91 {offsets = [0, 19], sizes = [8, 288], strides = [1, 1]} : vector<8x343xf32> to vector<8x288xf32>
    %97 = vector.extract_strided_slice %91 {offsets = [0, 20], sizes = [8, 288], strides = [1, 1]} : vector<8x343xf32> to vector<8x288xf32>
    %98 = vector.extract_strided_slice %91 {offsets = [0, 36], sizes = [8, 288], strides = [1, 1]} : vector<8x343xf32> to vector<8x288xf32>
    %99 = vector.extract_strided_slice %91 {offsets = [0, 37], sizes = [8, 288], strides = [1, 1]} : vector<8x343xf32> to vector<8x288xf32>
    %100 = vector.extract_strided_slice %91 {offsets = [0, 38], sizes = [8, 288], strides = [1, 1]} : vector<8x343xf32> to vector<8x288xf32>
    %101 = tpu.concatenate %92, %93, %94, %95, %96, %97, %98, %99, %100 in 0 : vector<8x288xf32>, vector<8x288xf32>, vector<8x288xf32>, vector<8x288xf32>, vector<8x288xf32>, vector<8x288xf32>, vector<8x288xf32>, vector<8x288xf32>, vector<8x288xf32> -> vector<72x288xf32>
    %cst_18 = arith.constant dense<0.000000e+00> : vector<8x288xf32>
    %102 = tpu.matmul %87, %101, %cst_18 {dimension_numbers = #tpu.dot_dimension_numbers<[1], [0], [0], [1], [0, 0, 1, 1], [], []>} : vector<8x72xf32>, vector<72x288xf32>, vector<8x288xf32> -> vector<8x288xf32>
    %103 = vector.broadcast %88 : vector<8x1xf32> to vector<8x288xf32>
    %104 = arith.addf %102, %103 : vector<8x288xf32>
    %cst_19 = arith.constant 0.000000e+00 : f32
    %105 = vector.broadcast %cst_19 : f32 to vector<8x288xf32>
    %106 = arith.maximumf %104, %105 : vector<8x288xf32>
    %107 = tpu.iota {dimensions = array<i32: 1>} : vector<1x288xi32>
    %c18_i32_20 = arith.constant 18 : i32
    %c0_i32_21 = arith.constant 0 : i32
    %108 = arith.cmpi eq, %c18_i32_20, %c0_i32_21 : i32
    %c1_i32_22 = arith.constant 1 : i32
    %109 = arith.select %108, %c1_i32_22, %c18_i32_20 : i32
    %110 = vector.broadcast %109 : i32 to vector<1x288xi32>
    %111 = arith.remsi %107, %110 : vector<1x288xi32>
    %c0_i32_23 = arith.constant 0 : i32
    %112 = vector.broadcast %c0_i32_23 : i32 to vector<1x288xi32>
    %113 = arith.cmpi ne, %111, %112 : vector<1x288xi32>
    %c0_i32_24 = arith.constant 0 : i32
    %114 = vector.broadcast %c0_i32_24 : i32 to vector<1x288xi32>
    %115 = arith.cmpi slt, %111, %114 : vector<1x288xi32>
    %c0_i32_25 = arith.constant 0 : i32
    %116 = arith.cmpi slt, %109, %c0_i32_25 : i32
    %117 = vector.broadcast %116 : i1 to vector<1x288xi1>
    %118 = vector.broadcast %117 : vector<1x288xi1> to vector<1x288xi1>
    %119 = arith.xori %115, %118 : vector<1x288xi1>
    %120 = arith.andi %119, %113 : vector<1x288xi1>
    %121 = vector.broadcast %109 : i32 to vector<1x288xi32>
    %122 = arith.addi %111, %121 : vector<1x288xi32>
    %123 = arith.select %120, %122, %111 : vector<1x288xi1>, vector<1x288xi32>
    %c16_i32_26 = arith.constant 16 : i32
    %124 = vector.broadcast %c16_i32_26 : i32 to vector<1x288xi32>
    %125 = arith.cmpi slt, %123, %124 : vector<1x288xi32>
    %cst_27 = arith.constant 0.000000e+00 : f32
    %126 = vector.shape_cast %125 : vector<1x288xi1> to vector<1x288xi1>
    %127 = vector.broadcast %126 : vector<1x288xi1> to vector<8x288xi1>
    %128 = vector.broadcast %cst_27 : f32 to vector<8x288xf32>
    %129 = arith.select %127, %106, %128 : vector<8x288xi1>, vector<8x288xf32>
    %130 = vector.extract_strided_slice %129 {offsets = [0, 0], sizes = [8, 269], strides = [1, 1]} : vector<8x288xf32> to vector<8x269xf32>
    %131 = vector.extract_strided_slice %129 {offsets = [0, 1], sizes = [8, 269], strides = [1, 1]} : vector<8x288xf32> to vector<8x269xf32>
    %132 = arith.maximumf %130, %131 : vector<8x269xf32>
    %133 = vector.extract_strided_slice %129 {offsets = [0, 18], sizes = [8, 269], strides = [1, 1]} : vector<8x288xf32> to vector<8x269xf32>
    %134 = vector.extract_strided_slice %129 {offsets = [0, 19], sizes = [8, 269], strides = [1, 1]} : vector<8x288xf32> to vector<8x269xf32>
    %135 = arith.maximumf %133, %134 : vector<8x269xf32>
    %136 = arith.maximumf %132, %135 : vector<8x269xf32>
    %c0_28 = arith.constant 0 : index
    %c0_29 = arith.constant 0 : index
    %137 = vector.load %arg16[%c0_28, %c0_29] : memref<269x80xf32, #tpu.memory_space<vmem>>, vector<269x80xf32>
    %cst_30 = arith.constant dense<0.000000e+00> : vector<8x80xf32>
    %138 = tpu.matmul %136, %137, %cst_30 {dimension_numbers = #tpu.dot_dimension_numbers<[1], [0], [0], [1], [0, 0, 1, 1], [], []>} : vector<8x269xf32>, vector<269x80xf32>, vector<8x80xf32> -> vector<8x80xf32>
    %c0_31 = arith.constant 0 : index
    %c0_32 = arith.constant 0 : index
    %139 = vector.load %arg7[%c0_31, %c0_32] : memref<16x72xf32, #tpu.memory_space<vmem>>, vector<16x72xf32>
    %c0_33 = arith.constant 0 : index
    %c0_34 = arith.constant 0 : index
    %140 = vector.load %arg6[%c0_33, %c0_34] : memref<16x1xf32, #tpu.memory_space<vmem>>, vector<16x1xf32>
    %cst_35 = arith.constant 0.000000e+00 : f32
    %141 = vector.broadcast %cst_35 : f32 to vector<8x11xf32>
    %cst_36 = arith.constant 0.000000e+00 : f32
    %142 = vector.broadcast %cst_36 : f32 to vector<8x20xf32>
    %143 = tpu.concatenate %141, %138, %142 in 1 : vector<8x11xf32>, vector<8x80xf32>, vector<8x20xf32> -> vector<8x111xf32>
    %144 = vector.extract_strided_slice %143 {offsets = [0, 0], sizes = [8, 80], strides = [1, 1]} : vector<8x111xf32> to vector<8x80xf32>
    %145 = vector.extract_strided_slice %143 {offsets = [0, 1], sizes = [8, 80], strides = [1, 1]} : vector<8x111xf32> to vector<8x80xf32>
    %146 = vector.extract_strided_slice %143 {offsets = [0, 2], sizes = [8, 80], strides = [1, 1]} : vector<8x111xf32> to vector<8x80xf32>
    %147 = vector.extract_strided_slice %143 {offsets = [0, 10], sizes = [8, 80], strides = [1, 1]} : vector<8x111xf32> to vector<8x80xf32>
    %148 = vector.extract_strided_slice %143 {offsets = [0, 11], sizes = [8, 80], strides = [1, 1]} : vector<8x111xf32> to vector<8x80xf32>
    %149 = vector.extract_strided_slice %143 {offsets = [0, 12], sizes = [8, 80], strides = [1, 1]} : vector<8x111xf32> to vector<8x80xf32>
    %150 = vector.extract_strided_slice %143 {offsets = [0, 20], sizes = [8, 80], strides = [1, 1]} : vector<8x111xf32> to vector<8x80xf32>
    %151 = vector.extract_strided_slice %143 {offsets = [0, 21], sizes = [8, 80], strides = [1, 1]} : vector<8x111xf32> to vector<8x80xf32>
    %152 = vector.extract_strided_slice %143 {offsets = [0, 22], sizes = [8, 80], strides = [1, 1]} : vector<8x111xf32> to vector<8x80xf32>
    %153 = tpu.concatenate %144, %145, %146, %147, %148, %149, %150, %151, %152 in 0 : vector<8x80xf32>, vector<8x80xf32>, vector<8x80xf32>, vector<8x80xf32>, vector<8x80xf32>, vector<8x80xf32>, vector<8x80xf32>, vector<8x80xf32>, vector<8x80xf32> -> vector<72x80xf32>
    %cst_37 = arith.constant dense<0.000000e+00> : vector<16x80xf32>
    %154 = tpu.matmul %139, %153, %cst_37 {dimension_numbers = #tpu.dot_dimension_numbers<[1], [0], [0], [1], [0, 0, 1, 1], [], []>} : vector<16x72xf32>, vector<72x80xf32>, vector<16x80xf32> -> vector<16x80xf32>
    %155 = vector.broadcast %140 : vector<16x1xf32> to vector<16x80xf32>
    %156 = arith.addf %154, %155 : vector<16x80xf32>
    %cst_38 = arith.constant 0.000000e+00 : f32
    %157 = vector.broadcast %cst_38 : f32 to vector<16x80xf32>
    %158 = arith.maximumf %156, %157 : vector<16x80xf32>
    %159 = tpu.iota {dimensions = array<i32: 1>} : vector<1x80xi32>
    %c10_i32 = arith.constant 10 : i32
    %c0_i32_39 = arith.constant 0 : i32
    %160 = arith.cmpi eq, %c10_i32, %c0_i32_39 : i32
    %c1_i32_40 = arith.constant 1 : i32
    %161 = arith.select %160, %c1_i32_40, %c10_i32 : i32
    %162 = vector.broadcast %161 : i32 to vector<1x80xi32>
    %163 = arith.remsi %159, %162 : vector<1x80xi32>
    %c0_i32_41 = arith.constant 0 : i32
    %164 = vector.broadcast %c0_i32_41 : i32 to vector<1x80xi32>
    %165 = arith.cmpi ne, %163, %164 : vector<1x80xi32>
    %c0_i32_42 = arith.constant 0 : i32
    %166 = vector.broadcast %c0_i32_42 : i32 to vector<1x80xi32>
    %167 = arith.cmpi slt, %163, %166 : vector<1x80xi32>
    %c0_i32_43 = arith.constant 0 : i32
    %168 = arith.cmpi slt, %161, %c0_i32_43 : i32
    %169 = vector.broadcast %168 : i1 to vector<1x80xi1>
    %170 = vector.broadcast %169 : vector<1x80xi1> to vector<1x80xi1>
    %171 = arith.xori %167, %170 : vector<1x80xi1>
    %172 = arith.andi %171, %165 : vector<1x80xi1>
    %173 = vector.broadcast %161 : i32 to vector<1x80xi32>
    %174 = arith.addi %163, %173 : vector<1x80xi32>
    %175 = arith.select %172, %174, %163 : vector<1x80xi1>, vector<1x80xi32>
    %c8_i32 = arith.constant 8 : i32
    %176 = vector.broadcast %c8_i32 : i32 to vector<1x80xi32>
    %177 = arith.cmpi slt, %175, %176 : vector<1x80xi32>
    %cst_44 = arith.constant 0.000000e+00 : f32
    %178 = vector.shape_cast %177 : vector<1x80xi1> to vector<1x80xi1>
    %179 = vector.broadcast %178 : vector<1x80xi1> to vector<16x80xi1>
    %180 = vector.broadcast %cst_44 : f32 to vector<16x80xf32>
    %181 = arith.select %179, %158, %180 : vector<16x80xi1>, vector<16x80xf32>
    %c0_45 = arith.constant 0 : index
    %c0_46 = arith.constant 0 : index
    %182 = vector.load %arg9[%c0_45, %c0_46] : memref<16x144xf32, #tpu.memory_space<vmem>>, vector<16x144xf32>
    %c0_47 = arith.constant 0 : index
    %c0_48 = arith.constant 0 : index
    %183 = vector.load %arg8[%c0_47, %c0_48] : memref<16x1xf32, #tpu.memory_space<vmem>>, vector<16x1xf32>
    %cst_49 = arith.constant 0.000000e+00 : f32
    %184 = vector.broadcast %cst_49 : f32 to vector<16x11xf32>
    %cst_50 = arith.constant 0.000000e+00 : f32
    %185 = vector.broadcast %cst_50 : f32 to vector<16x20xf32>
    %186 = tpu.concatenate %184, %181, %185 in 1 : vector<16x11xf32>, vector<16x80xf32>, vector<16x20xf32> -> vector<16x111xf32>
    %187 = vector.extract_strided_slice %186 {offsets = [0, 0], sizes = [16, 80], strides = [1, 1]} : vector<16x111xf32> to vector<16x80xf32>
    %188 = vector.extract_strided_slice %186 {offsets = [0, 1], sizes = [16, 80], strides = [1, 1]} : vector<16x111xf32> to vector<16x80xf32>
    %189 = vector.extract_strided_slice %186 {offsets = [0, 2], sizes = [16, 80], strides = [1, 1]} : vector<16x111xf32> to vector<16x80xf32>
    %190 = vector.extract_strided_slice %186 {offsets = [0, 10], sizes = [16, 80], strides = [1, 1]} : vector<16x111xf32> to vector<16x80xf32>
    %191 = vector.extract_strided_slice %186 {offsets = [0, 11], sizes = [16, 80], strides = [1, 1]} : vector<16x111xf32> to vector<16x80xf32>
    %192 = vector.extract_strided_slice %186 {offsets = [0, 12], sizes = [16, 80], strides = [1, 1]} : vector<16x111xf32> to vector<16x80xf32>
    %193 = vector.extract_strided_slice %186 {offsets = [0, 20], sizes = [16, 80], strides = [1, 1]} : vector<16x111xf32> to vector<16x80xf32>
    %194 = vector.extract_strided_slice %186 {offsets = [0, 21], sizes = [16, 80], strides = [1, 1]} : vector<16x111xf32> to vector<16x80xf32>
    %195 = vector.extract_strided_slice %186 {offsets = [0, 22], sizes = [16, 80], strides = [1, 1]} : vector<16x111xf32> to vector<16x80xf32>
    %196 = tpu.concatenate %187, %188, %189, %190, %191, %192, %193, %194, %195 in 0 : vector<16x80xf32>, vector<16x80xf32>, vector<16x80xf32>, vector<16x80xf32>, vector<16x80xf32>, vector<16x80xf32>, vector<16x80xf32>, vector<16x80xf32>, vector<16x80xf32> -> vector<144x80xf32>
    %cst_51 = arith.constant dense<0.000000e+00> : vector<16x80xf32>
    %197 = tpu.matmul %182, %196, %cst_51 {dimension_numbers = #tpu.dot_dimension_numbers<[1], [0], [0], [1], [0, 0, 1, 1], [], []>} : vector<16x144xf32>, vector<144x80xf32>, vector<16x80xf32> -> vector<16x80xf32>
    %198 = vector.broadcast %183 : vector<16x1xf32> to vector<16x80xf32>
    %199 = arith.addf %197, %198 : vector<16x80xf32>
    %cst_52 = arith.constant 0.000000e+00 : f32
    %200 = vector.broadcast %cst_52 : f32 to vector<16x80xf32>
    %201 = arith.maximumf %199, %200 : vector<16x80xf32>
    %202 = tpu.iota {dimensions = array<i32: 1>} : vector<1x80xi32>
    %c10_i32_53 = arith.constant 10 : i32
    %c0_i32_54 = arith.constant 0 : i32
    %203 = arith.cmpi eq, %c10_i32_53, %c0_i32_54 : i32
    %c1_i32_55 = arith.constant 1 : i32
    %204 = arith.select %203, %c1_i32_55, %c10_i32_53 : i32
    %205 = vector.broadcast %204 : i32 to vector<1x80xi32>
    %206 = arith.remsi %202, %205 : vector<1x80xi32>
    %c0_i32_56 = arith.constant 0 : i32
    %207 = vector.broadcast %c0_i32_56 : i32 to vector<1x80xi32>
    %208 = arith.cmpi ne, %206, %207 : vector<1x80xi32>
    %c0_i32_57 = arith.constant 0 : i32
    %209 = vector.broadcast %c0_i32_57 : i32 to vector<1x80xi32>
    %210 = arith.cmpi slt, %206, %209 : vector<1x80xi32>
    %c0_i32_58 = arith.constant 0 : i32
    %211 = arith.cmpi slt, %204, %c0_i32_58 : i32
    %212 = vector.broadcast %211 : i1 to vector<1x80xi1>
    %213 = vector.broadcast %212 : vector<1x80xi1> to vector<1x80xi1>
    %214 = arith.xori %210, %213 : vector<1x80xi1>
    %215 = arith.andi %214, %208 : vector<1x80xi1>
    %216 = vector.broadcast %204 : i32 to vector<1x80xi32>
    %217 = arith.addi %206, %216 : vector<1x80xi32>
    %218 = arith.select %215, %217, %206 : vector<1x80xi1>, vector<1x80xi32>
    %c8_i32_59 = arith.constant 8 : i32
    %219 = vector.broadcast %c8_i32_59 : i32 to vector<1x80xi32>
    %220 = arith.cmpi slt, %218, %219 : vector<1x80xi32>
    %cst_60 = arith.constant 0.000000e+00 : f32
    %221 = vector.shape_cast %220 : vector<1x80xi1> to vector<1x80xi1>
    %222 = vector.broadcast %221 : vector<1x80xi1> to vector<16x80xi1>
    %223 = vector.broadcast %cst_60 : f32 to vector<16x80xf32>
    %224 = arith.select %222, %201, %223 : vector<16x80xi1>, vector<16x80xf32>
    %225 = vector.extract_strided_slice %224 {offsets = [0, 0], sizes = [16, 69], strides = [1, 1]} : vector<16x80xf32> to vector<16x69xf32>
    %226 = vector.extract_strided_slice %224 {offsets = [0, 1], sizes = [16, 69], strides = [1, 1]} : vector<16x80xf32> to vector<16x69xf32>
    %227 = arith.maximumf %225, %226 : vector<16x69xf32>
    %228 = vector.extract_strided_slice %224 {offsets = [0, 10], sizes = [16, 69], strides = [1, 1]} : vector<16x80xf32> to vector<16x69xf32>
    %229 = vector.extract_strided_slice %224 {offsets = [0, 11], sizes = [16, 69], strides = [1, 1]} : vector<16x80xf32> to vector<16x69xf32>
    %230 = arith.maximumf %228, %229 : vector<16x69xf32>
    %231 = arith.maximumf %227, %230 : vector<16x69xf32>
    %c0_61 = arith.constant 0 : index
    %c0_62 = arith.constant 0 : index
    %232 = vector.load %arg17[%c0_61, %c0_62] : memref<69x24xf32, #tpu.memory_space<vmem>>, vector<69x24xf32>
    %cst_63 = arith.constant dense<0.000000e+00> : vector<16x24xf32>
    %233 = tpu.matmul %231, %232, %cst_63 {dimension_numbers = #tpu.dot_dimension_numbers<[1], [0], [0], [1], [0, 0, 1, 1], [], []>} : vector<16x69xf32>, vector<69x24xf32>, vector<16x24xf32> -> vector<16x24xf32>
    %c0_64 = arith.constant 0 : index
    %c0_65 = arith.constant 0 : index
    %234 = vector.load %arg11[%c0_64, %c0_65] : memref<32x144xf32, #tpu.memory_space<vmem>>, vector<32x144xf32>
    %c0_66 = arith.constant 0 : index
    %c0_67 = arith.constant 0 : index
    %235 = vector.load %arg10[%c0_66, %c0_67] : memref<32x1xf32, #tpu.memory_space<vmem>>, vector<32x1xf32>
    %cst_68 = arith.constant 0.000000e+00 : f32
    %236 = vector.broadcast %cst_68 : f32 to vector<16x7xf32>
    %cst_69 = arith.constant 0.000000e+00 : f32
    %237 = vector.broadcast %cst_69 : f32 to vector<16x12xf32>
    %238 = tpu.concatenate %236, %233, %237 in 1 : vector<16x7xf32>, vector<16x24xf32>, vector<16x12xf32> -> vector<16x43xf32>
    %239 = vector.extract_strided_slice %238 {offsets = [0, 0], sizes = [16, 24], strides = [1, 1]} : vector<16x43xf32> to vector<16x24xf32>
    %240 = vector.extract_strided_slice %238 {offsets = [0, 1], sizes = [16, 24], strides = [1, 1]} : vector<16x43xf32> to vector<16x24xf32>
    %241 = vector.extract_strided_slice %238 {offsets = [0, 2], sizes = [16, 24], strides = [1, 1]} : vector<16x43xf32> to vector<16x24xf32>
    %242 = vector.extract_strided_slice %238 {offsets = [0, 6], sizes = [16, 24], strides = [1, 1]} : vector<16x43xf32> to vector<16x24xf32>
    %243 = vector.extract_strided_slice %238 {offsets = [0, 7], sizes = [16, 24], strides = [1, 1]} : vector<16x43xf32> to vector<16x24xf32>
    %244 = vector.extract_strided_slice %238 {offsets = [0, 8], sizes = [16, 24], strides = [1, 1]} : vector<16x43xf32> to vector<16x24xf32>
    %245 = vector.extract_strided_slice %238 {offsets = [0, 12], sizes = [16, 24], strides = [1, 1]} : vector<16x43xf32> to vector<16x24xf32>
    %246 = vector.extract_strided_slice %238 {offsets = [0, 13], sizes = [16, 24], strides = [1, 1]} : vector<16x43xf32> to vector<16x24xf32>
    %247 = vector.extract_strided_slice %238 {offsets = [0, 14], sizes = [16, 24], strides = [1, 1]} : vector<16x43xf32> to vector<16x24xf32>
    %248 = tpu.concatenate %239, %240, %241, %242, %243, %244, %245, %246, %247 in 0 : vector<16x24xf32>, vector<16x24xf32>, vector<16x24xf32>, vector<16x24xf32>, vector<16x24xf32>, vector<16x24xf32>, vector<16x24xf32>, vector<16x24xf32>, vector<16x24xf32> -> vector<144x24xf32>
    %cst_70 = arith.constant dense<0.000000e+00> : vector<32x24xf32>
    %249 = tpu.matmul %234, %248, %cst_70 {dimension_numbers = #tpu.dot_dimension_numbers<[1], [0], [0], [1], [0, 0, 1, 1], [], []>} : vector<32x144xf32>, vector<144x24xf32>, vector<32x24xf32> -> vector<32x24xf32>
    %250 = vector.broadcast %235 : vector<32x1xf32> to vector<32x24xf32>
    %251 = arith.addf %249, %250 : vector<32x24xf32>
    %cst_71 = arith.constant 0.000000e+00 : f32
    %252 = vector.broadcast %cst_71 : f32 to vector<32x24xf32>
    %253 = arith.maximumf %251, %252 : vector<32x24xf32>
    %254 = tpu.iota {dimensions = array<i32: 1>} : vector<1x24xi32>
    %c6_i32 = arith.constant 6 : i32
    %c0_i32_72 = arith.constant 0 : i32
    %255 = arith.cmpi eq, %c6_i32, %c0_i32_72 : i32
    %c1_i32_73 = arith.constant 1 : i32
    %256 = arith.select %255, %c1_i32_73, %c6_i32 : i32
    %257 = vector.broadcast %256 : i32 to vector<1x24xi32>
    %258 = arith.remsi %254, %257 : vector<1x24xi32>
    %c0_i32_74 = arith.constant 0 : i32
    %259 = vector.broadcast %c0_i32_74 : i32 to vector<1x24xi32>
    %260 = arith.cmpi ne, %258, %259 : vector<1x24xi32>
    %c0_i32_75 = arith.constant 0 : i32
    %261 = vector.broadcast %c0_i32_75 : i32 to vector<1x24xi32>
    %262 = arith.cmpi slt, %258, %261 : vector<1x24xi32>
    %c0_i32_76 = arith.constant 0 : i32
    %263 = arith.cmpi slt, %256, %c0_i32_76 : i32
    %264 = vector.broadcast %263 : i1 to vector<1x24xi1>
    %265 = vector.broadcast %264 : vector<1x24xi1> to vector<1x24xi1>
    %266 = arith.xori %262, %265 : vector<1x24xi1>
    %267 = arith.andi %266, %260 : vector<1x24xi1>
    %268 = vector.broadcast %256 : i32 to vector<1x24xi32>
    %269 = arith.addi %258, %268 : vector<1x24xi32>
    %270 = arith.select %267, %269, %258 : vector<1x24xi1>, vector<1x24xi32>
    %c4_i32 = arith.constant 4 : i32
    %271 = vector.broadcast %c4_i32 : i32 to vector<1x24xi32>
    %272 = arith.cmpi slt, %270, %271 : vector<1x24xi32>
    %cst_77 = arith.constant 0.000000e+00 : f32
    %273 = vector.shape_cast %272 : vector<1x24xi1> to vector<1x24xi1>
    %274 = vector.broadcast %273 : vector<1x24xi1> to vector<32x24xi1>
    %275 = vector.broadcast %cst_77 : f32 to vector<32x24xf32>
    %276 = arith.select %274, %253, %275 : vector<32x24xi1>, vector<32x24xf32>
    %c0_78 = arith.constant 0 : index
    %c0_79 = arith.constant 0 : index
    %277 = vector.load %arg13[%c0_78, %c0_79] : memref<32x288xf32, #tpu.memory_space<vmem>>, vector<32x288xf32>
    %c0_80 = arith.constant 0 : index
    %c0_81 = arith.constant 0 : index
    %278 = vector.load %arg12[%c0_80, %c0_81] : memref<32x1xf32, #tpu.memory_space<vmem>>, vector<32x1xf32>
    %cst_82 = arith.constant 0.000000e+00 : f32
    %279 = vector.broadcast %cst_82 : f32 to vector<32x7xf32>
    %cst_83 = arith.constant 0.000000e+00 : f32
    %280 = vector.broadcast %cst_83 : f32 to vector<32x12xf32>
    %281 = tpu.concatenate %279, %276, %280 in 1 : vector<32x7xf32>, vector<32x24xf32>, vector<32x12xf32> -> vector<32x43xf32>
    %282 = vector.extract_strided_slice %281 {offsets = [0, 0], sizes = [32, 24], strides = [1, 1]} : vector<32x43xf32> to vector<32x24xf32>
    %283 = vector.extract_strided_slice %281 {offsets = [0, 1], sizes = [32, 24], strides = [1, 1]} : vector<32x43xf32> to vector<32x24xf32>
    %284 = vector.extract_strided_slice %281 {offsets = [0, 2], sizes = [32, 24], strides = [1, 1]} : vector<32x43xf32> to vector<32x24xf32>
    %285 = vector.extract_strided_slice %281 {offsets = [0, 6], sizes = [32, 24], strides = [1, 1]} : vector<32x43xf32> to vector<32x24xf32>
    %286 = vector.extract_strided_slice %281 {offsets = [0, 7], sizes = [32, 24], strides = [1, 1]} : vector<32x43xf32> to vector<32x24xf32>
    %287 = vector.extract_strided_slice %281 {offsets = [0, 8], sizes = [32, 24], strides = [1, 1]} : vector<32x43xf32> to vector<32x24xf32>
    %288 = vector.extract_strided_slice %281 {offsets = [0, 12], sizes = [32, 24], strides = [1, 1]} : vector<32x43xf32> to vector<32x24xf32>
    %289 = vector.extract_strided_slice %281 {offsets = [0, 13], sizes = [32, 24], strides = [1, 1]} : vector<32x43xf32> to vector<32x24xf32>
    %290 = vector.extract_strided_slice %281 {offsets = [0, 14], sizes = [32, 24], strides = [1, 1]} : vector<32x43xf32> to vector<32x24xf32>
    %291 = tpu.concatenate %282, %283, %284, %285, %286, %287, %288, %289, %290 in 0 : vector<32x24xf32>, vector<32x24xf32>, vector<32x24xf32>, vector<32x24xf32>, vector<32x24xf32>, vector<32x24xf32>, vector<32x24xf32>, vector<32x24xf32>, vector<32x24xf32> -> vector<288x24xf32>
    %cst_84 = arith.constant dense<0.000000e+00> : vector<32x24xf32>
    %292 = tpu.matmul %277, %291, %cst_84 {dimension_numbers = #tpu.dot_dimension_numbers<[1], [0], [0], [1], [0, 0, 1, 1], [], []>} : vector<32x288xf32>, vector<288x24xf32>, vector<32x24xf32> -> vector<32x24xf32>
    %293 = vector.broadcast %278 : vector<32x1xf32> to vector<32x24xf32>
    %294 = arith.addf %292, %293 : vector<32x24xf32>
    %cst_85 = arith.constant 0.000000e+00 : f32
    %295 = vector.broadcast %cst_85 : f32 to vector<32x24xf32>
    %296 = arith.maximumf %294, %295 : vector<32x24xf32>
    %297 = tpu.iota {dimensions = array<i32: 1>} : vector<1x24xi32>
    %c6_i32_86 = arith.constant 6 : i32
    %c0_i32_87 = arith.constant 0 : i32
    %298 = arith.cmpi eq, %c6_i32_86, %c0_i32_87 : i32
    %c1_i32_88 = arith.constant 1 : i32
    %299 = arith.select %298, %c1_i32_88, %c6_i32_86 : i32
    %300 = vector.broadcast %299 : i32 to vector<1x24xi32>
    %301 = arith.remsi %297, %300 : vector<1x24xi32>
    %c0_i32_89 = arith.constant 0 : i32
    %302 = vector.broadcast %c0_i32_89 : i32 to vector<1x24xi32>
    %303 = arith.cmpi ne, %301, %302 : vector<1x24xi32>
    %c0_i32_90 = arith.constant 0 : i32
    %304 = vector.broadcast %c0_i32_90 : i32 to vector<1x24xi32>
    %305 = arith.cmpi slt, %301, %304 : vector<1x24xi32>
    %c0_i32_91 = arith.constant 0 : i32
    %306 = arith.cmpi slt, %299, %c0_i32_91 : i32
    %307 = vector.broadcast %306 : i1 to vector<1x24xi1>
    %308 = vector.broadcast %307 : vector<1x24xi1> to vector<1x24xi1>
    %309 = arith.xori %305, %308 : vector<1x24xi1>
    %310 = arith.andi %309, %303 : vector<1x24xi1>
    %311 = vector.broadcast %299 : i32 to vector<1x24xi32>
    %312 = arith.addi %301, %311 : vector<1x24xi32>
    %313 = arith.select %310, %312, %301 : vector<1x24xi1>, vector<1x24xi32>
    %c4_i32_92 = arith.constant 4 : i32
    %314 = vector.broadcast %c4_i32_92 : i32 to vector<1x24xi32>
    %315 = arith.cmpi slt, %313, %314 : vector<1x24xi32>
    %cst_93 = arith.constant 0.000000e+00 : f32
    %316 = vector.shape_cast %315 : vector<1x24xi1> to vector<1x24xi1>
    %317 = vector.broadcast %316 : vector<1x24xi1> to vector<32x24xi1>
    %318 = vector.broadcast %cst_93 : f32 to vector<32x24xf32>
    %319 = arith.select %317, %296, %318 : vector<32x24xi1>, vector<32x24xf32>
    %c0_94 = arith.constant 0 : index
    %c0_95 = arith.constant 0 : index
    %320 = vector.load %arg26[%c0_94, %c0_95] : memref<16x1xf32, #tpu.memory_space<vmem>>, vector<16x1xf32>
    %c0_96 = arith.constant 0 : index
    %c0_97 = arith.constant 0 : index
    %321 = vector.load %arg27[%c0_96, %c0_97] : memref<16x32xf32, #tpu.memory_space<vmem>>, vector<16x32xf32>
    %cst_98 = arith.constant dense<0.000000e+00> : vector<16x24xf32>
    %322 = tpu.matmul %321, %319, %cst_98 {dimension_numbers = #tpu.dot_dimension_numbers<[1], [0], [0], [1], [0, 0, 1, 1], [], []>} : vector<16x32xf32>, vector<32x24xf32>, vector<16x24xf32> -> vector<16x24xf32>
    %323 = vector.broadcast %320 : vector<16x1xf32> to vector<16x24xf32>
    %324 = arith.addf %322, %323 : vector<16x24xf32>
    %c0_99 = arith.constant 0 : index
    %c0_100 = arith.constant 0 : index
    %325 = vector.load %arg28[%c0_99, %c0_100] : memref<16x32xf32, #tpu.memory_space<vmem>>, vector<16x32xf32>
    %cst_101 = arith.constant dense<0.000000e+00> : vector<16x24xf32>
    %326 = tpu.matmul %325, %319, %cst_101 {dimension_numbers = #tpu.dot_dimension_numbers<[1], [0], [0], [1], [0, 0, 1, 1], [], []>} : vector<16x32xf32>, vector<32x24xf32>, vector<16x24xf32> -> vector<16x24xf32>
    %327 = vector.broadcast %320 : vector<16x1xf32> to vector<16x24xf32>
    %328 = arith.addf %326, %327 : vector<16x24xf32>
    %c0_102 = arith.constant 0 : index
    %c0_103 = arith.constant 0 : index
    %329 = vector.load %arg29[%c0_102, %c0_103] : memref<16x32xf32, #tpu.memory_space<vmem>>, vector<16x32xf32>
    %cst_104 = arith.constant dense<0.000000e+00> : vector<16x24xf32>
    %330 = tpu.matmul %329, %319, %cst_104 {dimension_numbers = #tpu.dot_dimension_numbers<[1], [0], [0], [1], [0, 0, 1, 1], [], []>} : vector<16x32xf32>, vector<32x24xf32>, vector<16x24xf32> -> vector<16x24xf32>
    %331 = vector.broadcast %320 : vector<16x1xf32> to vector<16x24xf32>
    %332 = arith.addf %330, %331 : vector<16x24xf32>
    %c0_105 = arith.constant 0 : index
    %c0_106 = arith.constant 0 : index
    %333 = vector.load %arg30[%c0_105, %c0_106] : memref<16x32xf32, #tpu.memory_space<vmem>>, vector<16x32xf32>
    %cst_107 = arith.constant dense<0.000000e+00> : vector<16x24xf32>
    %334 = tpu.matmul %333, %319, %cst_107 {dimension_numbers = #tpu.dot_dimension_numbers<[1], [0], [0], [1], [0, 0, 1, 1], [], []>} : vector<16x32xf32>, vector<32x24xf32>, vector<16x24xf32> -> vector<16x24xf32>
    %335 = vector.broadcast %320 : vector<16x1xf32> to vector<16x24xf32>
    %336 = arith.addf %334, %335 : vector<16x24xf32>
    %337 = tpu.concatenate %324, %328, %332, %336 in 1 : vector<16x24xf32>, vector<16x24xf32>, vector<16x24xf32>, vector<16x24xf32> -> vector<16x96xf32>
    %c0_108 = arith.constant 0 : index
    %c0_109 = arith.constant 0 : index
    %338 = vector.load %arg18[%c0_108, %c0_109] : memref<80x96xf32, #tpu.memory_space<vmem>>, vector<80x96xf32>
    %cst_110 = arith.constant dense<0.000000e+00> : vector<16x96xf32>
    %339 = tpu.matmul %224, %338, %cst_110 {dimension_numbers = #tpu.dot_dimension_numbers<[1], [0], [0], [1], [0, 0, 1, 1], [], []>} : vector<16x80xf32>, vector<80x96xf32>, vector<16x96xf32> -> vector<16x96xf32>
    %c0_111 = arith.constant 0 : index
    %c0_112 = arith.constant 0 : index
    %340 = vector.load %arg34[%c0_111, %c0_112] : memref<16x16xf32, #tpu.memory_space<vmem>>, vector<16x16xf32>
    %cst_113 = arith.constant dense<0.000000e+00> : vector<16x96xf32>
    %341 = tpu.matmul %340, %337, %cst_113 {dimension_numbers = #tpu.dot_dimension_numbers<[1], [0], [0], [1], [0, 0, 1, 1], [], []>} : vector<16x16xf32>, vector<16x96xf32>, vector<16x96xf32> -> vector<16x96xf32>
    %c0_114 = arith.constant 0 : index
    %c0_115 = arith.constant 0 : index
    %342 = vector.load %arg33[%c0_114, %c0_115] : memref<16x1xf32, #tpu.memory_space<vmem>>, vector<16x1xf32>
    %343 = vector.broadcast %342 : vector<16x1xf32> to vector<16x96xf32>
    %344 = arith.addf %341, %343 : vector<16x96xf32>
    %c0_116 = arith.constant 0 : index
    %c0_117 = arith.constant 0 : index
    %345 = vector.load %arg32[%c0_116, %c0_117] : memref<16x16xf32, #tpu.memory_space<vmem>>, vector<16x16xf32>
    %cst_118 = arith.constant dense<0.000000e+00> : vector<16x96xf32>
    %346 = tpu.matmul %345, %339, %cst_118 {dimension_numbers = #tpu.dot_dimension_numbers<[1], [0], [0], [1], [0, 0, 1, 1], [], []>} : vector<16x16xf32>, vector<16x96xf32>, vector<16x96xf32> -> vector<16x96xf32>
    %c0_119 = arith.constant 0 : index
    %c0_120 = arith.constant 0 : index
    %347 = vector.load %arg31[%c0_119, %c0_120] : memref<16x1xf32, #tpu.memory_space<vmem>>, vector<16x1xf32>
    %348 = vector.broadcast %347 : vector<16x1xf32> to vector<16x96xf32>
    %349 = arith.addf %346, %348 : vector<16x96xf32>
    %350 = arith.addf %344, %349 : vector<16x96xf32>
    %cst_121 = arith.constant 0.000000e+00 : f32
    %351 = vector.broadcast %cst_121 : f32 to vector<16x96xf32>
    %352 = arith.maximumf %350, %351 : vector<16x96xf32>
    %c0_122 = arith.constant 0 : index
    %c0_123 = arith.constant 0 : index
    %353 = vector.load %arg25[%c0_122, %c0_123] : memref<16x16xf32, #tpu.memory_space<vmem>>, vector<16x16xf32>
    %cst_124 = arith.constant dense<0.000000e+00> : vector<16x96xf32>
    %354 = tpu.matmul %353, %352, %cst_124 {dimension_numbers = #tpu.dot_dimension_numbers<[1], [0], [0], [1], [0, 0, 1, 1], [], []>} : vector<16x16xf32>, vector<16x96xf32>, vector<16x96xf32> -> vector<16x96xf32>
    %c0_125 = arith.constant 0 : index
    %c0_126 = arith.constant 0 : index
    %355 = vector.load %arg24[%c0_125, %c0_126] : memref<16x1xf32, #tpu.memory_space<vmem>>, vector<16x1xf32>
    %356 = vector.broadcast %355 : vector<16x1xf32> to vector<16x96xf32>
    %357 = arith.addf %354, %356 : vector<16x96xf32>
    %358 = arith.negf %357 : vector<16x96xf32>
    %359 = math.exp %358 : vector<16x96xf32>
    %cst_127 = arith.constant 1.000000e+00 : f32
    %360 = vector.broadcast %cst_127 : f32 to vector<16x96xf32>
    %361 = arith.addf %360, %359 : vector<16x96xf32>
    %362 = arith.divf %360, %361 : vector<16x96xf32>
    %cst_128 = arith.constant 1.000000e+00 : f32
    %363 = vector.broadcast %cst_128 : f32 to vector<16x96xf32>
    %364 = arith.addf %362, %363 : vector<16x96xf32>
    %365 = arith.mulf %337, %364 : vector<16x96xf32>
    %366 = tpu.concatenate %337, %365 in 0 : vector<16x96xf32>, vector<16x96xf32> -> vector<32x96xf32>
    %c0_129 = arith.constant 0 : index
    %c0_130 = arith.constant 0 : index
    %367 = vector.load %arg19[%c0_129, %c0_130] : memref<96x80xf32, #tpu.memory_space<vmem>>, vector<96x80xf32>
    %cst_131 = arith.constant dense<0.000000e+00> : vector<32x80xf32>
    %368 = tpu.matmul %366, %367, %cst_131 {dimension_numbers = #tpu.dot_dimension_numbers<[1], [0], [0], [1], [0, 0, 1, 1], [], []>} : vector<32x96xf32>, vector<96x80xf32>, vector<32x80xf32> -> vector<32x80xf32>
    %c0_132 = arith.constant 0 : index
    %c0_133 = arith.constant 0 : index
    %369 = vector.load %arg21[%c0_132, %c0_133] : memref<16x288xf32, #tpu.memory_space<vmem>>, vector<16x288xf32>
    %c0_134 = arith.constant 0 : index
    %c0_135 = arith.constant 0 : index
    %370 = vector.load %arg20[%c0_134, %c0_135] : memref<16x1xf32, #tpu.memory_space<vmem>>, vector<16x1xf32>
    %cst_136 = arith.constant 0.000000e+00 : f32
    %371 = vector.broadcast %cst_136 : f32 to vector<32x11xf32>
    %cst_137 = arith.constant 0.000000e+00 : f32
    %372 = vector.broadcast %cst_137 : f32 to vector<32x20xf32>
    %373 = tpu.concatenate %371, %368, %372 in 1 : vector<32x11xf32>, vector<32x80xf32>, vector<32x20xf32> -> vector<32x111xf32>
    %374 = vector.extract_strided_slice %373 {offsets = [0, 0], sizes = [32, 80], strides = [1, 1]} : vector<32x111xf32> to vector<32x80xf32>
    %375 = vector.extract_strided_slice %373 {offsets = [0, 1], sizes = [32, 80], strides = [1, 1]} : vector<32x111xf32> to vector<32x80xf32>
    %376 = vector.extract_strided_slice %373 {offsets = [0, 2], sizes = [32, 80], strides = [1, 1]} : vector<32x111xf32> to vector<32x80xf32>
    %377 = vector.extract_strided_slice %373 {offsets = [0, 10], sizes = [32, 80], strides = [1, 1]} : vector<32x111xf32> to vector<32x80xf32>
    %378 = vector.extract_strided_slice %373 {offsets = [0, 11], sizes = [32, 80], strides = [1, 1]} : vector<32x111xf32> to vector<32x80xf32>
    %379 = vector.extract_strided_slice %373 {offsets = [0, 12], sizes = [32, 80], strides = [1, 1]} : vector<32x111xf32> to vector<32x80xf32>
    %380 = vector.extract_strided_slice %373 {offsets = [0, 20], sizes = [32, 80], strides = [1, 1]} : vector<32x111xf32> to vector<32x80xf32>
    %381 = vector.extract_strided_slice %373 {offsets = [0, 21], sizes = [32, 80], strides = [1, 1]} : vector<32x111xf32> to vector<32x80xf32>
    %382 = vector.extract_strided_slice %373 {offsets = [0, 22], sizes = [32, 80], strides = [1, 1]} : vector<32x111xf32> to vector<32x80xf32>
    %383 = tpu.concatenate %374, %375, %376, %377, %378, %379, %380, %381, %382 in 0 : vector<32x80xf32>, vector<32x80xf32>, vector<32x80xf32>, vector<32x80xf32>, vector<32x80xf32>, vector<32x80xf32>, vector<32x80xf32>, vector<32x80xf32>, vector<32x80xf32> -> vector<288x80xf32>
    %cst_138 = arith.constant dense<0.000000e+00> : vector<16x80xf32>
    %384 = tpu.matmul %369, %383, %cst_138 {dimension_numbers = #tpu.dot_dimension_numbers<[1], [0], [0], [1], [0, 0, 1, 1], [], []>} : vector<16x288xf32>, vector<288x80xf32>, vector<16x80xf32> -> vector<16x80xf32>
    %385 = vector.broadcast %370 : vector<16x1xf32> to vector<16x80xf32>
    %386 = arith.addf %384, %385 : vector<16x80xf32>
    %cst_139 = arith.constant 0.000000e+00 : f32
    %387 = vector.broadcast %cst_139 : f32 to vector<16x80xf32>
    %388 = arith.maximumf %386, %387 : vector<16x80xf32>
    %389 = tpu.iota {dimensions = array<i32: 1>} : vector<1x80xi32>
    %c10_i32_140 = arith.constant 10 : i32
    %c0_i32_141 = arith.constant 0 : i32
    %390 = arith.cmpi eq, %c10_i32_140, %c0_i32_141 : i32
    %c1_i32_142 = arith.constant 1 : i32
    %391 = arith.select %390, %c1_i32_142, %c10_i32_140 : i32
    %392 = vector.broadcast %391 : i32 to vector<1x80xi32>
    %393 = arith.remsi %389, %392 : vector<1x80xi32>
    %c0_i32_143 = arith.constant 0 : i32
    %394 = vector.broadcast %c0_i32_143 : i32 to vector<1x80xi32>
    %395 = arith.cmpi ne, %393, %394 : vector<1x80xi32>
    %c0_i32_144 = arith.constant 0 : i32
    %396 = vector.broadcast %c0_i32_144 : i32 to vector<1x80xi32>
    %397 = arith.cmpi slt, %393, %396 : vector<1x80xi32>
    %c0_i32_145 = arith.constant 0 : i32
    %398 = arith.cmpi slt, %391, %c0_i32_145 : i32
    %399 = vector.broadcast %398 : i1 to vector<1x80xi1>
    %400 = vector.broadcast %399 : vector<1x80xi1> to vector<1x80xi1>
    %401 = arith.xori %397, %400 : vector<1x80xi1>
    %402 = arith.andi %401, %395 : vector<1x80xi1>
    %403 = vector.broadcast %391 : i32 to vector<1x80xi32>
    %404 = arith.addi %393, %403 : vector<1x80xi32>
    %405 = arith.select %402, %404, %393 : vector<1x80xi1>, vector<1x80xi32>
    %c8_i32_146 = arith.constant 8 : i32
    %406 = vector.broadcast %c8_i32_146 : i32 to vector<1x80xi32>
    %407 = arith.cmpi slt, %405, %406 : vector<1x80xi32>
    %cst_147 = arith.constant 0.000000e+00 : f32
    %408 = vector.shape_cast %407 : vector<1x80xi1> to vector<1x80xi1>
    %409 = vector.broadcast %408 : vector<1x80xi1> to vector<16x80xi1>
    %410 = vector.broadcast %cst_147 : f32 to vector<16x80xf32>
    %411 = arith.select %409, %388, %410 : vector<16x80xi1>, vector<16x80xf32>
    %c0_148 = arith.constant 0 : index
    %c0_149 = arith.constant 0 : index
    %412 = vector.load %arg23[%c0_148, %c0_149] : memref<16x144xf32, #tpu.memory_space<vmem>>, vector<16x144xf32>
    %c0_150 = arith.constant 0 : index
    %c0_151 = arith.constant 0 : index
    %413 = vector.load %arg22[%c0_150, %c0_151] : memref<16x1xf32, #tpu.memory_space<vmem>>, vector<16x1xf32>
    %cst_152 = arith.constant 0.000000e+00 : f32
    %414 = vector.broadcast %cst_152 : f32 to vector<16x11xf32>
    %cst_153 = arith.constant 0.000000e+00 : f32
    %415 = vector.broadcast %cst_153 : f32 to vector<16x20xf32>
    %416 = tpu.concatenate %414, %411, %415 in 1 : vector<16x11xf32>, vector<16x80xf32>, vector<16x20xf32> -> vector<16x111xf32>
    %417 = vector.extract_strided_slice %416 {offsets = [0, 0], sizes = [16, 80], strides = [1, 1]} : vector<16x111xf32> to vector<16x80xf32>
    %418 = vector.extract_strided_slice %416 {offsets = [0, 1], sizes = [16, 80], strides = [1, 1]} : vector<16x111xf32> to vector<16x80xf32>
    %419 = vector.extract_strided_slice %416 {offsets = [0, 2], sizes = [16, 80], strides = [1, 1]} : vector<16x111xf32> to vector<16x80xf32>
    %420 = vector.extract_strided_slice %416 {offsets = [0, 10], sizes = [16, 80], strides = [1, 1]} : vector<16x111xf32> to vector<16x80xf32>
    %421 = vector.extract_strided_slice %416 {offsets = [0, 11], sizes = [16, 80], strides = [1, 1]} : vector<16x111xf32> to vector<16x80xf32>
    %422 = vector.extract_strided_slice %416 {offsets = [0, 12], sizes = [16, 80], strides = [1, 1]} : vector<16x111xf32> to vector<16x80xf32>
    %423 = vector.extract_strided_slice %416 {offsets = [0, 20], sizes = [16, 80], strides = [1, 1]} : vector<16x111xf32> to vector<16x80xf32>
    %424 = vector.extract_strided_slice %416 {offsets = [0, 21], sizes = [16, 80], strides = [1, 1]} : vector<16x111xf32> to vector<16x80xf32>
    %425 = vector.extract_strided_slice %416 {offsets = [0, 22], sizes = [16, 80], strides = [1, 1]} : vector<16x111xf32> to vector<16x80xf32>
    %426 = tpu.concatenate %417, %418, %419, %420, %421, %422, %423, %424, %425 in 0 : vector<16x80xf32>, vector<16x80xf32>, vector<16x80xf32>, vector<16x80xf32>, vector<16x80xf32>, vector<16x80xf32>, vector<16x80xf32>, vector<16x80xf32>, vector<16x80xf32> -> vector<144x80xf32>
    %cst_154 = arith.constant dense<0.000000e+00> : vector<16x80xf32>
    %427 = tpu.matmul %412, %426, %cst_154 {dimension_numbers = #tpu.dot_dimension_numbers<[1], [0], [0], [1], [0, 0, 1, 1], [], []>} : vector<16x144xf32>, vector<144x80xf32>, vector<16x80xf32> -> vector<16x80xf32>
    %428 = vector.broadcast %413 : vector<16x1xf32> to vector<16x80xf32>
    %429 = arith.addf %427, %428 : vector<16x80xf32>
    %cst_155 = arith.constant 0.000000e+00 : f32
    %430 = vector.broadcast %cst_155 : f32 to vector<16x80xf32>
    %431 = arith.maximumf %429, %430 : vector<16x80xf32>
    %432 = tpu.iota {dimensions = array<i32: 1>} : vector<1x80xi32>
    %c10_i32_156 = arith.constant 10 : i32
    %c0_i32_157 = arith.constant 0 : i32
    %433 = arith.cmpi eq, %c10_i32_156, %c0_i32_157 : i32
    %c1_i32_158 = arith.constant 1 : i32
    %434 = arith.select %433, %c1_i32_158, %c10_i32_156 : i32
    %435 = vector.broadcast %434 : i32 to vector<1x80xi32>
    %436 = arith.remsi %432, %435 : vector<1x80xi32>
    %c0_i32_159 = arith.constant 0 : i32
    %437 = vector.broadcast %c0_i32_159 : i32 to vector<1x80xi32>
    %438 = arith.cmpi ne, %436, %437 : vector<1x80xi32>
    %c0_i32_160 = arith.constant 0 : i32
    %439 = vector.broadcast %c0_i32_160 : i32 to vector<1x80xi32>
    %440 = arith.cmpi slt, %436, %439 : vector<1x80xi32>
    %c0_i32_161 = arith.constant 0 : i32
    %441 = arith.cmpi slt, %434, %c0_i32_161 : i32
    %442 = vector.broadcast %441 : i1 to vector<1x80xi1>
    %443 = vector.broadcast %442 : vector<1x80xi1> to vector<1x80xi1>
    %444 = arith.xori %440, %443 : vector<1x80xi1>
    %445 = arith.andi %444, %438 : vector<1x80xi1>
    %446 = vector.broadcast %434 : i32 to vector<1x80xi32>
    %447 = arith.addi %436, %446 : vector<1x80xi32>
    %448 = arith.select %445, %447, %436 : vector<1x80xi1>, vector<1x80xi32>
    %c8_i32_162 = arith.constant 8 : i32
    %449 = vector.broadcast %c8_i32_162 : i32 to vector<1x80xi32>
    %450 = arith.cmpi slt, %448, %449 : vector<1x80xi32>
    %cst_163 = arith.constant 0.000000e+00 : f32
    %451 = vector.shape_cast %450 : vector<1x80xi1> to vector<1x80xi1>
    %452 = vector.broadcast %451 : vector<1x80xi1> to vector<16x80xi1>
    %453 = vector.broadcast %cst_163 : f32 to vector<16x80xf32>
    %454 = arith.select %452, %431, %453 : vector<16x80xi1>, vector<16x80xf32>
    %c0_164 = arith.constant 0 : index
    %c0_165 = arith.constant 0 : index
    %455 = vector.load %arg43[%c0_164, %c0_165] : memref<8x1xf32, #tpu.memory_space<vmem>>, vector<8x1xf32>
    %c0_166 = arith.constant 0 : index
    %c0_167 = arith.constant 0 : index
    %456 = vector.load %arg44[%c0_166, %c0_167] : memref<8x16xf32, #tpu.memory_space<vmem>>, vector<8x16xf32>
    %cst_168 = arith.constant dense<0.000000e+00> : vector<8x80xf32>
    %457 = tpu.matmul %456, %454, %cst_168 {dimension_numbers = #tpu.dot_dimension_numbers<[1], [0], [0], [1], [0, 0, 1, 1], [], []>} : vector<8x16xf32>, vector<16x80xf32>, vector<8x80xf32> -> vector<8x80xf32>
    %458 = vector.broadcast %455 : vector<8x1xf32> to vector<8x80xf32>
    %459 = arith.addf %457, %458 : vector<8x80xf32>
    %c0_169 = arith.constant 0 : index
    %c0_170 = arith.constant 0 : index
    %460 = vector.load %arg45[%c0_169, %c0_170] : memref<8x16xf32, #tpu.memory_space<vmem>>, vector<8x16xf32>
    %cst_171 = arith.constant dense<0.000000e+00> : vector<8x80xf32>
    %461 = tpu.matmul %460, %454, %cst_171 {dimension_numbers = #tpu.dot_dimension_numbers<[1], [0], [0], [1], [0, 0, 1, 1], [], []>} : vector<8x16xf32>, vector<16x80xf32>, vector<8x80xf32> -> vector<8x80xf32>
    %462 = vector.broadcast %455 : vector<8x1xf32> to vector<8x80xf32>
    %463 = arith.addf %461, %462 : vector<8x80xf32>
    %c0_172 = arith.constant 0 : index
    %c0_173 = arith.constant 0 : index
    %464 = vector.load %arg46[%c0_172, %c0_173] : memref<8x16xf32, #tpu.memory_space<vmem>>, vector<8x16xf32>
    %cst_174 = arith.constant dense<0.000000e+00> : vector<8x80xf32>
    %465 = tpu.matmul %464, %454, %cst_174 {dimension_numbers = #tpu.dot_dimension_numbers<[1], [0], [0], [1], [0, 0, 1, 1], [], []>} : vector<8x16xf32>, vector<16x80xf32>, vector<8x80xf32> -> vector<8x80xf32>
    %466 = vector.broadcast %455 : vector<8x1xf32> to vector<8x80xf32>
    %467 = arith.addf %465, %466 : vector<8x80xf32>
    %c0_175 = arith.constant 0 : index
    %c0_176 = arith.constant 0 : index
    %468 = vector.load %arg47[%c0_175, %c0_176] : memref<8x16xf32, #tpu.memory_space<vmem>>, vector<8x16xf32>
    %cst_177 = arith.constant dense<0.000000e+00> : vector<8x80xf32>
    %469 = tpu.matmul %468, %454, %cst_177 {dimension_numbers = #tpu.dot_dimension_numbers<[1], [0], [0], [1], [0, 0, 1, 1], [], []>} : vector<8x16xf32>, vector<16x80xf32>, vector<8x80xf32> -> vector<8x80xf32>
    %470 = vector.broadcast %455 : vector<8x1xf32> to vector<8x80xf32>
    %471 = arith.addf %469, %470 : vector<8x80xf32>
    %472 = tpu.concatenate %459, %463, %467, %471 in 1 : vector<8x80xf32>, vector<8x80xf32>, vector<8x80xf32>, vector<8x80xf32> -> vector<8x320xf32>
    %c0_178 = arith.constant 0 : index
    %c0_179 = arith.constant 0 : index
    %473 = vector.load %arg35[%c0_178, %c0_179] : memref<288x320xf32, #tpu.memory_space<vmem>>, vector<288x320xf32>
    %cst_180 = arith.constant dense<0.000000e+00> : vector<8x320xf32>
    %474 = tpu.matmul %129, %473, %cst_180 {dimension_numbers = #tpu.dot_dimension_numbers<[1], [0], [0], [1], [0, 0, 1, 1], [], []>} : vector<8x288xf32>, vector<288x320xf32>, vector<8x320xf32> -> vector<8x320xf32>
    %c0_181 = arith.constant 0 : index
    %c0_182 = arith.constant 0 : index
    %475 = vector.load %arg51[%c0_181, %c0_182] : memref<8x8xf32, #tpu.memory_space<vmem>>, vector<8x8xf32>
    %cst_183 = arith.constant dense<0.000000e+00> : vector<8x320xf32>
    %476 = tpu.matmul %475, %472, %cst_183 {dimension_numbers = #tpu.dot_dimension_numbers<[1], [0], [0], [1], [0, 0, 1, 1], [], []>} : vector<8x8xf32>, vector<8x320xf32>, vector<8x320xf32> -> vector<8x320xf32>
    %c0_184 = arith.constant 0 : index
    %c0_185 = arith.constant 0 : index
    %477 = vector.load %arg50[%c0_184, %c0_185] : memref<8x1xf32, #tpu.memory_space<vmem>>, vector<8x1xf32>
    %478 = vector.broadcast %477 : vector<8x1xf32> to vector<8x320xf32>
    %479 = arith.addf %476, %478 : vector<8x320xf32>
    %c0_186 = arith.constant 0 : index
    %c0_187 = arith.constant 0 : index
    %480 = vector.load %arg49[%c0_186, %c0_187] : memref<8x8xf32, #tpu.memory_space<vmem>>, vector<8x8xf32>
    %cst_188 = arith.constant dense<0.000000e+00> : vector<8x320xf32>
    %481 = tpu.matmul %480, %474, %cst_188 {dimension_numbers = #tpu.dot_dimension_numbers<[1], [0], [0], [1], [0, 0, 1, 1], [], []>} : vector<8x8xf32>, vector<8x320xf32>, vector<8x320xf32> -> vector<8x320xf32>
    %c0_189 = arith.constant 0 : index
    %c0_190 = arith.constant 0 : index
    %482 = vector.load %arg48[%c0_189, %c0_190] : memref<8x1xf32, #tpu.memory_space<vmem>>, vector<8x1xf32>
    %483 = vector.broadcast %482 : vector<8x1xf32> to vector<8x320xf32>
    %484 = arith.addf %481, %483 : vector<8x320xf32>
    %485 = arith.addf %479, %484 : vector<8x320xf32>
    %cst_191 = arith.constant 0.000000e+00 : f32
    %486 = vector.broadcast %cst_191 : f32 to vector<8x320xf32>
    %487 = arith.maximumf %485, %486 : vector<8x320xf32>
    %c0_192 = arith.constant 0 : index
    %c0_193 = arith.constant 0 : index
    %488 = vector.load %arg42[%c0_192, %c0_193] : memref<8x8xf32, #tpu.memory_space<vmem>>, vector<8x8xf32>
    %cst_194 = arith.constant dense<0.000000e+00> : vector<8x320xf32>
    %489 = tpu.matmul %488, %487, %cst_194 {dimension_numbers = #tpu.dot_dimension_numbers<[1], [0], [0], [1], [0, 0, 1, 1], [], []>} : vector<8x8xf32>, vector<8x320xf32>, vector<8x320xf32> -> vector<8x320xf32>
    %c0_195 = arith.constant 0 : index
    %c0_196 = arith.constant 0 : index
    %490 = vector.load %arg41[%c0_195, %c0_196] : memref<8x1xf32, #tpu.memory_space<vmem>>, vector<8x1xf32>
    %491 = vector.broadcast %490 : vector<8x1xf32> to vector<8x320xf32>
    %492 = arith.addf %489, %491 : vector<8x320xf32>
    %493 = arith.negf %492 : vector<8x320xf32>
    %494 = math.exp %493 : vector<8x320xf32>
    %cst_197 = arith.constant 1.000000e+00 : f32
    %495 = vector.broadcast %cst_197 : f32 to vector<8x320xf32>
    %496 = arith.addf %495, %494 : vector<8x320xf32>
    %497 = arith.divf %495, %496 : vector<8x320xf32>
    %cst_198 = arith.constant 1.000000e+00 : f32
    %498 = vector.broadcast %cst_198 : f32 to vector<8x320xf32>
    %499 = arith.addf %497, %498 : vector<8x320xf32>
    %500 = arith.mulf %472, %499 : vector<8x320xf32>
    %501 = tpu.concatenate %472, %500 in 0 : vector<8x320xf32>, vector<8x320xf32> -> vector<16x320xf32>
    %c0_199 = arith.constant 0 : index
    %c0_200 = arith.constant 0 : index
    %502 = vector.load %arg36[%c0_199, %c0_200] : memref<320x288xf32, #tpu.memory_space<vmem>>, vector<320x288xf32>
    %cst_201 = arith.constant dense<0.000000e+00> : vector<16x288xf32>
    %503 = tpu.matmul %501, %502, %cst_201 {dimension_numbers = #tpu.dot_dimension_numbers<[1], [0], [0], [1], [0, 0, 1, 1], [], []>} : vector<16x320xf32>, vector<320x288xf32>, vector<16x288xf32> -> vector<16x288xf32>
    %c0_202 = arith.constant 0 : index
    %c0_203 = arith.constant 0 : index
    %504 = vector.load %arg38[%c0_202, %c0_203] : memref<8x144xf32, #tpu.memory_space<vmem>>, vector<8x144xf32>
    %c0_204 = arith.constant 0 : index
    %c0_205 = arith.constant 0 : index
    %505 = vector.load %arg37[%c0_204, %c0_205] : memref<8x1xf32, #tpu.memory_space<vmem>>, vector<8x1xf32>
    %cst_206 = arith.constant 0.000000e+00 : f32
    %506 = vector.broadcast %cst_206 : f32 to vector<16x19xf32>
    %cst_207 = arith.constant 0.000000e+00 : f32
    %507 = vector.broadcast %cst_207 : f32 to vector<16x36xf32>
    %508 = tpu.concatenate %506, %503, %507 in 1 : vector<16x19xf32>, vector<16x288xf32>, vector<16x36xf32> -> vector<16x343xf32>
    %509 = vector.extract_strided_slice %508 {offsets = [0, 0], sizes = [16, 288], strides = [1, 1]} : vector<16x343xf32> to vector<16x288xf32>
    %510 = vector.extract_strided_slice %508 {offsets = [0, 1], sizes = [16, 288], strides = [1, 1]} : vector<16x343xf32> to vector<16x288xf32>
    %511 = vector.extract_strided_slice %508 {offsets = [0, 2], sizes = [16, 288], strides = [1, 1]} : vector<16x343xf32> to vector<16x288xf32>
    %512 = vector.extract_strided_slice %508 {offsets = [0, 18], sizes = [16, 288], strides = [1, 1]} : vector<16x343xf32> to vector<16x288xf32>
    %513 = vector.extract_strided_slice %508 {offsets = [0, 19], sizes = [16, 288], strides = [1, 1]} : vector<16x343xf32> to vector<16x288xf32>
    %514 = vector.extract_strided_slice %508 {offsets = [0, 20], sizes = [16, 288], strides = [1, 1]} : vector<16x343xf32> to vector<16x288xf32>
    %515 = vector.extract_strided_slice %508 {offsets = [0, 36], sizes = [16, 288], strides = [1, 1]} : vector<16x343xf32> to vector<16x288xf32>
    %516 = vector.extract_strided_slice %508 {offsets = [0, 37], sizes = [16, 288], strides = [1, 1]} : vector<16x343xf32> to vector<16x288xf32>
    %517 = vector.extract_strided_slice %508 {offsets = [0, 38], sizes = [16, 288], strides = [1, 1]} : vector<16x343xf32> to vector<16x288xf32>
    %518 = tpu.concatenate %509, %510, %511, %512, %513, %514, %515, %516, %517 in 0 : vector<16x288xf32>, vector<16x288xf32>, vector<16x288xf32>, vector<16x288xf32>, vector<16x288xf32>, vector<16x288xf32>, vector<16x288xf32>, vector<16x288xf32>, vector<16x288xf32> -> vector<144x288xf32>
    %cst_208 = arith.constant dense<0.000000e+00> : vector<8x288xf32>
    %519 = tpu.matmul %504, %518, %cst_208 {dimension_numbers = #tpu.dot_dimension_numbers<[1], [0], [0], [1], [0, 0, 1, 1], [], []>} : vector<8x144xf32>, vector<144x288xf32>, vector<8x288xf32> -> vector<8x288xf32>
    %520 = vector.broadcast %505 : vector<8x1xf32> to vector<8x288xf32>
    %521 = arith.addf %519, %520 : vector<8x288xf32>
    %cst_209 = arith.constant 0.000000e+00 : f32
    %522 = vector.broadcast %cst_209 : f32 to vector<8x288xf32>
    %523 = arith.maximumf %521, %522 : vector<8x288xf32>
    %524 = tpu.iota {dimensions = array<i32: 1>} : vector<1x288xi32>
    %c18_i32_210 = arith.constant 18 : i32
    %c0_i32_211 = arith.constant 0 : i32
    %525 = arith.cmpi eq, %c18_i32_210, %c0_i32_211 : i32
    %c1_i32_212 = arith.constant 1 : i32
    %526 = arith.select %525, %c1_i32_212, %c18_i32_210 : i32
    %527 = vector.broadcast %526 : i32 to vector<1x288xi32>
    %528 = arith.remsi %524, %527 : vector<1x288xi32>
    %c0_i32_213 = arith.constant 0 : i32
    %529 = vector.broadcast %c0_i32_213 : i32 to vector<1x288xi32>
    %530 = arith.cmpi ne, %528, %529 : vector<1x288xi32>
    %c0_i32_214 = arith.constant 0 : i32
    %531 = vector.broadcast %c0_i32_214 : i32 to vector<1x288xi32>
    %532 = arith.cmpi slt, %528, %531 : vector<1x288xi32>
    %c0_i32_215 = arith.constant 0 : i32
    %533 = arith.cmpi slt, %526, %c0_i32_215 : i32
    %534 = vector.broadcast %533 : i1 to vector<1x288xi1>
    %535 = vector.broadcast %534 : vector<1x288xi1> to vector<1x288xi1>
    %536 = arith.xori %532, %535 : vector<1x288xi1>
    %537 = arith.andi %536, %530 : vector<1x288xi1>
    %538 = vector.broadcast %526 : i32 to vector<1x288xi32>
    %539 = arith.addi %528, %538 : vector<1x288xi32>
    %540 = arith.select %537, %539, %528 : vector<1x288xi1>, vector<1x288xi32>
    %c16_i32_216 = arith.constant 16 : i32
    %541 = vector.broadcast %c16_i32_216 : i32 to vector<1x288xi32>
    %542 = arith.cmpi slt, %540, %541 : vector<1x288xi32>
    %cst_217 = arith.constant 0.000000e+00 : f32
    %543 = vector.shape_cast %542 : vector<1x288xi1> to vector<1x288xi1>
    %544 = vector.broadcast %543 : vector<1x288xi1> to vector<8x288xi1>
    %545 = vector.broadcast %cst_217 : f32 to vector<8x288xf32>
    %546 = arith.select %544, %523, %545 : vector<8x288xi1>, vector<8x288xf32>
    %c0_218 = arith.constant 0 : index
    %c0_219 = arith.constant 0 : index
    %547 = vector.load %arg40[%c0_218, %c0_219] : memref<8x72xf32, #tpu.memory_space<vmem>>, vector<8x72xf32>
    %c0_220 = arith.constant 0 : index
    %c0_221 = arith.constant 0 : index
    %548 = vector.load %arg39[%c0_220, %c0_221] : memref<8x1xf32, #tpu.memory_space<vmem>>, vector<8x1xf32>
    %cst_222 = arith.constant 0.000000e+00 : f32
    %549 = vector.broadcast %cst_222 : f32 to vector<8x19xf32>
    %cst_223 = arith.constant 0.000000e+00 : f32
    %550 = vector.broadcast %cst_223 : f32 to vector<8x36xf32>
    %551 = tpu.concatenate %549, %546, %550 in 1 : vector<8x19xf32>, vector<8x288xf32>, vector<8x36xf32> -> vector<8x343xf32>
    %552 = vector.extract_strided_slice %551 {offsets = [0, 0], sizes = [8, 288], strides = [1, 1]} : vector<8x343xf32> to vector<8x288xf32>
    %553 = vector.extract_strided_slice %551 {offsets = [0, 1], sizes = [8, 288], strides = [1, 1]} : vector<8x343xf32> to vector<8x288xf32>
    %554 = vector.extract_strided_slice %551 {offsets = [0, 2], sizes = [8, 288], strides = [1, 1]} : vector<8x343xf32> to vector<8x288xf32>
    %555 = vector.extract_strided_slice %551 {offsets = [0, 18], sizes = [8, 288], strides = [1, 1]} : vector<8x343xf32> to vector<8x288xf32>
    %556 = vector.extract_strided_slice %551 {offsets = [0, 19], sizes = [8, 288], strides = [1, 1]} : vector<8x343xf32> to vector<8x288xf32>
    %557 = vector.extract_strided_slice %551 {offsets = [0, 20], sizes = [8, 288], strides = [1, 1]} : vector<8x343xf32> to vector<8x288xf32>
    %558 = vector.extract_strided_slice %551 {offsets = [0, 36], sizes = [8, 288], strides = [1, 1]} : vector<8x343xf32> to vector<8x288xf32>
    %559 = vector.extract_strided_slice %551 {offsets = [0, 37], sizes = [8, 288], strides = [1, 1]} : vector<8x343xf32> to vector<8x288xf32>
    %560 = vector.extract_strided_slice %551 {offsets = [0, 38], sizes = [8, 288], strides = [1, 1]} : vector<8x343xf32> to vector<8x288xf32>
    %561 = tpu.concatenate %552, %553, %554, %555, %556, %557, %558, %559, %560 in 0 : vector<8x288xf32>, vector<8x288xf32>, vector<8x288xf32>, vector<8x288xf32>, vector<8x288xf32>, vector<8x288xf32>, vector<8x288xf32>, vector<8x288xf32>, vector<8x288xf32> -> vector<72x288xf32>
    %cst_224 = arith.constant dense<0.000000e+00> : vector<8x288xf32>
    %562 = tpu.matmul %547, %561, %cst_224 {dimension_numbers = #tpu.dot_dimension_numbers<[1], [0], [0], [1], [0, 0, 1, 1], [], []>} : vector<8x72xf32>, vector<72x288xf32>, vector<8x288xf32> -> vector<8x288xf32>
    %563 = vector.broadcast %548 : vector<8x1xf32> to vector<8x288xf32>
    %564 = arith.addf %562, %563 : vector<8x288xf32>
    %cst_225 = arith.constant 0.000000e+00 : f32
    %565 = vector.broadcast %cst_225 : f32 to vector<8x288xf32>
    %566 = arith.maximumf %564, %565 : vector<8x288xf32>
    %567 = tpu.iota {dimensions = array<i32: 1>} : vector<1x288xi32>
    %c18_i32_226 = arith.constant 18 : i32
    %c0_i32_227 = arith.constant 0 : i32
    %568 = arith.cmpi eq, %c18_i32_226, %c0_i32_227 : i32
    %c1_i32_228 = arith.constant 1 : i32
    %569 = arith.select %568, %c1_i32_228, %c18_i32_226 : i32
    %570 = vector.broadcast %569 : i32 to vector<1x288xi32>
    %571 = arith.remsi %567, %570 : vector<1x288xi32>
    %c0_i32_229 = arith.constant 0 : i32
    %572 = vector.broadcast %c0_i32_229 : i32 to vector<1x288xi32>
    %573 = arith.cmpi ne, %571, %572 : vector<1x288xi32>
    %c0_i32_230 = arith.constant 0 : i32
    %574 = vector.broadcast %c0_i32_230 : i32 to vector<1x288xi32>
    %575 = arith.cmpi slt, %571, %574 : vector<1x288xi32>
    %c0_i32_231 = arith.constant 0 : i32
    %576 = arith.cmpi slt, %569, %c0_i32_231 : i32
    %577 = vector.broadcast %576 : i1 to vector<1x288xi1>
    %578 = vector.broadcast %577 : vector<1x288xi1> to vector<1x288xi1>
    %579 = arith.xori %575, %578 : vector<1x288xi1>
    %580 = arith.andi %579, %573 : vector<1x288xi1>
    %581 = vector.broadcast %569 : i32 to vector<1x288xi32>
    %582 = arith.addi %571, %581 : vector<1x288xi32>
    %583 = arith.select %580, %582, %571 : vector<1x288xi1>, vector<1x288xi32>
    %c16_i32_232 = arith.constant 16 : i32
    %584 = vector.broadcast %c16_i32_232 : i32 to vector<1x288xi32>
    %585 = arith.cmpi slt, %583, %584 : vector<1x288xi32>
    %cst_233 = arith.constant 0.000000e+00 : f32
    %586 = vector.shape_cast %585 : vector<1x288xi1> to vector<1x288xi1>
    %587 = vector.broadcast %586 : vector<1x288xi1> to vector<8x288xi1>
    %588 = vector.broadcast %cst_233 : f32 to vector<8x288xf32>
    %589 = arith.select %587, %566, %588 : vector<8x288xi1>, vector<8x288xf32>
    %c0_234 = arith.constant 0 : index
    %c0_235 = arith.constant 0 : index
    %590 = vector.load %arg15[%c0_234, %c0_235] : memref<2x8xf32, #tpu.memory_space<vmem>>, vector<2x8xf32>
    %cst_236 = arith.constant dense<0.000000e+00> : vector<2x288xf32>
    %591 = tpu.matmul %590, %589, %cst_236 {dimension_numbers = #tpu.dot_dimension_numbers<[1], [0], [0], [1], [0, 0, 1, 1], [], []>} : vector<2x8xf32>, vector<8x288xf32>, vector<2x288xf32> -> vector<2x288xf32>
    %c0_237 = arith.constant 0 : index
    %c0_238 = arith.constant 0 : index
    %592 = vector.load %arg14[%c0_237, %c0_238] : memref<2x1xf32, #tpu.memory_space<vmem>>, vector<2x1xf32>
    %593 = vector.broadcast %592 : vector<2x1xf32> to vector<2x288xf32>
    %594 = arith.addf %591, %593 : vector<2x288xf32>
    %c0_239 = arith.constant 0 : index
    %c0_240 = arith.constant 0 : index
    %c0_241 = arith.constant 0 : index
    %595 = vector.load %arg52[%c0_239, %c0_240, %c0_241] : memref<1x2x288xf32, #tpu.memory_space<vmem>>, vector<1x2x288xf32>
    %596 = vector.shape_cast %595 : vector<1x2x288xf32> to vector<2x288xf32>
    %597 = vector.shape_cast %594 : vector<2x288xf32> to vector<1x2x288xf32>
    tpu.vector_store %arg52[%c0_239, %c0_240, %c0_241], %597 {strides = array<i32>} : memref<1x2x288xf32, #tpu.memory_space<vmem>>, vector<1x2x288xf32>,
    return
  }
  func.func @transform_0(%arg0: i32) -> (i32, i32, i32) {
    %c0_i32 = arith.constant 0 : i32
    %c0_i32_0 = arith.constant 0 : i32
    %c0_i32_1 = arith.constant 0 : i32
    return %arg0, %c0_i32, %c0_i32_0 : i32, i32, i32
  }
  func.func @transform_1(%arg0: i32) -> (i32, i32) {
    %c0_i32 = arith.constant 0 : i32
    %c0_i32_0 = arith.constant 0 : i32
    %c0_i32_1 = arith.constant 0 : i32
    return %c0_i32, %c0_i32_0 : i32, i32
  }
  func.func @transform_2(%arg0: i32) -> (i32, i32) {
    %c0_i32 = arith.constant 0 : i32
    %c0_i32_0 = arith.constant 0 : i32
    %c0_i32_1 = arith.constant 0 : i32
    return %c0_i32, %c0_i32_0 : i32, i32
  }
  func.func @transform_3(%arg0: i32) -> (i32, i32) {
    %c0_i32 = arith.constant 0 : i32
    %c0_i32_0 = arith.constant 0 : i32
    %c0_i32_1 = arith.constant 0 : i32
    return %c0_i32, %c0_i32_0 : i32, i32
  }
  func.func @transform_4(%arg0: i32) -> (i32, i32) {
    %c0_i32 = arith.constant 0 : i32
    %c0_i32_0 = arith.constant 0 : i32
    %c0_i32_1 = arith.constant 0 : i32
    return %c0_i32, %c0_i32_0 : i32, i32
  }
  func.func @transform_5(%arg0: i32) -> (i32, i32) {
    %c0_i32 = arith.constant 0 : i32
    %c0_i32_0 = arith.constant 0 : i32
    %c0_i32_1 = arith.constant 0 : i32
    return %c0_i32, %c0_i32_0 : i32, i32
  }
  func.func @transform_6(%arg0: i32) -> (i32, i32) {
    %c0_i32 = arith.constant 0 : i32
    %c0_i32_0 = arith.constant 0 : i32
    %c0_i32_1 = arith.constant 0 : i32
    return %c0_i32, %c0_i32_0 : i32, i32
  }
  func.func @transform_7(%arg0: i32) -> (i32, i32) {
    %c0_i32 = arith.constant 0 : i32
    %c0_i32_0 = arith.constant 0 : i32
    %c0_i32_1 = arith.constant 0 : i32
    return %c0_i32, %c0_i32_0 : i32, i32
  }
  func.func @transform_8(%arg0: i32) -> (i32, i32) {
    %c0_i32 = arith.constant 0 : i32
    %c0_i32_0 = arith.constant 0 : i32
    %c0_i32_1 = arith.constant 0 : i32
    return %c0_i32, %c0_i32_0 : i32, i32
  }
  func.func @transform_9(%arg0: i32) -> (i32, i32) {
    %c0_i32 = arith.constant 0 : i32
    %c0_i32_0 = arith.constant 0 : i32
    %c0_i32_1 = arith.constant 0 : i32
    return %c0_i32, %c0_i32_0 : i32, i32
  }
  func.func @transform_10(%arg0: i32) -> (i32, i32) {
    %c0_i32 = arith.constant 0 : i32
    %c0_i32_0 = arith.constant 0 : i32
    %c0_i32_1 = arith.constant 0 : i32
    return %c0_i32, %c0_i32_0 : i32, i32
  }
  func.func @transform_11(%arg0: i32) -> (i32, i32) {
    %c0_i32 = arith.constant 0 : i32
    %c0_i32_0 = arith.constant 0 : i32
    %c0_i32_1 = arith.constant 0 : i32
    return %c0_i32, %c0_i32_0 : i32, i32
  }
  func.func @transform_12(%arg0: i32) -> (i32, i32) {
    %c0_i32 = arith.constant 0 : i32
    %c0_i32_0 = arith.constant 0 : i32
    %c0_i32_1 = arith.constant 0 : i32
    return %c0_i32, %c0_i32_0 : i32, i32
  }
  func.func @transform_13(%arg0: i32) -> (i32, i32) {
    %c0_i32 = arith.constant 0 : i32
    %c0_i32_0 = arith.constant 0 : i32
    %c0_i32_1 = arith.constant 0 : i32
    return %c0_i32, %c0_i32_0 : i32, i32
  }
  func.func @transform_14(%arg0: i32) -> (i32, i32) {
    %c0_i32 = arith.constant 0 : i32
    %c0_i32_0 = arith.constant 0 : i32
    %c0_i32_1 = arith.constant 0 : i32
    return %c0_i32, %c0_i32_0 : i32, i32
  }
  func.func @transform_15(%arg0: i32) -> (i32, i32) {
    %c0_i32 = arith.constant 0 : i32
    %c0_i32_0 = arith.constant 0 : i32
    %c0_i32_1 = arith.constant 0 : i32
    return %c0_i32, %c0_i32_0 : i32, i32
  }
  func.func @transform_16(%arg0: i32) -> (i32, i32) {
    %c0_i32 = arith.constant 0 : i32
    %c0_i32_0 = arith.constant 0 : i32
    %c0_i32_1 = arith.constant 0 : i32
    return %c0_i32, %c0_i32_0 : i32, i32
  }
  func.func @transform_17(%arg0: i32) -> (i32, i32) {
    %c0_i32 = arith.constant 0 : i32
    %c0_i32_0 = arith.constant 0 : i32
    %c0_i32_1 = arith.constant 0 : i32
    return %c0_i32, %c0_i32_0 : i32, i32
  }
  func.func @transform_18(%arg0: i32) -> (i32, i32) {
    %c0_i32 = arith.constant 0 : i32
    %c0_i32_0 = arith.constant 0 : i32
    %c0_i32_1 = arith.constant 0 : i32
    return %c0_i32, %c0_i32_0 : i32, i32
  }
  func.func @transform_19(%arg0: i32) -> (i32, i32) {
    %c0_i32 = arith.constant 0 : i32
    %c0_i32_0 = arith.constant 0 : i32
    %c0_i32_1 = arith.constant 0 : i32
    return %c0_i32, %c0_i32_0 : i32, i32
  }
  func.func @transform_20(%arg0: i32) -> (i32, i32) {
    %c0_i32 = arith.constant 0 : i32
    %c0_i32_0 = arith.constant 0 : i32
    %c0_i32_1 = arith.constant 0 : i32
    return %c0_i32, %c0_i32_0 : i32, i32
  }
  func.func @transform_21(%arg0: i32) -> (i32, i32) {
    %c0_i32 = arith.constant 0 : i32
    %c0_i32_0 = arith.constant 0 : i32
    %c0_i32_1 = arith.constant 0 : i32
    return %c0_i32, %c0_i32_0 : i32, i32
  }
  func.func @transform_22(%arg0: i32) -> (i32, i32) {
    %c0_i32 = arith.constant 0 : i32
    %c0_i32_0 = arith.constant 0 : i32
    %c0_i32_1 = arith.constant 0 : i32
    return %c0_i32, %c0_i32_0 : i32, i32
  }
  func.func @transform_23(%arg0: i32) -> (i32, i32) {
    %c0_i32 = arith.constant 0 : i32
    %c0_i32_0 = arith.constant 0 : i32
    %c0_i32_1 = arith.constant 0 : i32
    return %c0_i32, %c0_i32_0 : i32, i32
  }
  func.func @transform_24(%arg0: i32) -> (i32, i32) {
    %c0_i32 = arith.constant 0 : i32
    %c0_i32_0 = arith.constant 0 : i32
    %c0_i32_1 = arith.constant 0 : i32
    return %c0_i32, %c0_i32_0 : i32, i32
  }
  func.func @transform_25(%arg0: i32) -> (i32, i32) {
    %c0_i32 = arith.constant 0 : i32
    %c0_i32_0 = arith.constant 0 : i32
    %c0_i32_1 = arith.constant 0 : i32
    return %c0_i32, %c0_i32_0 : i32, i32
  }
  func.func @transform_26(%arg0: i32) -> (i32, i32) {
    %c0_i32 = arith.constant 0 : i32
    %c0_i32_0 = arith.constant 0 : i32
    %c0_i32_1 = arith.constant 0 : i32
    return %c0_i32, %c0_i32_0 : i32, i32
  }
  func.func @transform_27(%arg0: i32) -> (i32, i32) {
    %c0_i32 = arith.constant 0 : i32
    %c0_i32_0 = arith.constant 0 : i32
    %c0_i32_1 = arith.constant 0 : i32
    return %c0_i32, %c0_i32_0 : i32, i32
  }
  func.func @transform_28(%arg0: i32) -> (i32, i32) {
    %c0_i32 = arith.constant 0 : i32
    %c0_i32_0 = arith.constant 0 : i32
    %c0_i32_1 = arith.constant 0 : i32
    return %c0_i32, %c0_i32_0 : i32, i32
  }
  func.func @transform_29(%arg0: i32) -> (i32, i32) {
    %c0_i32 = arith.constant 0 : i32
    %c0_i32_0 = arith.constant 0 : i32
    %c0_i32_1 = arith.constant 0 : i32
    return %c0_i32, %c0_i32_0 : i32, i32
  }
  func.func @transform_30(%arg0: i32) -> (i32, i32) {
    %c0_i32 = arith.constant 0 : i32
    %c0_i32_0 = arith.constant 0 : i32
    %c0_i32_1 = arith.constant 0 : i32
    return %c0_i32, %c0_i32_0 : i32, i32
  }
  func.func @transform_31(%arg0: i32) -> (i32, i32) {
    %c0_i32 = arith.constant 0 : i32
    %c0_i32_0 = arith.constant 0 : i32
    %c0_i32_1 = arith.constant 0 : i32
    return %c0_i32, %c0_i32_0 : i32, i32
  }
  func.func @transform_32(%arg0: i32) -> (i32, i32) {
    %c0_i32 = arith.constant 0 : i32
    %c0_i32_0 = arith.constant 0 : i32
    %c0_i32_1 = arith.constant 0 : i32
    return %c0_i32, %c0_i32_0 : i32, i32
  }
  func.func @transform_33(%arg0: i32) -> (i32, i32) {
    %c0_i32 = arith.constant 0 : i32
    %c0_i32_0 = arith.constant 0 : i32
    %c0_i32_1 = arith.constant 0 : i32
    return %c0_i32, %c0_i32_0 : i32, i32
  }
  func.func @transform_34(%arg0: i32) -> (i32, i32) {
    %c0_i32 = arith.constant 0 : i32
    %c0_i32_0 = arith.constant 0 : i32
    %c0_i32_1 = arith.constant 0 : i32
    return %c0_i32, %c0_i32_0 : i32, i32
  }
  func.func @transform_35(%arg0: i32) -> (i32, i32) {
    %c0_i32 = arith.constant 0 : i32
    %c0_i32_0 = arith.constant 0 : i32
    %c0_i32_1 = arith.constant 0 : i32
    return %c0_i32, %c0_i32_0 : i32, i32
  }
  func.func @transform_36(%arg0: i32) -> (i32, i32) {
    %c0_i32 = arith.constant 0 : i32
    %c0_i32_0 = arith.constant 0 : i32
    %c0_i32_1 = arith.constant 0 : i32
    return %c0_i32, %c0_i32_0 : i32, i32
  }
  func.func @transform_37(%arg0: i32) -> (i32, i32) {
    %c0_i32 = arith.constant 0 : i32
    %c0_i32_0 = arith.constant 0 : i32
    %c0_i32_1 = arith.constant 0 : i32
    return %c0_i32, %c0_i32_0 : i32, i32
  }
  func.func @transform_38(%arg0: i32) -> (i32, i32) {
    %c0_i32 = arith.constant 0 : i32
    %c0_i32_0 = arith.constant 0 : i32
    %c0_i32_1 = arith.constant 0 : i32
    return %c0_i32, %c0_i32_0 : i32, i32
  }
  func.func @transform_39(%arg0: i32) -> (i32, i32) {
    %c0_i32 = arith.constant 0 : i32
    %c0_i32_0 = arith.constant 0 : i32
    %c0_i32_1 = arith.constant 0 : i32
    return %c0_i32, %c0_i32_0 : i32, i32
  }
  func.func @transform_40(%arg0: i32) -> (i32, i32) {
    %c0_i32 = arith.constant 0 : i32
    %c0_i32_0 = arith.constant 0 : i32
    %c0_i32_1 = arith.constant 0 : i32
    return %c0_i32, %c0_i32_0 : i32, i32
  }
  func.func @transform_41(%arg0: i32) -> (i32, i32) {
    %c0_i32 = arith.constant 0 : i32
    %c0_i32_0 = arith.constant 0 : i32
    %c0_i32_1 = arith.constant 0 : i32
    return %c0_i32, %c0_i32_0 : i32, i32
  }
  func.func @transform_42(%arg0: i32) -> (i32, i32) {
    %c0_i32 = arith.constant 0 : i32
    %c0_i32_0 = arith.constant 0 : i32
    %c0_i32_1 = arith.constant 0 : i32
    return %c0_i32, %c0_i32_0 : i32, i32
  }
  func.func @transform_43(%arg0: i32) -> (i32, i32) {
    %c0_i32 = arith.constant 0 : i32
    %c0_i32_0 = arith.constant 0 : i32
    %c0_i32_1 = arith.constant 0 : i32
    return %c0_i32, %c0_i32_0 : i32, i32
  }
  func.func @transform_44(%arg0: i32) -> (i32, i32) {
    %c0_i32 = arith.constant 0 : i32
    %c0_i32_0 = arith.constant 0 : i32
    %c0_i32_1 = arith.constant 0 : i32
    return %c0_i32, %c0_i32_0 : i32, i32
  }
  func.func @transform_45(%arg0: i32) -> (i32, i32) {
    %c0_i32 = arith.constant 0 : i32
    %c0_i32_0 = arith.constant 0 : i32
    %c0_i32_1 = arith.constant 0 : i32
    return %c0_i32, %c0_i32_0 : i32, i32
  }
  func.func @transform_46(%arg0: i32) -> (i32, i32) {
    %c0_i32 = arith.constant 0 : i32
    %c0_i32_0 = arith.constant 0 : i32
    %c0_i32_1 = arith.constant 0 : i32
    return %c0_i32, %c0_i32_0 : i32, i32
  }
  func.func @transform_47(%arg0: i32) -> (i32, i32) {
    %c0_i32 = arith.constant 0 : i32
    %c0_i32_0 = arith.constant 0 : i32
    %c0_i32_1 = arith.constant 0 : i32
    return %c0_i32, %c0_i32_0 : i32, i32
  }
  func.func @transform_48(%arg0: i32) -> (i32, i32) {
    %c0_i32 = arith.constant 0 : i32
    %c0_i32_0 = arith.constant 0 : i32
    %c0_i32_1 = arith.constant 0 : i32
    return %c0_i32, %c0_i32_0 : i32, i32
  }
  func.func @transform_49(%arg0: i32) -> (i32, i32) {
    %c0_i32 = arith.constant 0 : i32
    %c0_i32_0 = arith.constant 0 : i32
    %c0_i32_1 = arith.constant 0 : i32
    return %c0_i32, %c0_i32_0 : i32, i32
  }
  func.func @transform_50(%arg0: i32) -> (i32, i32) {
    %c0_i32 = arith.constant 0 : i32
    %c0_i32_0 = arith.constant 0 : i32
    %c0_i32_1 = arith.constant 0 : i32
    return %c0_i32, %c0_i32_0 : i32, i32
  }
  func.func @transform_51(%arg0: i32) -> (i32, i32, i32) {
    %c0_i32 = arith.constant 0 : i32
    %c0_i32_0 = arith.constant 0 : i32
    %c0_i32_1 = arith.constant 0 : i32
    return %arg0, %c0_i32, %c0_i32_0 : i32, i32, i32
  }
}

</mosaic_0001>

<bundles_post_ra>
// kernel: attention_unet_forward.1
= control target key start
LH: loop header
LB: loop body
LE: loop exit
PB: predicated region body
PF: predicated region fallthrough
CT: control target
= control target key end

     0   :  { %s8426_s6 = smov 1   ;;  %s8427_s10 = smov 2   ;;  %s10420_s0 = inlined_call_operand.smem [shape: u32[52], index: -1, kind: input, shape index: {}] }
   0x1   :  { %s8530_s5 = sld [smem:[%s10420_s0]]   ;;  %s8428_s14 = smov 3  }
   0x2   :  { %s8535_s9 = sld [smem:[%s10420_s0 + %s8426_s6]]   ;;  %s8429_s18 = smov 4  }
   0x3   :  { %s8540_s13 = sld [smem:[%s10420_s0 + %s8427_s10]]   ;;  %s8430_s22 = smov 5  }
   0x4   :  { %s8545_s17 = sld [smem:[%s10420_s0 + %s8428_s14]]   ;;  %s8431_s26 = smov 6  }
   0x5   :  { %s8550_s21 = sld [smem:[%s10420_s0 + %s8429_s18]]   ;;  %s8432_s30 = smov 7  }
   0x6   :  { %s8555_s25 = sld [smem:[%s10420_s0 + %s8430_s22]]   ;;  %s8433_s4 = smov 8  }
   0x7   :  { %10499 = sst [smem:[#allocation12_spill]] %s8530_s5  ;;  %s8434_s10 = smov 9  }
   0x8   :  { %10500 = sst [smem:[#allocation13_spill]] %s8535_s9  ;;  %s8435_s15 = smov 10  }
   0x9   :  { %s8560_s29 = sld [smem:[%s10420_s0 + %s8431_s26]]   ;;  %s8436_s20 = smov 11  }
   0xa   :  { %s8565_s3 = sld [smem:[%s10420_s0 + %s8432_s30]]   ;;  %s8437_s26 = smov 12  }
   0xb   :  { %s8570_s8 = sld [smem:[%s10420_s0 + %s8433_s4]]   ;;  %s8438_s1 = smov 13  }
   0xc   :  { %s8575_s14 = sld [smem:[%s10420_s0 + %s8434_s10]]   ;;  %s8439_s7 = smov 14  }
   0xd   :  { %s8580_s19 = sld [smem:[%s10420_s0 + %s8435_s15]]   ;;  %s8440_s15 = smov 15  }
   0xe   :  { %s8585_s24 = sld [smem:[%s10420_s0 + %s8436_s20]]   ;;  %s8441_s22 = smov 16  }
   0xf   :  { %s8590_s30 = sld [smem:[%s10420_s0 + %s8437_s26]]   ;;  %s8442_s28 = smov 17  }
  0x10   :  { %10501 = sst [smem:[#allocation14_spill]] %s8565_s3 }
  0x11   :  { %10502 = sst [smem:[#allocation15_spill]] %s8570_s8 }
  0x12   :  { %10503 = sst [smem:[#allocation16_spill]] %s8575_s14 }
  0x13   :  { %10504 = sst [smem:[#allocation17_spill]] %s8580_s19 }
  0x14   :  { %10505 = sst [smem:[#allocation18_spill]] %s8585_s24 }
  0x15   :  { %10506 = sst [smem:[#allocation19_spill]] %s8590_s30 }
  0x16   :  { %s8595_s6 = sld [smem:[%s10420_s0 + %s8438_s1]]  }
  0x17   :  { %s8600_s12 = sld [smem:[%s10420_s0 + %s8439_s7]]   ;;  %s8443_s7 = smov 18  }
  0x18   :  { %s8605_s20 = sld [smem:[%s10420_s0 + %s8440_s15]]   ;;  %s8444_s15 = smov 19  }
  0x19   :  { %s8610_s27 = sld [smem:[%s10420_s0 + %s8441_s22]]   ;;  %s8445_s22 = smov 20  }
  0x1a   :  { %s8615_s4 = sld [smem:[%s10420_s0 + %s8442_s28]]   ;;  %s8446_s28 = smov 21  }
  0x1b   :  { %s8625_s24 = sld [smem:[%s10420_s0 + %s8444_s15]]   ;;  %s8448_s15 = smov 23  }
  0x1c   :  { %10507 = sst [smem:[#allocation20_spill]] %s8595_s6 }
  0x1d   :  { %s8620_s6 = sld [smem:[%s10420_s0 + %s8443_s7]]   ;;  %s8447_s7 = smov 22  }
  0x1e   :  { %s8630_s30 = sld [smem:[%s10420_s0 + %s8445_s22]]   ;;  %s8449_s22 = smov 24  }
  0x1f   :  { %s8635_s14 = sld [smem:[%s10420_s0 + %s8446_s28]]   ;;  %s8450_s28 = smov 25  }
  0x20   :  { %10508 = sst [smem:[#allocation21_spill]] %s8615_s4 }
  0x21   :  { %10510 = sst [smem:[#allocation23_spill]] %s8625_s24 }
  0x22   :  { %s8640_s19 = sld [smem:[%s10420_s0 + %s8447_s7]]   ;;  %s8451_s7 = smov 26  }
  0x23   :  { %10509 = sst [smem:[#allocation22_spill]] %s8620_s6 }
  0x24   :  { %10511 = sst [smem:[#allocation24_spill]] %s8630_s30 }
  0x25   :  { %10512 = sst [smem:[#allocation25_spill]] %s8635_s14 }
  0x26   :  { %s8645_s24 = sld [smem:[%s10420_s0 + %s8448_s15]]   ;;  %s8452_s15 = smov 27  }
  0x27   :  { %s8650_s30 = sld [smem:[%s10420_s0 + %s8449_s22]]   ;;  %s8453_s22 = smov 28  }
  0x28   :  { %10513 = sst [smem:[#allocation26_spill]] %s8640_s19 }
  0x29   :  { %s8655_s14 = sld [smem:[%s10420_s0 + %s8450_s28]]   ;;  %s8454_s28 = smov 29  }
  0x2a   :  { %s8660_s19 = sld [smem:[%s10420_s0 + %s8451_s7]]   ;;  %s8455_s7 = smov 30  }
  0x2c   :  { %10514 = sst [smem:[#allocation27_spill]] %s8645_s24 }
  0x2d   :  { %10515 = sst [smem:[#allocation28_spill]] %s8650_s30 }
  0x2e   :  { %s8665_s24 = sld [smem:[%s10420_s0 + %s8452_s15]]   ;;  %s8456_s15 = smov 31  }
  0x2f   :  { %10516 = sst [smem:[#allocation29_spill]] %s8655_s14 }
  0x30   :  { %10517 = sst [smem:[#allocation30_spill]] %s8660_s19 }
  0x31   :  { %s8670_s30 = sld [smem:[%s10420_s0 + %s8453_s22]]   ;;  %s8457_s22 = smov 32  }
  0x32   :  { %s8675_s14 = sld [smem:[%s10420_s0 + %s8454_s28]]   ;;  %s8458_s28 = smov 33  }
  0x33   :  { %s8680_s19 = sld [smem:[%s10420_s0 + %s8455_s7]]   ;;  %s8459_s7 = smov 34  }
  0x34   :  { %10518 = sst [smem:[#allocation31_spill]] %s8665_s24 }
  0x35   :  { %s8685_s24 = sld [smem:[%s10420_s0 + %s8456_s15]]   ;;  %s8460_s15 = smov 35  }
  0x37   :  { %10519 = sst [smem:[#allocation32_spill]] %s8670_s30 }
  0x38   :  { %10520 = sst [smem:[#allocation33_spill]] %s8675_s14 }
  0x39   :  { %10521 = sst [smem:[#allocation34_spill]] %s8680_s19 }
  0x3a   :  { %s8690_s30 = sld [smem:[%s10420_s0 + %s8457_s22]]   ;;  %s8461_s22 = smov 36  }
  0x3b   :  { %10522 = sst [smem:[#allocation35_spill]] %s8685_s24 }
  0x3c   :  { %s8695_s14 = sld [smem:[%s10420_s0 + %s8458_s28]]   ;;  %s8462_s28 = smov 37  }
  0x3d   :  { %s8700_s19 = sld [smem:[%s10420_s0 + %s8459_s7]]   ;;  %s8463_s7 = smov 38  }
  0x3e   :  { %s8705_s24 = sld [smem:[%s10420_s0 + %s8460_s15]]   ;;  %s8464_s15 = smov 39  }
  0x40   :  { %10523 = sst [smem:[#allocation36_spill]] %s8690_s30 }
  0x41   :  { %s8710_s30 = sld [smem:[%s10420_s0 + %s8461_s22]]   ;;  %s8465_s22 = smov 40  }
  0x42   :  { %10524 = sst [smem:[#allocation37_spill]] %s8695_s14 }
  0x43   :  { %10525 = sst [smem:[#allocation38_spill]] %s8700_s19 }
  0x44   :  { %10526 = sst [smem:[#allocation39_spill]] %s8705_s24 }
  0x45   :  { %s8715_s14 = sld [smem:[%s10420_s0 + %s8462_s28]]   ;;  %s8466_s28 = smov 41  }
  0x46   :  { %s8720_s19 = sld [smem:[%s10420_s0 + %s8463_s7]]   ;;  %s8467_s7 = smov 42  }
  0x47   :  { %10527 = sst [smem:[#allocation40_spill]] %s8710_s30 }
  0x48   :  { %s8725_s24 = sld [smem:[%s10420_s0 + %s8464_s15]]   ;;  %s8468_s15 = smov 43  }
  0x49   :  { %s8730_s30 = sld [smem:[%s10420_s0 + %s8465_s22]]   ;;  %s8469_s22 = smov 44  }
  0x4b   :  { %10528 = sst [smem:[#allocation41_spill]] %s8715_s14 }
  0x4c   :  { %10529 = sst [smem:[#allocation42_spill]] %s8720_s19 }
  0x4d   :  { %s8735_s14 = sld [smem:[%s10420_s0 + %s8466_s28]]   ;;  %s8470_s28 = smov 45  }
  0x4e   :  { %10530 = sst [smem:[#allocation43_spill]] %s8725_s24 }
  0x4f   :  { %10531 = sst [smem:[#allocation44_spill]] %s8730_s30 }
  0x50   :  { %s8740_s19 = sld [smem:[%s10420_s0 + %s8467_s7]]   ;;  %s8471_s7 = smov 46  }
  0x51   :  { %s8745_s24 = sld [smem:[%s10420_s0 + %s8468_s15]]   ;;  %s8472_s15 = smov 47  }
  0x52   :  { %s8750_s30 = sld [smem:[%s10420_s0 + %s8469_s22]]   ;;  %s8473_s22 = smov 48  }
  0x53   :  { %10532 = sst [smem:[#allocation45_spill]] %s8735_s14 }
  0x54   :  { %s8755_s14 = sld [smem:[%s10420_s0 + %s8470_s28]]   ;;  %s8474_s28 = smov 49  }
  0x56   :  { %10533 = sst [smem:[#allocation46_spill]] %s8740_s19 }
  0x57   :  { %10534 = sst [smem:[#allocation47_spill]] %s8745_s24 }
  0x58   :  { %10535 = sst [smem:[#allocation48_spill]] %s8750_s30 }
  0x59   :  { %s8760_s19 = sld [smem:[%s10420_s0 + %s8471_s7]]   ;;  %s8475_s7 = smov 50  }
  0x5a   :  { %10536 = sst [smem:[#allocation49_spill]] %s8755_s14 }
  0x5b   :  { %s8765_s24 = sld [smem:[%s10420_s0 + %s8472_s15]]   ;;  %s8476_s15 = smov 51  }
  0x5c   :  { %s8770_s30 = sld [smem:[%s10420_s0 + %s8473_s22]]  }
  0x5d   :  { %s8775_s14 = sld [smem:[%s10420_s0 + %s8474_s28]]  }
  0x5f   :  { %10537 = sst [smem:[#allocation50_spill]] %s8760_s19 }
  0x60   :  { %s8780_s19 = sld [smem:[%s10420_s0 + %s8475_s7]]  }
  0x61   :  { %10538 = sst [smem:[#allocation51_spill]] %s8765_s24 }
  0x62   :  { %s8785_s24 = sld [smem:[%s10420_s0 + %s8476_s15]]  }
  0x63   :  { %108 = vsyncpa [#allocation3], 0 }
  0x64   :  { %109 = vsyncpa [#allocation5], 0 }
  0x65   :  { %110 = vsyncpa [#allocation8], 0  ;;  %s8787_s22 = smov 0  }
  0x66 LB: > { %s10539_s8 = sld [smem:[#allocation15_spill]]  ;;  %s8477_s23 = smov [#allocation4]   ;;  %s8424_s22 = sphi %s8787_s22, %s116_s22  }
  0x67   : > { %s10540_s3 = sld [smem:[#allocation14_spill]]  ;;  %s1288_s26 = sshll.u32 %s8477_s23, 4  ;;  %s1289_s26 = int_to_ptr.vmem [resolvable:$true] %s1288_s26 }
  0x68   : > { %s8793_s28 = sadd.s32 4294967295, %s8424_s22   ;;  %p7307_p0 = scmp.ge.s32.totalorder %s8424_s22, 1 }
  0x69   : > { %p1223_p1 = scmp.lt.s32.totalorder %s8424_s22, 3  ;;  %p8150_p2 = scmp.eq.s32.totalorder %s8793_s28, 0 }
  0x6a   : > { %s8478_s1 = smov [#allocation2]   ;;  %s8479_s10 = smov [#allocation6]  }
  0x6b   : > { %p8798_p3 = pnand %p7307_p0, %p1223_p1  ;;  %s1275_s2 = sshll.u32 %s8478_s1, 4  ;;  %s8804_s2 = int_to_ptr.vmem [resolvable:$true] %s1275_s2 }
  0x6c   : > { %s1301_s11 = sshll.u32 %s8479_s10, 4  ;;  %s8480_s15 = smov [#allocation7]   ;;  %s8812_s11 = int_to_ptr.vmem [resolvable:$true] %s1301_s11 }
  0x6d   : > { %p8137_p4 = pneg %p8798_p3  ;;  %s8814_s16 = sshll.u32 %s8480_s15, 4  ;;  %s1315_s16 = int_to_ptr.vmem [resolvable:$true] %s8814_s16 }
  0x6e   : > { %s8313_s18 = scalar_lea.vmem %s1289_s26, 1152  ;;  %p8321_p10 = scmp.lt.s32.totalorder %s1289_s26, %s1289_s26 }
  0x6f   : > { %p8808_p5 = pnand %p8150_p2, %p8137_p4  ;;  %p8314_p7 = scmp.ne.s32.totalorder %s1289_s26, %s8313_s18 }
  0x70   : > { %p8322_p11 = scmp.lt.s32.totalorder %s8313_s18, %s8313_s18 }
  0x71   : > { %p8304_p6 = pneg %p8808_p5 }
  0x72   : > { %p8323_p12 = por %p8322_p11, %p8321_p10 }
  0x73   : > { %p8316_p8 = pnand %p8314_p7, %p8304_p6 }
  0x75   : > { %p8317_p9 = pneg %p8316_p8 }
  0x77   : > { %p8324_p13 = pnand %p8323_p12, %p8317_p9 }
  0x79   : > { %8327 = shalt.err (!%p8324_p13)
}
  0x7a   : > { %s8481_s23 = smov 128   ;;  %s8482_s1 = smov 8  }
  0x7b   : > { %8143 = dma.hbm_to_vmem [thread:$0]  (!%p8808_p5), %s8610_s27, 1152, %s1289_s26, [#allocation5], %s8481_s23, %s8481_s23, %s8482_s1  }
  0x7c   : > { %s8339_s10 = scalar_lea.vmem %s8804_s2, 32  ;;  %p8347_p7 = scmp.lt.s32.totalorder %s8804_s2, %s8804_s2 }
  0x7d   : > { %p8340_p0 = scmp.ne.s32.totalorder %s8804_s2, %s8339_s10  ;;  %p8348_p8 = scmp.lt.s32.totalorder %s8339_s10, %s8339_s10 }
  0x7f   : > { %p8342_p1 = pnand %p8340_p0, %p8304_p6  ;;  %p8349_p9 = por %p8348_p8, %p8347_p7 }
  0x81   : > { %p8343_p4 = pneg %p8342_p1 }
  0x83   : > { %p8350_p10 = pnand %p8349_p9, %p8343_p4 }
  0x85   : > { %8353 = shalt.err (!%p8350_p10)
}
  0x86   : > { %8140 = dma.hbm_to_vmem [thread:$0]  (!%p8808_p5), %s8600_s12, 32, %s8804_s2, [#allocation3]  }
  0x87   : > { %s8365_s26 = scalar_lea.vmem %s8812_s11, 1280  ;;  %p8373_p0 = scmp.lt.s32.totalorder %s8812_s11, %s8812_s11 }
  0x88   : > { %p8366_p11 = scmp.ne.s32.totalorder %s8812_s11, %s8365_s26  ;;  %p8374_p1 = scmp.lt.s32.totalorder %s8365_s26, %s8365_s26 }
  0x8a   : > { %p8368_p12 = pnand %p8366_p11, %p8304_p6  ;;  %p8375_p4 = por %p8374_p1, %p8373_p0 }
  0x8c   : > { %p8369_p13 = pneg %p8368_p12 }
  0x8e   : > { %p8376_p7 = pnand %p8375_p4, %p8369_p13 }
  0x90   : > { %8379 = shalt.err (!%p8376_p7)
}
  0x91   : > { %s10543_s4 = sld [smem:[#allocation21_spill]]  ;;  %s8391_s2 = scalar_lea.vmem %s1315_s16, 1536 }
  0x92   : > { %p8392_p8 = scmp.ne.s32.totalorder %s1315_s16, %s8391_s2  ;;  %p8399_p11 = scmp.lt.s32.totalorder %s1315_s16, %s1315_s16 }
  0x93   : > { %p8400_p12 = scmp.lt.s32.totalorder %s8391_s2, %s8391_s2 }
  0x94   : > { %p8394_p9 = pnand %p8392_p8, %p8304_p6 }
  0x95   : > { %p8401_p13 = por %p8400_p12, %p8399_p11 }
  0x96   : > { %p8395_p10 = pneg %p8394_p9 }
  0x97   : > { %8146 = dma.hbm_to_vmem [thread:$0]  (!%p8808_p5), %s10543_s4, 1280, %s8812_s11, [#allocation5], %s8481_s23, %s8481_s23, %s8482_s1  }
  0x98   : > { %p8402_p0 = pnand %p8401_p13, %p8395_p10 }
  0x9a   : > { %8405 = shalt.err (!%p8402_p0)
}
  0x9b   : > { %s10544_s6 = sld [smem:[#allocation22_spill]] }
  0x9d   : > { %1433 = sbr.rel (%p8798_p3) target bundleno = 7842 (0x1ea2), region = 224 }
  0xa1   : > { %8149 = dma.hbm_to_vmem [thread:$0]  (!%p8808_p5), %s10544_s6, 1536, %s1315_s16, [#allocation8], %s8481_s23, %s8481_s23, %s8482_s1  }
  0xa2   : > { %8411 = dma.done.wait (%p8150_p2), [#allocation3], 32  }
  0xa3   : > { %8413 = vsyncadd (%p8150_p2), [#allocation3], 4294967264 }
  0xa4   : > { %8415 = dma.done.wait (%p8150_p2), [#allocation5], 2432  }
  0xa5   : > { %8417 = vsyncadd (%p8150_p2), [#allocation5], 4294964864 }
  0xa6   : > { %8419 = dma.done.wait (%p8150_p2), [#allocation8], 1536  }
  0xa7   : > { %8421 = vsyncadd (%p8150_p2), [#allocation8], 4294965760  ;;  %s10545_s5 = sld [smem:[#allocation12_spill]]  ;;  %p1564_p3 = scmp.lt.s32.totalorder %s8793_s28, 1  ;;  %v1577_v0 = vlaneseq  ;;  %v8483_v1 = vmov 3   ;;  %v8484_v2 = vmov 1  }
  0xa8   : > { %8264 = vset.pattern.permute.xlu1 %v8483_v1  ;;  %8262 = vset.pattern.permute.xlu0 %v8484_v2  ;;  %v1574_v6 = vld [vmem:[%s8540_s13] sm:$0xff]  ;;  %s10459_s11 = smov 19   ;;  %v8486_v12 = vmov 2   ;;  %v8487_v13 = vmov 4   ;;  %v8488_v14 = vmov 5   ;;  %s10546_s9 = sld [smem:[#allocation13_spill]] }
  0xa9   : > { %s10675_s28 = smov (!%p1564_p3, %s8793_s28), 1  ;;  %v8881_v3 = vshrl.u32 %v1577_v0, 7  ;;  %1675 = vperm.xlu1 %8264, %v1574_v6   ;;  %1625 = vperm.xlu0 %8262, %v1574_v6   ;;  %v8489_v15 = vmov 6   ;;  %v8490_v16 = vmov 8   ;;  %v8491_v17 = vmov 7   ;;  %s10478_s15 = smov 127  }
  0xaa   : > { %s8109_s0 = smul.u32 3, %s10675_s28  ;;  %v8492_v18 = vmov 0   ;;  %vm10475_vm0 = vcmask 154624   ;;  %vm10474_vm1 = vcmask 416768   ;;  %s10480_s16 = smov 126   ;;  %vm10443_vm2 = vcmask 1039360  }
  0xab   : > { %v1587_v4 = vsub.s32 2, %v8881_v3  ;;  %v1583_v5 = vsub.s32 1, %v8881_v3  ;;  %v1579_v10 = vsub.s32 0, %v8881_v3  ;;  %s10449_s18 = smov 110   ;;  %s10451_s23 = smov 109   ;;  %vm10444_vm3 = vcmask 1031168  }
  0xac   : > { %s10465_s1 = smov 108   ;;  %s10453_s10 = smov 92   ;;  %vm10455_vm4 = vcmask 900096   ;;  %vm10446_vm5 = vcmask 891904   ;;  %vm10456_vm6 = vcmask 883712   ;;  %vm10473_vm7 = vcmask 752640  }
  0xad   : > { %s1567_s7 = scalar_lea.vmem %s10545_s5, %s8109_s0  ;;  %8263 = vset.pattern.permute.xlu0 %v8486_v12  ;;  %8265 = vset.pattern.permute.xlu1 %v8487_v13  ;;  %s10457_s26 = smov 91   ;;  %vm1790_vm8 = vcmask 744448   ;;  %vm10445_vm14 = vcmask 736256  }
  0xae   : > { %v1573_v7 = vld [vmem:[%s1567_s7] sm:$0x7]  ;;  %s10447_s2 = smov 90   ;;  %s10471_s0 = smov 11  }
  0xaf   : > { %v1588_v8 = vrot.slane %v1573_v7, %v1587_v4  ;;  %v1584_v9 = vrot.slane %v1573_v7, %v1583_v5  ;;  %v1580_v11 = vrot.slane %v1573_v7, %v1579_v10  ;;  %v1575_v19 = vld [vmem:[%s10546_s9] sm:$0xff]  ;;  %v8954_v7 = vand.u32 127, %v1577_v0  ;;  %s10469_s7 = smov 107   ;;  %s10589_s4 = smov 108  }
  0xb0   : > { %s10590_s5 = sld [smem:[#allocation24_spill]]  ;;  %s10591_s6 = smov 127  }
  0xb1   : > { %1593 = vrot.lane.b32.xlu1 %v1588_v8, %s10459_s11  ;;  %1591 = vrot.lane.b32.xlu0 %v1584_v9, %s10459_s11  ;;  %v1837_v13 = vadd.s32 128, %v8954_v7  ;;  %s10594_s9 = smov 117  }
  0xb5   : > { %1650 = vperm.xlu0 %8263, %v1574_v6   ;;  %1589 = vrot.lane.b32.xlu1 %v1580_v11, %s10459_s11 }
  0xb9   : > { %8266 = vset.pattern.permute.xlu0 %v8488_v14  ;;  %1700 = vperm.xlu1 %8265, %v1574_v6  }
  0xba   : > { %1725 = vperm.xlu0 %8266, %v1574_v6  }
  0xbd   : > { %8267 = vset.pattern.permute.xlu1 %v8489_v15 }
  0xbe   : > { %8269 = vset.pattern.permute.xlu0 %v8490_v16  ;;  %1750 = vperm.xlu1 %8267, %v1574_v6  }
  0xbf   : > { %1800 = vperm.xlu0 %8269, %v1574_v6  }
  0xc2   : > { %8268 = vset.pattern.permute.xlu1 %v8491_v17 }
  0xc3   : > { %1775 = vperm.xlu1 %8268, %v1574_v6   ;;  %8281 = vset.pattern.permute.xlu0 %v8492_v18 }
  0xc7   : > { %8270 = vset.pattern.permute.xlu1 %v8492_v18 }
  0xc8   : > { %1606 = vperm.xlu1 %8270, %v1574_v6  }
  0xcc   : > { %1826 = vperm.xlu1 %8270, %v1575_v19   ;;  %v8961_v18 = vmul.u32.u64.low 3817748708, %v1837_v13  ;;  %v8962_v19 = vmul.u32.u64.high 3817748708, %v1837_v13, %v8961_v18 }
 0x124   : > { %v1676_v20 = vpop.permute.xlu1 %1675  ;;  %v1626_v21 = vpop.permute.xlu0 %1625 }
 0x128   : > { %v1594_v22 = vpop.permute.xlu1 %1593  ;;  %v1592_v23 = vpop.permute.xlu0 %1591 }
 0x129   : > { %v1597_v24 = vsel %vm10475_vm0, %v1592_v23, %v1594_v22 }
 0x12a   : > { %v1603_v25 = vsel %vm10474_vm1, %v1597_v24, 0.0 }
 0x12b   : > { %v8895_v26 = vrot.slane %v1603_v25, %v1579_v10 }
 0x12c   : > { %v1590_v27 = vpop.permute.xlu1 %1589 }
 0x12d   : > { %v1596_v28 = vsel %vm10475_vm0, %v1590_v27, %v1592_v23  ;;  %v1601_v29 = vsel %vm10475_vm0, 0.0, %v1590_v27  ;;  %v1630_v30 = vmul.f32 %v1626_v21, %v8895_v26  ;;  %v1680_v39 = vmul.f32 %v1676_v20, %v8895_v26 }
 0x12e   : > { %v8900_v31 = vrot.slane %v1596_v28, %v1579_v10  ;;  %v8903_v33 = vrot.slane %v1601_v29, %v1579_v10  ;;  %v1838_v10 = vadd.s32 256, %v8954_v7 }
 0x12f   : > { %1638 = vrot.lane.b32.xlu0 %v1630_v30, %s10478_s15 }
 0x130   : > { %v1651_v32 = vpop.permute.xlu0 %1650  ;;  %v1629_v34 = vmul.f32 %v1626_v21, %v8900_v31  ;;  %v1628_v36 = vmul.f32 %v1626_v21, %v8903_v33  ;;  %v1679_v41 = vmul.f32 %v1676_v20, %v8900_v31  ;;  %v1678_v43 = vmul.f32 %v1676_v20, %v8903_v33 }
 0x131   : > { %v1654_v35 = vmul.f32 %v1651_v32, %v8900_v31  ;;  %v1653_v37 = vmul.f32 %v1651_v32, %v8903_v33  ;;  %v1655_v38 = vmul.f32 %v1651_v32, %v8895_v26 }
 0x132   : > { %1636 = vrot.lane.b32.xlu1 %v1629_v34, %s10478_s15  ;;  %v8958_v14 = vmul.u32.u64.low 3817748708, %v1838_v10  ;;  %v8959_v15 = vmul.u32.u64.high 3817748708, %v1838_v10, %v8958_v14  ;;  %v8966_v21 = vmul.u32.u64.low 3817748708, %v8954_v7  ;;  %v8967_v22 = vmul.u32.u64.high 3817748708, %v8954_v7, %v8966_v21 }
 0x133   : > { %1661 = vrot.lane.b32.xlu0 %v1654_v35, %s10480_s16 }
 0x134   : > { %v1701_v40 = vpop.permute.xlu1 %1700  ;;  %v1867_v27 = vshrl.u32 %v8959_v15, 4 }
 0x135   : > { %v1704_v42 = vmul.f32 %v1701_v40, %v8900_v31  ;;  %v1703_v44 = vmul.f32 %v1701_v40, %v8903_v33  ;;  %v1726_v45 = vpop.permute.xlu0 %1725  ;;  %v1705_v46 = vmul.f32 %v1701_v40, %v8895_v26 }
 0x136   : > { %1634 = vrot.lane.b32.xlu1 %v1628_v36, %s10478_s15  ;;  %v1730_v47 = vmul.f32 %v1726_v45, %v8895_v26  ;;  %v1729_v49 = vmul.f32 %v1726_v45, %v8900_v31  ;;  %v1728_v51 = vmul.f32 %v1726_v45, %v8903_v33 }
 0x137   : > { %1659 = vrot.lane.b32.xlu0 %v1653_v37, %s10480_s16 }
 0x139   : > { %v1751_v48 = vpop.permute.xlu1 %1750 }
 0x13a   : > { %1663 = vrot.lane.b32.xlu1 %v1655_v38, %s10480_s16  ;;  %v1754_v50 = vmul.f32 %v1751_v48, %v8900_v31  ;;  %v1753_v52 = vmul.f32 %v1751_v48, %v8903_v33  ;;  %v1755_v54 = vmul.f32 %v1751_v48, %v8895_v26  ;;  %v1801_v57 = vpop.permute.xlu0 %1800  ;;  %v1868_v38 = vmul.u32 18, %v1867_v27 }
 0x13b   : > { %1688 = vrot.lane.b32.xlu0 %v1680_v39, %s10449_s18  ;;  %v1804_v59 = vmul.f32 %v1801_v57, %v8900_v31  ;;  %v1805_v60 = vmul.f32 %v1801_v57, %v8895_v26  ;;  %v1803_v61 = vmul.f32 %v1801_v57, %v8903_v33 }
 0x13e   : > { %1686 = vrot.lane.b32.xlu1 %v1679_v41, %s10449_s18  ;;  %v1776_v53 = vpop.permute.xlu1 %1775 }
 0x13f   : > { %1711 = vrot.lane.b32.xlu0 %v1704_v42, %s10451_s23  ;;  %v1780_v55 = vmul.f32 %v1776_v53, %v8895_v26  ;;  %v1779_v56 = vmul.f32 %v1776_v53, %v8900_v31  ;;  %v1778_v58 = vmul.f32 %v1776_v53, %v8903_v33 }
 0x142   : > { %1684 = vrot.lane.b32.xlu1 %v1678_v43, %s10449_s18 }
 0x143   : > { %1709 = vrot.lane.b32.xlu0 %v1703_v44, %s10451_s23  ;;  %v1607_v62 = vpop.permute.xlu1 %1606 }
 0x144   : > { %v1623_v20 = vmul.f32 %v8895_v26, %v1607_v62  ;;  %v1621_v28 = vmul.f32 %v8903_v33, %v1607_v62  ;;  %v1856_v26 = vshrl.u32 %v8962_v19, 4  ;;  %v1622_v36 = vmul.f32 %v8900_v31, %v1607_v62 }
 0x145   : > { %v1845_v33 = vshrl.u32 %v8967_v22, 4 }
 0x146   : > { %1713 = vrot.lane.b32.xlu1 %v1705_v46, %s10451_s23  ;;  %v1857_v45 = vmul.u32 18, %v1856_v26 }
 0x147   : > { %1738 = vrot.lane.b32.xlu0 %v1730_v47, %s10465_s1  ;;  %v8951_v63 = vpop.permute.xlu1 %1826  ;;  %v1846_v53 = vmul.u32 18, %v1845_v33 }
 0x148   : > { %v1858_v57 = vsub.s32 %v1837_v13, %v1857_v45 }
 0x14a   : > { %1736 = vrot.lane.b32.xlu1 %v1729_v49, %s10465_s1  ;;  %v1869_v49 = vsub.s32 %v1838_v10, %v1868_v38  ;;  %vm1873_vm11 = vcmp.ne.s32.totalorder %v1858_v57, 0  ;;  %vm1876_vm12 = vcmp.lt.s32.totalorder %v1858_v57, 0  ;;  %v1882_v15 = vadd.s32 18, %v1858_v57 }
 0x14b   : > { %1761 = vrot.lane.b32.xlu0 %v1754_v50, %s10453_s10  ;;  %vm8992_vm15 = vmand %vm1876_vm12, %vm1873_vm11  ;;  %vm10559_vm12 = vcmask 1031168  }
 0x14c   : > { %vm1874_vm9 = vcmp.ne.s32.totalorder %v1869_v49, 0  ;;  %vm1877_vm10 = vcmp.lt.s32.totalorder %v1869_v49, 0 }
 0x14d   : > { %vm8987_vm13 = vmand %vm1877_vm10, %vm1874_vm9 }
 0x14e   : > { %1734 = vrot.lane.b32.xlu1 %v1728_v51, %s10465_s1 }
 0x14f   : > { %1759 = vrot.lane.b32.xlu0 %v1753_v52, %s10453_s10 }
 0x152   : > { %1763 = vrot.lane.b32.xlu1 %v1755_v54, %s10453_s10 }
 0x153   : > { %1788 = vrot.lane.b32.xlu0 %v1780_v55, %s10457_s26 }
 0x156   : > { %1786 = vrot.lane.b32.xlu1 %v1779_v56, %s10457_s26 }
 0x157   : > { %1784 = vrot.lane.b32.xlu0 %v1778_v58, %s10457_s26 }
 0x15a   : > { %1811 = vrot.lane.b32.xlu1 %v1804_v59, %s10447_s2 }
 0x15b   : > { %1813 = vrot.lane.b32.xlu0 %v1805_v60, %s10447_s2 }
 0x15e   : > { %1809 = vrot.lane.b32.xlu1 %v1803_v61, %s10447_s2 }
 0x1a1   : > { %v1639_v1 = vpop.permute.xlu0 %1638 }
 0x1a2   : > { %v1648_v24 = vadd.f32 %v1639_v1, %v1623_v20 }
 0x1a4   : > { %v1637_v2 = vpop.permute.xlu1 %1636 }
 0x1a5   : > { %v1662_v4 = vpop.permute.xlu0 %1661  ;;  %v1642_v34 = vsel %vm10443_vm2, %v1637_v2, %v1639_v1 }
 0x1a6   : > { %v1647_v42 = vadd.f32 %v1642_v34, %v1622_v36 }
 0x1a8   : > { %v1635_v5 = vpop.permute.xlu1 %1634 }
 0x1a9   : > { %v1660_v6 = vpop.permute.xlu0 %1659  ;;  %v1641_v25 = vsel %vm10443_vm2, %v1635_v5, %v1637_v2  ;;  %v1847_v5 = vsub.s32 %v8954_v7, %v1846_v53  ;;  %v1900_v53 = vld [vmem:[%s8545_s17] sm:$0xff] }
 0x1aa   : > { %v1646_v35 = vadd.f32 %v1641_v25, %v1621_v28  ;;  %v1666_v37 = vsel %vm10444_vm3, %v1660_v6, %v1662_v4  ;;  %v1885_v28 = vsel %vm8992_vm15, %v1882_v15, %v1858_v57  ;;  %vm10561_vm15 = vcmask 1039360  }
 0x1ab   : > { %vm1872_vm2 = vcmp.ne.s32.totalorder %v1847_v5, 0  ;;  %v1881_v25 = vadd.s32 18, %v1847_v5  ;;  %vm9013_vm11 = vcmp.lt.s32.totalorder %v1885_v28, 16 }
 0x1ac   : > { %v1664_v8 = vpop.permute.xlu1 %1663  ;;  %v1671_v46 = vadd.f32 %v1666_v37, %v1646_v35 }
 0x1ad   : > { %v1689_v9 = vpop.permute.xlu0 %1688  ;;  %v1673_v29 = vadd.f32 %v1664_v8, %v1648_v24  ;;  %v1667_v39 = vsel %vm10444_vm3, %v1662_v4, %v1664_v8  ;;  %vm1875_vm3 = vcmp.lt.s32.totalorder %v1847_v5, 0 }
 0x1ae   : > { %v1672_v48 = vadd.f32 %v1667_v39, %v1647_v42  ;;  %vm9002_vm9 = vmand %vm1875_vm3, %vm1872_vm2  ;;  %vm8502_vm3 = vmmov 0  }
 0x1af   : > { %v1698_v40 = vadd.f32 %v1689_v9, %v1673_v29 }
 0x1b0   : > { %v1687_v11 = vpop.permute.xlu1 %1686 }
 0x1b1   : > { %v1712_v12 = vpop.permute.xlu0 %1711  ;;  %v1692_v47 = vsel %vm10455_vm4, %v1687_v11, %v1689_v9  ;;  %v1883_v9 = vadd.s32 18, %v1869_v49 }
 0x1b2   : > { %v1697_v54 = vadd.f32 %v1692_v47, %v1672_v48 }
 0x1b3   : > { %v1886_v21 = vsel %vm8987_vm13, %v1883_v9, %v1869_v49  ;;  %v8501_v49 = vmov 0.0   ;;  %vm10560_vm13 = vmmov %vm10559_vm12 }
 0x1b4   : > { %v1685_v16 = vpop.permute.xlu1 %1684  ;;  %vm9008_vm10 = vcmp.lt.s32.totalorder %v1886_v21, 16  ;;  %7797 = vmatprep.subr.mxu1 %v8501_v49  ;;  %2080 = vmatprep.mubr.f32.mxu0 %v8501_v49 }
 0x1b5   : > { %v1710_v17 = vpop.permute.xlu0 %1709  ;;  %v1691_v43 = vsel %vm10455_vm4, %v1685_v16, %v1687_v11  ;;  %7815 = vmatprep.mubr.msk.f32.mxu1 %vm8502_vm3, %v8501_v49 }
 0x1b6   : > { %v1696_v50 = vadd.f32 %v1691_v43, %v1671_v46  ;;  %v1716_v55 = vsel %vm10446_vm5, %v1710_v17, %v1712_v12 }
 0x1b8   : > { %v1714_v0 = vpop.permute.xlu1 %1713  ;;  %v1721_v62 = vadd.f32 %v1716_v55, %v1696_v50 }
 0x1b9   : > { %v1739_v23 = vpop.permute.xlu0 %1738  ;;  %v1723_v31 = vadd.f32 %v1714_v0, %v1698_v40  ;;  %v1717_v51 = vsel %vm10446_vm5, %v1712_v12, %v1714_v0  ;;  %v1884_v40 = vsel %vm9002_vm9, %v1881_v25, %v1847_v5  ;;  %vm10562_vm9 = vmmov %vm10561_vm15 }
 0x1ba   : > { %v1722_v60 = vadd.f32 %v1717_v51, %v1697_v54  ;;  %vm9025_vm2 = vcmp.lt.s32.totalorder %v1884_v40, 16 }
 0x1bb   : > { %v1748_v58 = vadd.f32 %v1739_v23, %v1723_v31 }
 0x1bc   : > { %v1737_v30 = vpop.permute.xlu1 %1736 }
 0x1bd   : > { %v1762_v32 = vpop.permute.xlu0 %1761  ;;  %v1742_v59 = vsel %vm10456_vm6, %v1737_v30, %v1739_v23 }
 0x1be   : > { %v1747_v6 = vadd.f32 %v1742_v59, %v1722_v60 }
 0x1c0   : > { %v1735_v41 = vpop.permute.xlu1 %1734 }
 0x1c1   : > { %v1760_v44 = vpop.permute.xlu0 %1759  ;;  %v1741_v61 = vsel %vm10456_vm6, %v1735_v41, %v1737_v30 }
 0x1c2   : > { %v1746_v10 = vadd.f32 %v1741_v61, %v1721_v62  ;;  %v1766_v13 = vsel %vm10473_vm7, %v1760_v44, %v1762_v32 }
 0x1c4   : > { %v1764_v52 = vpop.permute.xlu1 %1763  ;;  %v1771_v22 = vadd.f32 %v1766_v13, %v1746_v10 }
 0x1c5   : > { %v1789_v56 = vpop.permute.xlu0 %1788  ;;  %v1767_v1 = vsel %vm10473_vm7, %v1762_v32, %v1764_v52  ;;  %v1773_v2 = vadd.f32 %v1764_v52, %v1748_v58 }
 0x1c6   : > { %v1772_v14 = vadd.f32 %v1767_v1, %v1747_v6 }
 0x1c7   : > { %v1798_v16 = vadd.f32 %v1789_v56, %v1773_v2 }
 0x1c8   : > { %v1787_v4 = vpop.permute.xlu1 %1786 }
 0x1c9   : > { %v1785_v8 = vpop.permute.xlu0 %1784  ;;  %v1792_v11 = vsel %vm1790_vm8, %v1787_v4, %v1789_v56 }
 0x1ca   : > { %v1797_v19 = vadd.f32 %v1792_v11, %v1772_v14  ;;  %v1791_v20 = vsel %vm1790_vm8, %v1785_v8, %v1787_v4 }
 0x1cb   : > { %v1796_v30 = vadd.f32 %v1791_v20, %v1771_v22 }
 0x1cc   : > { %v1812_v17 = vpop.permute.xlu1 %1811 }
 0x1cd   : > { %v1814_v0 = vpop.permute.xlu0 %1813 }
 0x1ce   : > { %v1817_v23 = vsel %vm10445_vm14, %v1812_v17, %v1814_v0  ;;  %v1823_v24 = vadd.f32 %v1814_v0, %v1798_v16 }
 0x1cf   : > { %v1822_v27 = vadd.f32 %v1817_v23, %v1797_v19 }
 0x1d0   : > { %v1810_v32 = vpop.permute.xlu1 %1809  ;;  %v1831_v26 = vadd.f32 %v8951_v63, %v1823_v24 }
 0x1d1   : > { %v1816_v34 = vsel %vm10445_vm14, %v1810_v32, %v1812_v17  ;;  %v1830_v36 = vadd.f32 %v8951_v63, %v1822_v27 }
 0x1d2   : > { %v1821_v37 = vadd.f32 %v1816_v34, %v1796_v30  ;;  %v1834_v38 = vmax.f32 %v1831_v26, 0.0 }
 0x1d3   : > { %v1833_v41 = vmax.f32 %v1830_v36, 0.0  ;;  %v1899_v36 = vld [vmem:[%s8550_s21] sm:$0xff] }
 0x1d4   : > { %v1898_v33 = vsel %vm9008_vm10, %v1834_v38, 0.0  ;;  %v1829_v42 = vadd.f32 %v8951_v63, %v1821_v37 }
 0x1d5   : > { %1908 = vrot.lane.b32.xlu1 %v1898_v33, %s10459_s11  ;;  %v1897_v43 = vsel %vm9013_vm11, %v1833_v41, 0.0 }
 0x1d6   : > { %1906 = vrot.lane.b32.xlu0 %v1897_v43, %s10459_s11  ;;  %v1832_v45 = vmax.f32 %v1829_v42, 0.0 }
 0x1d8   : > { %v1896_v46 = vsel %vm9025_vm2, %v1832_v45, 0.0 }
 0x1da   : > { %1904 = vrot.lane.b32.xlu0 %v1896_v46, %s10459_s11  ;;  %s8510_s11 = smov 115  }
 0x247   : > { %v1909_v50 = vpop.permute.xlu1 %1908 }
 0x248   : > { %v1907_v47 = vpop.permute.xlu0 %1906 }
 0x249   : > { %v9062_v51 = vsel %vm10475_vm0, %v1907_v47, %v1909_v50  ;;  %v2212_v50 = vld [vmem:[%s8605_s20 + $0x78] sm:$0xff] }
 0x24a   : > { %v1916_v52 = vsel %vm10474_vm1, %v9062_v51, 0.0 }
 0x24c   : > { %v9033_v31 = vpop.permute.xlu0 %1904 }
 0x24d   : > { %v9037_v63 = vsel %vm10475_vm0, %v9033_v31, %v1907_v47  ;;  %v1915_v48 = vsel %vm10475_vm0, 0.0, %v9033_v31 }
 0x24e   : > { %1987 = vrot.lane.b32.xlu0 %v9037_v63, %s10457_s26  ;;  %1998 = vrot.lane.b32.xlu1 %v9037_v63, %s10447_s2 }
 0x252   : > { %1985 = vrot.lane.b32.xlu0 %v1915_v48, %s10457_s26  ;;  %1996 = vrot.lane.b32.xlu1 %v1915_v48, %s10447_s2 }
 0x256   : > { %1965 = vrot.lane.b32.xlu0 %v9037_v63, %s10465_s1  ;;  %1976 = vrot.lane.b32.xlu1 %v9037_v63, %s10453_s10 }
 0x25a   : > { %1963 = vrot.lane.b32.xlu0 %v1915_v48, %s10465_s1  ;;  %1974 = vrot.lane.b32.xlu1 %v1915_v48, %s10453_s10 }
 0x25e   : > { %1943 = vrot.lane.b32.xlu0 %v9037_v63, %s10449_s18  ;;  %1954 = vrot.lane.b32.xlu1 %v9037_v63, %s10451_s23 }
 0x262   : > { %1941 = vrot.lane.b32.xlu0 %v1915_v48, %s10449_s18  ;;  %1952 = vrot.lane.b32.xlu1 %v1915_v48, %s10451_s23 }
 0x266   : > { %1921 = vrot.lane.b32.xlu0 %v9037_v63, %s10478_s15  ;;  %1932 = vrot.lane.b32.xlu1 %v9037_v63, %s10480_s16 }
 0x26a   : > { %1930 = vrot.lane.b32.xlu1 %v1915_v48, %s10480_s16  ;;  %2000 = vrot.lane.b32.xlu0 %v1916_v52, %s10447_s2  ;;  %s10461_s2 = smov 106  }
 0x26e   : > { %1989 = vrot.lane.b32.xlu1 %v1916_v52, %s10457_s26  ;;  %1978 = vrot.lane.b32.xlu0 %v1916_v52, %s10453_s10  ;;  %s10463_s10 = smov 117   ;;  %s8509_s26 = smov 7  }
 0x272   : > { %1967 = vrot.lane.b32.xlu1 %v1916_v52, %s10465_s1  ;;  %1956 = vrot.lane.b32.xlu0 %v1916_v52, %s10451_s23  ;;  %s10467_s23 = smov 118  }
 0x276   : > { %1945 = vrot.lane.b32.xlu1 %v1916_v52, %s10449_s18  ;;  %1934 = vrot.lane.b32.xlu0 %v1916_v52, %s10480_s16 }
 0x27a   : > { %1923 = vrot.lane.b32.xlu1 %v1916_v52, %s10478_s15  ;;  %1919 = vrot.lane.b32.xlu0 %v1915_v48, %s10478_s15  ;;  %v2228_v48 = vld [vmem:[%s8605_s20 + $0xf8] sm:$0xff] }
 0x27e   : > { %2009 = vperm.xlu1 %8270, %v1900_v53   ;;  %v2211_v53 = vld [vmem:[%s8605_s20 + $0x70] sm:$0xff] }
 0x2c0   : > { %v1988_v54 = vpop.permute.xlu0 %1987  ;;  %v1999_v55 = vpop.permute.xlu1 %1998 }
 0x2c4   : > { %v1986_v56 = vpop.permute.xlu0 %1985  ;;  %v1997_v57 = vpop.permute.xlu1 %1996 }
 0x2c5   : > { %v2002_v11 = vsel %vm10445_vm14, %v1997_v57, %v1999_v55  ;;  %v1991_v15 = vsel %vm1790_vm8, %v1986_v56, %v1988_v54  ;;  %v2210_v57 = vld [vmem:[%s8605_s20 + $0x68] sm:$0xff] }
 0x2c8   : > { %v1966_v58 = vpop.permute.xlu0 %1965  ;;  %v1977_v59 = vpop.permute.xlu1 %1976 }
 0x2cc   : > { %v1964_v60 = vpop.permute.xlu0 %1963  ;;  %v1975_v61 = vpop.permute.xlu1 %1974 }
 0x2cd   : > { %v1980_v19 = vsel %vm10473_vm7, %v1975_v61, %v1977_v59  ;;  %v1969_v0 = vsel %vm10456_vm6, %v1964_v60, %v1966_v58  ;;  %v2209_v60 = vld [vmem:[%s8605_s20 + $0x60] sm:$0xff]  ;;  %v2230_v61 = vld [vmem:[%s8605_s20 + $0x108] sm:$0x1f] }
 0x2d0   : > { %v1944_v62 = vpop.permute.xlu0 %1943  ;;  %v1955_v1 = vpop.permute.xlu1 %1954 }
 0x2d4   : > { %v1942_v2 = vpop.permute.xlu0 %1941  ;;  %v1953_v4 = vpop.permute.xlu1 %1952 }
 0x2d5   : > { %v1958_v24 = vsel %vm10446_vm5, %v1953_v4, %v1955_v1  ;;  %v1947_v27 = vsel %vm10455_vm4, %v1942_v2, %v1944_v62  ;;  %v2223_v2 = vld [vmem:[%s8605_s20 + $0xd0] sm:$0xff] }
 0x2d6   : > { %v2207_v4 = vld [vmem:[%s8605_s20 + $0x50] sm:$0xff] }
 0x2d8   : > { %v1922_v5 = vpop.permute.xlu0 %1921  ;;  %v1933_v6 = vpop.permute.xlu1 %1932 }
 0x2dc   : > { %v2001_v8 = vpop.permute.xlu0 %2000  ;;  %v1931_v9 = vpop.permute.xlu1 %1930 }
 0x2dd   : > { %7798 = vmatpush3.msra.mxu1 %v2001_v8  ;;  %v2003_v10 = vsel %vm10445_vm14, %v1999_v55, %v2001_v8  ;;  %v1936_v32 = vsel %vm10560_vm13, %v1931_v9, %v1933_v6  ;;  %vm2012_vm14 = vcmask 588800   ;;  %vm2235_vm13 = vcmask 1044480   ;;  %v2221_v8 = vld [vmem:[%s8605_s20 + $0xc0] sm:$0xff] }
 0x2de   : > { %2030 = vmatprep.subr.mxu0 %v2003_v10  ;;  %7799 = vmatprep.subr.mxu1 %v8501_v49  ;;  %v2205_v9 = vld [vmem:[%s8605_s20 + $0x40] sm:$0xff]  ;;  %v2220_v10 = vld [vmem:[%s8605_s20 + $0xb8] sm:$0xff] }
 0x2df   : > { %2031 = vmatpush1.msra.mxu0 %v2002_v11  ;;  %v2229_v11 = vld [vmem:[%s8605_s20 + $0x100] sm:$0xff] }
 0x2e0   : > { %v1979_v12 = vpop.permute.xlu0 %1978  ;;  %v1990_v13 = vpop.permute.xlu1 %1989 }
 0x2e1   : > { %7800 = vmatpush3.msra.mxu1 %v1990_v13  ;;  %v1992_v14 = vsel %vm1790_vm8, %v1988_v54, %v1990_v13  ;;  %v1981_v16 = vsel %vm10473_vm7, %v1977_v59, %v1979_v12  ;;  %v2226_v54 = vld [vmem:[%s8605_s20 + $0xe8] sm:$0xff]  ;;  %v2225_v59 = vld [vmem:[%s8605_s20 + $0xe0] sm:$0xff]  ;;  %v2219_v13 = vld [vmem:[%s8605_s20 + $0xb0] sm:$0xff] }
 0x2e2   : > { %2032 = vmatprep.subr.mxu0 %v1992_v14  ;;  %7801 = vmatprep.subr.mxu1 %v8501_v49  ;;  %v2203_v14 = vld [vmem:[%s8605_s20 + $0x30] sm:$0xff] }
 0x2e3   : > { %2033 = vmatpush1.msra.mxu0 %v1991_v15  ;;  %7802 = vmatpush3.msra.mxu1 %v1979_v12  ;;  %v2204_v12 = vld [vmem:[%s8605_s20 + $0x38] sm:$0xff]  ;;  %v2218_v15 = vld [vmem:[%s8605_s20 + $0xa8] sm:$0xff] }
 0x2e4   : > { %v1957_v17 = vpop.permute.xlu0 %1956  ;;  %2034 = vmatprep.subr.mxu0 %v1981_v16  ;;  %7803 = vmatprep.subr.mxu1 %v8501_v49  ;;  %v1968_v18 = vpop.permute.xlu1 %1967  ;;  %v2202_v16 = vld [vmem:[%s8605_s20 + $0x28] sm:$0xff] }
 0x2e5   : > { %2035 = vmatpush1.msra.mxu0 %v1980_v19  ;;  %7804 = vmatpush3.msra.mxu1 %v1968_v18  ;;  %v1970_v20 = vsel %vm10456_vm6, %v1966_v58, %v1968_v18  ;;  %v1959_v21 = vsel %vm10446_vm5, %v1955_v1, %v1957_v17  ;;  %v2208_v1 = vld [vmem:[%s8605_s20 + $0x58] sm:$0xff]  ;;  %v2201_v18 = vld [vmem:[%s8605_s20 + $0x20] sm:$0xff]  ;;  %vm2231_vm5 = vcmask 105472  }
 0x2e6   : > { %2036 = vmatprep.subr.mxu0 %v1970_v20  ;;  %7805 = vmatprep.subr.mxu1 %v8501_v49  ;;  %v2216_v19 = vld [vmem:[%s8605_s20 + $0x98] sm:$0xff] }
 0x2e7   : > { %2037 = vmatpush1.msra.mxu0 %v1969_v0  ;;  %7806 = vmatpush3.msra.mxu1 %v1957_v17  ;;  %v2217_v17 = vld [vmem:[%s8605_s20 + $0xa0] sm:$0xff]  ;;  %v2200_v20 = vld [vmem:[%s8605_s20 + $0x18] sm:$0xff] }
 0x2e8   : > { %v1935_v22 = vpop.permute.xlu0 %1934  ;;  %2038 = vmatprep.subr.mxu0 %v1959_v21  ;;  %7807 = vmatprep.subr.mxu1 %v8501_v49  ;;  %v1946_v23 = vpop.permute.xlu1 %1945 }
 0x2e9   : > { %2039 = vmatpush1.msra.mxu0 %v1958_v24  ;;  %7808 = vmatpush3.msra.mxu1 %v1946_v23  ;;  %v1948_v25 = vsel %vm10455_vm4, %v1944_v62, %v1946_v23  ;;  %v1937_v28 = vsel %vm10559_vm12, %v1933_v6, %v1935_v22  ;;  %vm9109_vm12 = vmneg %vm10475_vm0  ;;  %v2224_v62 = vld [vmem:[%s8605_s20 + $0xd8] sm:$0xff]  ;;  %v2206_v6 = vld [vmem:[%s8605_s20 + $0x48] sm:$0xff] }
 0x2ea   : > { %2040 = vmatprep.subr.mxu0 %v1948_v25  ;;  %7809 = vmatprep.subr.mxu1 %v8501_v49  ;;  %v2199_v23 = vld [vmem:[%s8605_s20 + $0x10] sm:$0xff]  ;;  %v2214_v24 = vld [vmem:[%s8605_s20 + $0x88] sm:$0xff] }
 0x2eb   : > { %2041 = vmatpush1.msra.mxu0 %v1947_v27  ;;  %7810 = vmatpush3.msra.mxu1 %v1935_v22  ;;  %v2215_v22 = vld [vmem:[%s8605_s20 + $0x90] sm:$0xff]  ;;  %v2198_v25 = vld [vmem:[%s8605_s20 + $0x8] sm:$0xff]  ;;  %v2213_v27 = vld [vmem:[%s8605_s20 + $0x80] sm:$0xff] }
 0x2ec   : > { %v1920_v29 = vpop.permute.xlu0 %1919  ;;  %2042 = vmatprep.subr.mxu0 %v1937_v28  ;;  %7811 = vmatprep.subr.mxu1 %v8501_v49  ;;  %v1924_v30 = vpop.permute.xlu1 %1923  ;;  %v2197_v28 = vld [vmem:[%s8605_s20] sm:$0xff] }
 0x2ed   : > { %2043 = vmatpush1.msra.mxu0 %v1936_v32  ;;  %7812 = vmatpush3.msra.mxu1 %v1924_v30  ;;  %v1926_v26 = vsel %vm10561_vm15, %v1922_v5, %v1924_v30  ;;  %v1925_v34 = vsel %vm10562_vm9, %v1920_v29, %v1922_v5  ;;  %v2222_v5 = vld [vmem:[%s8605_s20 + $0xc8] sm:$0xff]  ;;  %vm10565_vm15 = vmmov %vm10562_vm9 }
 0x2ee   : > { %2044 = vmatprep.subr.mxu0 %v1926_v26  ;;  %7813 = vmatprep.subr.mxu1 %v8501_v49 }
 0x2ef   : > { %2045 = vmatpush1.msra.mxu0 %v1925_v34  ;;  %7814 = vmatpush3.msk.msra.mxu1 %vm10474_vm1, %v9062_v51  ;;  %v2227_v51 = vld [vmem:[%s8605_s20 + $0xf0] sm:$0xff] }
 0x2f0   : > { %2046 = vmatprep.subr.mxu0 %v9037_v63  ;;  %7816 = vmatmul.mubr.msk.f32.vlgmr.msra.gmra.mxu1 %vm2012_vm14, %v1899_v36 }
 0x2f1   : > { %7320 = vmatpush1.msk.msra.mxu0 %vm9109_vm12, %v9033_v31  ;;  %7818 = vmatprep.subr.mxu1 %v8501_v49 }
 0x2f2   : > { %7321 = vmatmul.mubr.msk.f32.vlgmr.msra.gmra.mxu0 %vm2012_vm14, %v1899_v36  ;;  %7822 = vmatprep.mubr.msk.f32.mxu1 %vm8502_vm3, %v8501_v49 }
 0x2f3   : > { %7459 = vmatprep.subr.mxu0 %v2228_v48  ;;  %7819 = vmatpush3.msk.msra.mxu1 %vm2235_vm13, %v2230_v61  ;;  %v2379_v61 = vld [vmem:[%s8560_s29] sm:$0xff] }
 0x2f4   : > { %7460 = vmatpush3.msra.mxu0 %v2212_v50  ;;  %7820 = vmatprep.subr.mxu1 %v8501_v49 }
 0x2f5   : > { %7461 = vmatprep.subr.mxu0 %v2227_v51  ;;  %7821 = vmatpush3.msra.mxu1 %v2229_v11 }
 0x2f6   : > { %7462 = vmatpush3.msra.mxu0 %v2211_v53 }
 0x2f7   : > { %7463 = vmatprep.subr.mxu0 %v2226_v54 }
 0x2f8   : > { %7464 = vmatpush3.msra.mxu0 %v2210_v57 }
 0x2f9   : > { %v2010_v38 = vpop.permute.xlu1 %2009  ;;  %7465 = vmatprep.subr.mxu0 %v2225_v59 }
 0x2fa   : > { %7466 = vmatpush3.msra.mxu0 %v2209_v60 }
 0x2fb   : > { %7467 = vmatprep.subr.mxu0 %v2224_v62  ;;  %v2382_v62 = vld [vmem:[%s8555_s25 + $0x8] sm:$0xff] }
 0x2fc   : > { %7468 = vmatpush3.msra.mxu0 %v2208_v1  ;;  %v2381_v1 = vld [vmem:[%s8555_s25] sm:$0xff] }
 0x2fd   : > { %7469 = vmatprep.subr.mxu0 %v2223_v2 }
 0x2fe   : > { %7470 = vmatpush3.msra.mxu0 %v2207_v4 }
 0x2ff   : > { %7471 = vmatprep.subr.mxu0 %v2222_v5 }
 0x300   : > { %7472 = vmatpush3.msra.mxu0 %v2206_v6 }
 0x301   : > { %7473 = vmatprep.subr.mxu0 %v2221_v8 }
 0x302   : > { %7474 = vmatpush3.msra.mxu0 %v2205_v9 }
 0x303   : > { %7475 = vmatprep.subr.mxu0 %v2220_v10 }
 0x304   : > { %7476 = vmatpush3.msra.mxu0 %v2204_v12  ;;  %v2380_v12 = vld [vmem:[%s8560_s29 + $0x8] sm:$0xff] }
 0x305   : > { %7477 = vmatprep.subr.mxu0 %v2219_v13 }
 0x306   : > { %7478 = vmatpush3.msra.mxu0 %v2203_v14  ;;  %v9213_v13 = vmul.u32.u64.low 3435973837, %v8954_v7  ;;  %v9214_v14 = vmul.u32.u64.high 3435973837, %v8954_v7, %v9213_v13 }
 0x307   : > { %7479 = vmatprep.subr.mxu0 %v2218_v15  ;;  %v2718_v13 = vld [vmem:[#allocation4 + $0x28] sm:$0xff] }
 0x308   : > { %7480 = vmatpush3.msra.mxu0 %v2202_v16  ;;  %v2514_v15 = vshrl.u32 %v9214_v14, 3 }
 0x309   : > { %7481 = vmatprep.subr.mxu0 %v2217_v17 }
 0x30a   : > { %7482 = vmatpush3.msra.mxu0 %v2201_v18  ;;  %v2515_v16 = vmul.u32 10, %v2514_v15 }
 0x30b   : > { %7483 = vmatprep.subr.mxu0 %v2216_v19 }
 0x30c   : > { %7484 = vmatpush3.msra.mxu0 %v2200_v20  ;;  %v2516_v17 = vsub.s32 %v8954_v7, %v2515_v16 }
 0x30d   : > { %7485 = vmatprep.subr.mxu0 %v2215_v22 }
 0x30e   : > { %7486 = vmatpush3.msra.mxu0 %v2199_v23  ;;  %v2522_v18 = vadd.s32 10, %v2516_v17 }
 0x30f   : > { %7487 = vmatprep.subr.mxu0 %v2214_v24 }
 0x310   : > { %7488 = vmatpush3.msra.mxu0 %v2198_v25 }
 0x311   : > { %7489 = vmatprep.subr.mxu0 %v2213_v27 }
 0x312   : > { %7490 = vmatpush3.msra.mxu0 %v2197_v28 }
 0x3b0   : > { %v2153_v40 = vpop.f32.mrf.mxu1 }
 0x3b1   : > { %v2154_v41 = vadd.f32 %v2153_v40, %v2010_v38 }
 0x3b2   : > { %v2082_v33 = vpop.f32.mrf.mxu0  ;;  %v7817_v42 = vpop.f32.mrf.mxu1 }
 0x3b3   : > { %v2159_v43 = vmax.f32 %v2154_v41, 0.0  ;;  %v2083_v45 = vadd.f32 %v2082_v33, %v2010_v38 }
 0x3b4   : > { %v2084_v46 = vpop.f32.mrf.mxu0 }
 0x3b5   : > { %v9126_v47 = vsel %vm9008_vm10, %v2159_v43, 0.0  ;;  %v9128_v31 = vmax.f32 %v2083_v45, 0.0  ;;  %v2085_v63 = vadd.f32 %v2084_v46, %v2010_v38 }
 0x3b6   : > { %2170 = vrot.lane.b32.xlu1 %v9126_v47, %s10478_s15 }
 0x3b7   : > { %v9135_v52 = vmax.f32 %v2085_v63, 0.0  ;;  %v9142_v55 = vsel %vm9025_vm2, %v9128_v31, 0.0 }
 0x3b9   : > { %v9147_v56 = vsel %vm9013_vm11, %v9135_v52, 0.0 }
 0x3ba   : > { %v8271_v58 = vpack.i.bf16 %v9142_v55, %v9147_v56 }
 0x3bc   : > { %8272 = vrot.lane.b32.xlu0 %v8271_v58, %s10478_s15 }
 0x428   : > { %v2171_v0 = vpop.permute.xlu1 %2170 }
 0x429   : > { %v2179_v21 = vmax.f32 %v9126_v47, %v2171_v0 }
 0x42b   : > { %2187 = vrot.lane.b32.xlu1 %v2179_v21, %s10449_s18 }
 0x42e   : > { %v8273_v29 = vpop.permute.xlu0 %8272 }
 0x42f   : > { %v8275_v30 = vunpack.i.h.bf16 %v8273_v29  ;;  %v8274_v32 = vunpack.i.l.bf16 %v8273_v29 }
 0x431   : > { %v2172_v26 = vsel %vm10565_vm15, %v8275_v30, %v8274_v32  ;;  %v2173_v34 = vsel %vm10562_vm9, %v8274_v32, %v2171_v0  ;;  %vm2519_vm15 = vcmp.ne.s32.totalorder %v2516_v17, 0  ;;  %vm2520_vm9 = vcmp.lt.s32.totalorder %v2516_v17, 0 }
 0x432   : > { %v2177_v36 = vmax.f32 %v9142_v55, %v2172_v26  ;;  %v2178_v38 = vmax.f32 %v9147_v56, %v2173_v34 }
 0x434   : > { %v8276_v40 = vpack.i.bf16 %v2177_v36, %v2178_v38 }
 0x436   : > { %8277 = vrot.lane.b32.xlu0 %v8276_v40, %s10449_s18  ;;  %s10476_s18 = smov 116  }
 0x49d   : > { %v2188_v41 = vpop.permute.xlu1 %2187 }
 0x49e   : > { %v2196_v33 = vmax.f32 %v2179_v21, %v2188_v41 }
 0x4a0   : > { %7823 = vmatmul.mubr.msk.f32.vlgmr.msra.gmra.mxu1 %vm2231_vm5, %v2196_v33  ;;  %vm2387_vm5 = vcmask 89088   ;;  %v2533_v33 = vld [vmem:[%s10540_s3] sm:$0xff] }
 0x4a1   : > { %7843 = vmatprep.mubr.msk.f32.mxu1 %vm2012_vm14, %v2379_v61  ;;  %v2529_v61 = vld [vmem:[%s10539_s8] sm:$0xff] }
 0x4a8   : > { %v8278_v42 = vpop.permute.xlu0 %8277 }
 0x4a9   : > { %v8280_v43 = vunpack.i.h.bf16 %v8278_v42  ;;  %v8279_v45 = vunpack.i.l.bf16 %v8278_v42  ;;  %v2534_v42 = vld [vmem:[%s10540_s3 + $0x8] sm:$0xff]  ;;  %s8516_s3 = smov 48  }
 0x4ab   : > { %v2189_v46 = vsel %vm10455_vm4, %v8280_v43, %v8279_v45  ;;  %v2190_v63 = vsel %vm10455_vm4, %v8279_v45, %v2188_v41  ;;  %vm2521_vm4 = vmand %vm2520_vm9, %vm2519_vm15  ;;  %v2530_v41 = vld [vmem:[%s10539_s8 + $0x8] sm:$0xff]  ;;  %vm2827_vm15 = vcmask 56320   ;;  %vm2830_vm9 = vcmask 252928  }
 0x4ac   : > { %v2195_v48 = vmax.f32 %v2178_v38, %v2190_v63  ;;  %v2194_v50 = vmax.f32 %v2177_v36, %v2189_v46  ;;  %v2523_v20 = vsel %vm2521_vm4, %v2522_v18, %v2516_v17  ;;  %vm2607_vm4 = vcmask 130048   ;;  %v2717_v18 = vld [vmem:[#allocation4 + $0x20] sm:$0xff] }
 0x4ad   : > { %vm9218_vm6 = vcmp.lt.s32.totalorder %v2523_v20, 8 }
 0x4ae   : > { %2303 = vmatprep.mubr.f32.mxu0 %v2195_v48 }
 0x4af   : > { %2304 = vmatmul.mubr.f32.vlgmr.msra.gmra.mxu0 %v2194_v50 }
 0x560   : > { %v2375_v51 = vpop.f32.mrf.mxu1 }
 0x562   : > { %v7824_v53 = vpop.f32.mrf.mxu1 }
 0x56f   : > { %v7491_v54 = vpop.f32.mrf.mxu0 }
 0x571   : > { %v7492_v55 = vpop.f32.mrf.mxu0 }
 0x572   : > { %v7493_v56 = vadd.f32 %v7492_v55, %v7491_v54 }
 0x574   : > { %v2376_v57 = vadd.f32 %v7493_v56, %v2375_v51 }
 0x576   : > { %2384 = vrot.lane.b32.xlu0 %v2376_v57, %s10471_s0 }
 0x5e8   : > { %v2385_v58 = vpop.permute.xlu0 %2384 }
 0x5e9   : > { %v2388_v59 = vsel %vm2387_vm5, 0.0, %v2385_v58 }
 0x5ea   : > { %v2389_v60 = vsel %vm1790_vm8, %v2388_v59, 0.0 }
 0x5eb   : > { %2409 = vrot.lane.b32.xlu0 %v2389_v60, %s10469_s7  ;;  %2412 = vrot.lane.b32.xlu1 %v2389_v60, %s10461_s2 }
 0x5ef   : > { %2403 = vrot.lane.b32.xlu0 %v2389_v60, %s10476_s18  ;;  %2406 = vrot.lane.b32.xlu1 %v2389_v60, %s10465_s1 }
 0x5f3   : > { %2397 = vrot.lane.b32.xlu0 %v2389_v60, %s10467_s23  ;;  %2400 = vrot.lane.b32.xlu1 %v2389_v60, %s10463_s10 }
 0x5f7   : > { %2391 = vrot.lane.b32.xlu0 %v2389_v60, %s10478_s15  ;;  %2394 = vrot.lane.b32.xlu1 %v2389_v60, %s10480_s16 }
 0x5fb   : > { %2422 = vperm.xlu1 %8270, %v2382_v62   ;;  %2417 = vperm.xlu0 %8281, %v2381_v1   ;;  %v2532_v1 = vld [vmem:[%s10539_s8 + $0x18] sm:$0xff] }
 0x65d   : > { %v2410_v2 = vpop.permute.xlu0 %2409  ;;  %v2413_v4 = vpop.permute.xlu1 %2412 }
 0x65e   : > { %7825 = vmatprep.subr.mxu1 %v2413_v4 }
 0x65f   : > { %7826 = vmatpush3.msra.mxu1 %v2413_v4  ;;  %v2721_v4 = vld [vmem:[#allocation4 + $0x40] sm:$0x1f] }
 0x660   : > { %7827 = vmatprep.subr.mxu1 %v2410_v2  ;;  %7846 = vmatprep.subr.msk.mxu0 %vm2235_vm13, %v2721_v4 }
 0x661   : > { %v2404_v5 = vpop.permute.xlu0 %2403  ;;  %7828 = vmatpush3.msra.mxu1 %v2410_v2  ;;  %v2407_v6 = vpop.permute.xlu1 %2406  ;;  %v2531_v2 = vld [vmem:[%s10539_s8 + $0x10] sm:$0xff]  ;;  %7847 = vmatpush3.msk.msra.mxu0 %vm2235_vm13, %v2721_v4  ;;  %vm2722_vm13 = vcmask 564224   ;;  %s10593_s8 = sld [smem:[#allocation23_spill]] }
 0x662   : > { %7829 = vmatprep.subr.mxu1 %v2407_v6 }
 0x663   : > { %7830 = vmatpush3.msra.mxu1 %v2407_v6 }
 0x664   : > { %7831 = vmatprep.subr.mxu1 %v2404_v5 }
 0x665   : > { %v2398_v8 = vpop.permute.xlu0 %2397  ;;  %7832 = vmatpush3.msra.mxu1 %v2404_v5  ;;  %v2401_v9 = vpop.permute.xlu1 %2400  ;;  %v2720_v5 = vld [vmem:[#allocation4 + $0x38] sm:$0xff] }
 0x666   : > { %7833 = vmatprep.subr.mxu1 %v2401_v9  ;;  %7848 = vmatprep.subr.mxu0 %v2720_v5 }
 0x667   : > { %7834 = vmatpush3.msra.mxu1 %v2401_v9  ;;  %7849 = vmatpush3.msra.mxu0 %v2720_v5 }
 0x668   : > { %7835 = vmatprep.subr.mxu1 %v2398_v8 }
 0x669   : > { %7836 = vmatpush3.msra.mxu1 %v2398_v8  ;;  %v2395_v10 = vpop.permute.xlu1 %2394  ;;  %v2392_v11 = vpop.permute.xlu0 %2391 }
 0x66a   : > { %7837 = vmatprep.subr.mxu1 %v2395_v10 }
 0x66b   : > { %7838 = vmatpush3.msra.mxu1 %v2395_v10  ;;  %v2719_v10 = vld [vmem:[#allocation4 + $0x30] sm:$0xff] }
 0x66c   : > { %7839 = vmatprep.subr.mxu1 %v2392_v11  ;;  %7850 = vmatprep.subr.mxu0 %v2719_v10 }
 0x66d   : > { %7840 = vmatpush3.msra.mxu1 %v2392_v11  ;;  %7851 = vmatpush3.msra.mxu0 %v2719_v10 }
 0x66e   : > { %7841 = vmatprep.subr.msk.mxu1 %vm1790_vm8, %v2388_v59  ;;  %7852 = vmatprep.subr.mxu0 %v2718_v13 }
 0x66f   : > { %7842 = vmatpush3.msk.msra.mxu1 %vm1790_vm8, %v2388_v59  ;;  %7853 = vmatpush3.msra.mxu0 %v2718_v13 }
 0x670   : > { %7844 = vmatmul.mubr.msk.f32.vlgmr.msra.gmra.mxu1 %vm2012_vm14, %v2380_v12  ;;  %2614 = vmatprep.subr.mxu1 %v8501_v49 }
 0x671   : > { %7331 = vmatprep.mubr.msk.f32.mxu1 %vm2607_vm4, %v2530_v41  ;;  %7854 = vmatprep.subr.mxu0 %v2717_v18 }
 0x672   : > { %7855 = vmatpush3.msra.mxu0 %v2717_v18 }
 0x676   : > { %v2423_v19 = vpop.permute.xlu1 %2422  ;;  %v2418_v21 = vpop.permute.xlu0 %2417 }
 0x730   : > { %v7845_v0 = vpop.f32.mrf.mxu1 }
 0x731   : > { %v2503_v22 = vadd.f32 %v7845_v0, %v2423_v19  ;;  %v2716_v0 = vld [vmem:[#allocation4 + $0x18] sm:$0xff] }
 0x732   : > { %v2497_v23 = vpop.f32.mrf.mxu1  ;;  %7856 = vmatprep.subr.mxu0 %v2716_v0 }
 0x733   : > { %v2507_v25 = vmax.f32 %v2503_v22, 0.0  ;;  %v2498_v27 = vadd.f32 %v2497_v23, %v2418_v21  ;;  %7857 = vmatpush3.msra.mxu0 %v2716_v0  ;;  %v2715_v22 = vld [vmem:[#allocation4 + $0x10] sm:$0xff]  ;;  %v2714_v23 = vld [vmem:[#allocation4 + $0x8] sm:$0xff] }
 0x734   : > { %7858 = vmatprep.subr.mxu0 %v2715_v22 }
 0x735   : > { %v2506_v28 = vmax.f32 %v2498_v27, 0.0  ;;  %v2528_v29 = vsel %vm9218_vm6, %v2507_v25, 0.0  ;;  %7859 = vmatpush3.msra.mxu0 %v2715_v22  ;;  %v2713_v25 = vld [vmem:[#allocation4] sm:$0xff] }
 0x736   : > { %2539 = vrot.lane.b32.xlu1 %v2528_v29, %s10471_s0  ;;  %7860 = vmatprep.subr.mxu0 %v2714_v23 }
 0x737   : > { %v2527_v30 = vsel %vm9218_vm6, %v2506_v28, 0.0  ;;  %7861 = vmatpush3.msra.mxu0 %v2714_v23 }
 0x738   : > { %7862 = vmatprep.subr.mxu0 %v2713_v25 }
 0x739   : > { %7863 = vmatpush3.msra.mxu0 %v2713_v25 }
 0x73a   : > { %2537 = vrot.lane.b32.xlu1 %v2527_v30, %s10471_s0  ;;  %2915 = vmatprep.subr.mxu0 %v8501_v49  ;;  %s8514_s0 = smov 114  }
 0x7a8   : > { %v2540_v32 = vpop.permute.xlu1 %2539 }
 0x7a9   : > { %v9229_v26 = vsel %vm2387_vm5, 0.0, %v2540_v32 }
 0x7aa   : > { %v2546_v34 = vsel %vm1790_vm8, %v9229_v26, 0.0 }
 0x7ab   : > { %2587 = vrot.lane.b32.xlu0 %v2546_v34, %s10469_s7 }
 0x7ac   : > { %v2538_v36 = vpop.permute.xlu1 %2537 }
 0x7ad   : > { %v9235_v38 = vsel %vm2387_vm5, 0.0, %v2538_v36 }
 0x7ae   : > { %v2545_v40 = vsel %vm1790_vm8, %v9235_v38, 0.0 }
 0x7af   : > { %2581 = vrot.lane.b32.xlu0 %v2546_v34, %s10465_s1  ;;  %2585 = vrot.lane.b32.xlu1 %v2545_v40, %s10469_s7  ;;  %s8513_s7 = smov 122  }
 0x7b3   : > { %2575 = vrot.lane.b32.xlu0 %v2546_v34, %s10476_s18  ;;  %2579 = vrot.lane.b32.xlu1 %v2545_v40, %s10465_s1  ;;  %s10569_s1 = sld [smem:[#allocation16_spill]] }
 0x7b7   : > { %2569 = vrot.lane.b32.xlu0 %v2546_v34, %s10463_s10  ;;  %2573 = vrot.lane.b32.xlu1 %v2545_v40, %s10476_s18 }
 0x7bb   : > { %2563 = vrot.lane.b32.xlu0 %v2546_v34, %s10467_s23  ;;  %2567 = vrot.lane.b32.xlu1 %v2545_v40, %s10463_s10  ;;  %s8511_s10 = smov 120  }
 0x7bf   : > { %2557 = vrot.lane.b32.xlu0 %v2546_v34, %s10480_s16  ;;  %2561 = vrot.lane.b32.xlu1 %v2545_v40, %s10467_s23 }
 0x7c3   : > { %2551 = vrot.lane.b32.xlu0 %v2546_v34, %s10478_s15  ;;  %2555 = vrot.lane.b32.xlu1 %v2545_v40, %s10480_s16 }
 0x7c7   : > { %2593 = vrot.lane.b32.xlu0 %v2546_v34, %s10461_s2  ;;  %2549 = vrot.lane.b32.xlu1 %v2545_v40, %s10478_s15 }
 0x7cb   : > { %2599 = vperm.xlu0 %8281, %v2533_v33   ;;  %2591 = vrot.lane.b32.xlu1 %v2545_v40, %s10461_s2  ;;  %s10568_s2 = sld [smem:[#allocation17_spill]] }
 0x7cf   : > { %2604 = vperm.xlu1 %8270, %v2534_v42  }
 0x7d1   : > { %v2812_v13 = vld [vmem:[%s10568_s2 + $0x28] sm:$0xff] }
 0x81d   : > { %v2588_v43 = vpop.permute.xlu0 %2587 }
 0x81e   : > { %2615 = vmatpush1.msra.mxu1 %v2588_v43 }
 0x81f   : > { %2616 = vmatprep.subr.mxu1 %v8501_v49 }
 0x821   : > { %v2582_v45 = vpop.permute.xlu0 %2581  ;;  %v2586_v46 = vpop.permute.xlu1 %2585 }
 0x822   : > { %2617 = vmatpush1.msra.mxu1 %v2586_v46 }
 0x823   : > { %2618 = vmatprep.subr.mxu1 %v8501_v49 }
 0x824   : > { %2619 = vmatpush1.msra.mxu1 %v2582_v45 }
 0x825   : > { %v2576_v63 = vpop.permute.xlu0 %2575  ;;  %2620 = vmatprep.subr.mxu1 %v8501_v49  ;;  %v2580_v48 = vpop.permute.xlu1 %2579 }
 0x826   : > { %2621 = vmatpush1.msra.mxu1 %v2580_v48  ;;  %v2818_v48 = vld [vmem:[%s10569_s1 + $0x18] sm:$0xff] }
 0x827   : > { %2622 = vmatprep.subr.mxu1 %v8501_v49 }
 0x828   : > { %2623 = vmatpush1.msra.mxu1 %v2576_v63  ;;  %v2808_v63 = vld [vmem:[%s10568_s2 + $0x8] sm:$0xff] }
 0x829   : > { %v2570_v50 = vpop.permute.xlu0 %2569  ;;  %2624 = vmatprep.subr.mxu1 %v8501_v49  ;;  %v2574_v51 = vpop.permute.xlu1 %2573 }
 0x82a   : > { %2625 = vmatpush1.msra.mxu1 %v2574_v51  ;;  %v2816_v51 = vld [vmem:[%s10569_s1 + $0x8] sm:$0xff] }
 0x82b   : > { %2626 = vmatprep.subr.mxu1 %v8501_v49 }
 0x82c   : > { %2627 = vmatpush1.msra.mxu1 %v2570_v50  ;;  %v2817_v50 = vld [vmem:[%s10569_s1 + $0x10] sm:$0xff] }
 0x82d   : > { %v2564_v53 = vpop.permute.xlu0 %2563  ;;  %2628 = vmatprep.subr.mxu1 %v8501_v49  ;;  %v2568_v54 = vpop.permute.xlu1 %2567 }
 0x82e   : > { %2629 = vmatpush1.msra.mxu1 %v2568_v54 }
 0x82f   : > { %2630 = vmatprep.subr.mxu1 %v8501_v49 }
 0x830   : > { %2631 = vmatpush1.msra.mxu1 %v2564_v53  ;;  %v2815_v53 = vld [vmem:[%s10569_s1] sm:$0xff]  ;;  %s10581_s1 = sld [smem:[#allocation34_spill]] }
 0x831   : > { %v2558_v55 = vpop.permute.xlu0 %2557  ;;  %2632 = vmatprep.subr.mxu1 %v8501_v49  ;;  %v2562_v56 = vpop.permute.xlu1 %2561 }
 0x832   : > { %2633 = vmatpush1.msra.mxu1 %v2562_v56 }
 0x833   : > { %2634 = vmatprep.subr.mxu1 %v8501_v49 }
 0x834   : > { %2635 = vmatpush1.msra.mxu1 %v2558_v55 }
 0x835   : > { %2636 = vmatprep.subr.mxu1 %v8501_v49  ;;  %v2556_v57 = vpop.permute.xlu1 %2555  ;;  %v2552_v58 = vpop.permute.xlu0 %2551 }
 0x836   : > { %2637 = vmatpush1.msra.mxu1 %v2556_v57 }
 0x837   : > { %2638 = vmatprep.subr.mxu1 %v8501_v49 }
 0x838   : > { %2639 = vmatpush1.msra.mxu1 %v2552_v58 }
 0x839   : > { %2640 = vmatprep.subr.mxu1 %v8501_v49  ;;  %v2550_v59 = vpop.permute.xlu1 %2549  ;;  %v2594_v60 = vpop.permute.xlu0 %2593 }
 0x83a   : > { %2641 = vmatpush1.msra.mxu1 %v2550_v59 }
 0x83b   : > { %2642 = vmatprep.subr.mxu1 %v8501_v49 }
 0x83c   : > { %7329 = vmatpush1.msk.msra.mxu1 %vm1790_vm8, %v9229_v26 }
 0x83d   : > { %2644 = vmatprep.subr.mxu1 %v8501_v49  ;;  %v2592_v62 = vpop.permute.xlu1 %2591 }
 0x83e   : > { %7330 = vmatpush1.msk.msra.mxu1 %vm1790_vm8, %v9235_v38 }
 0x83f   : > { %2674 = vmatprep.subr.mxu1 %v8501_v49 }
 0x840   : > { %2675 = vmatpush2.msra.mxu1 %v2594_v60 }
 0x841   : > { %2676 = vmatprep.subr.mxu1 %v8501_v49 }
 0x842   : > { %2677 = vmatpush2.msra.mxu1 %v2592_v62 }
 0x843   : > { %2679 = vmatmul.mubr.f32.vlgmr.msra.gmra.mxu1 %v2529_v61 }
 0x844   : > { %7332 = vmatprep.mubr.msk.f32.mxu1 %vm2607_vm4, %v2532_v1 }
 0x846   : > { %v2600_v6 = vpop.permute.xlu0 %2599 }
 0x847   : > { %2684 = vmatmul.mubr.f32.gmra.mxu1 %v2531_v2 }
 0x84a   : > { %v2605_v14 = vpop.permute.xlu1 %2604 }
 0x903   : > { %v2680_v8 = vpop.f32.mrf.mxu1 }
 0x904   : > { %v2681_v9 = vadd.f32 %v2680_v8, %v2600_v6 }
 0x905   : > { %v2682_v11 = vpop.f32.mrf.mxu1 }
 0x906   : > { %v2689_v12 = vmax.f32 %v2681_v9, 0.0  ;;  %v2807_v9 = vld [vmem:[%s10568_s2] sm:$0xff]  ;;  %v2810_v11 = vld [vmem:[%s10568_s2 + $0x18] sm:$0xff] }
 0x907   : > { %v2685_v15 = vpop.f32.mrf.mxu1 }
 0x908   : > { %v2686_v16 = vadd.f32 %v2685_v15, %v2605_v14  ;;  %v9287_v17 = vsel %vm9218_vm6, %v2689_v12, 0.0  ;;  %v2809_v12 = vld [vmem:[%s10568_s2 + $0x10] sm:$0xff]  ;;  %v2811_v14 = vld [vmem:[%s10568_s2 + $0x20] sm:$0xff]  ;;  %v2814_v15 = vld [vmem:[%s10568_s2 + $0x38] sm:$0xff] }
 0x909   : > { %v2687_v19 = vpop.f32.mrf.mxu1  ;;  %2695 = vrot.lane.b32.xlu0 %v9287_v17, %s10478_s15 }
 0x90a   : > { %v2690_v20 = vmax.f32 %v2686_v16, 0.0  ;;  %v2813_v16 = vld [vmem:[%s10568_s2 + $0x30] sm:$0xff]  ;;  %v9368_v18 = vmul.u32.u64.low 2863311531, %v8954_v7  ;;  %v9369_v19 = vmul.u32.u64.high 2863311531, %v8954_v7, %v9368_v18  ;;  %s10582_s2 = sld [smem:[#allocation27_spill]] }
 0x90c   : > { %v9293_v21 = vsel %vm9218_vm6, %v2690_v20, 0.0  ;;  %v3010_v20 = vshrl.u32 %v9369_v19, 2 }
 0x90d   : > { %2697 = vrot.lane.b32.xlu1 %v9293_v21, %s10478_s15 }
 0x90e   : > { %v3011_v0 = vmul.u32 6, %v3010_v20 }
 0x910   : > { %v3012_v22 = vsub.s32 %v8954_v7, %v3011_v0 }
 0x912   : > { %vm3016_vm7 = vcmp.lt.s32.totalorder %v3012_v22, 0 }
 0x97b   : > { %v2696_v27 = vpop.permute.xlu0 %2695 }
 0x97c   : > { %v2701_v28 = vmax.f32 %v9287_v17, %v2696_v27 }
 0x97e   : > { %2705 = vrot.lane.b32.xlu0 %v2701_v28, %s10467_s23 }
 0x97f   : > { %v2698_v29 = vpop.permute.xlu1 %2697 }
 0x980   : > { %v2702_v30 = vmax.f32 %v9293_v21, %v2698_v29  ;;  %v3018_v29 = vadd.s32 6, %v3012_v22 }
 0x982   : > { %2707 = vrot.lane.b32.xlu1 %v2702_v30, %s10467_s23  ;;  %s8512_s23 = smov 121  }
 0x9f0   : > { %v2706_v32 = vpop.permute.xlu0 %2705 }
 0x9f1   : > { %v2711_v26 = vmax.f32 %v2701_v28, %v2706_v32 }
 0x9f3   : > { %7864 = vmatprep.mubr.msk.f32.mxu0 %vm2722_vm13, %v2711_v26 }
 0x9f4   : > { %v2708_v34 = vpop.permute.xlu1 %2707 }
 0x9f5   : > { %v2712_v36 = vmax.f32 %v2702_v30, %v2708_v34 }
 0x9f7   : > { %7865 = vmatmul.mubr.msk.f32.vlgmr.msra.gmra.mxu0 %vm2722_vm13, %v2712_v36  ;;  %vm3015_vm13 = vcmp.ne.s32.totalorder %v3012_v22, 0 }
 0x9f8   : > { %7338 = vmatprep.mubr.msk.f32.mxu0 %vm2607_vm4, %v2808_v63  ;;  %vm3017_vm1 = vmand %vm3016_vm7, %vm3015_vm13  ;;  %vm3764_vm7 = vcmask 654336   ;;  %vm6038_vm13 = vcmask 523264  }
 0x9f9   : > { %v3019_v36 = vsel %vm3017_vm1, %v3018_v29, %v3012_v22  ;;  %vm3187_vm1 = vcmask 261120  }
 0x9fa   : > { %vm9373_vm0 = vcmp.lt.s32.totalorder %v3019_v36, 4 }
 0xab7   : > { %v7866_v38 = vpop.f32.mrf.mxu0 }
 0xab8   : > { %2823 = vrot.lane.b32.xlu0 %v7866_v38, %s8509_s26 }
 0xab9   : > { %v2798_v40 = vpop.f32.mrf.mxu0 }
 0xaba   : > { %2821 = vrot.lane.b32.xlu1 %v2798_v40, %s8509_s26 }
 0xb2a   : > { %v2824_v41 = vpop.permute.xlu0 %2823 }
 0xb2b   : > { %v9305_v33 = vsel %vm2827_vm15, 0.0, %v2824_v41 }
 0xb2c   : > { %v2832_v42 = vsel %vm2830_vm9, %v9305_v33, 0.0  ;;  %v2822_v43 = vpop.permute.xlu1 %2821 }
 0xb2d   : > { %v9310_v45 = vsel %vm2827_vm15, 0.0, %v2822_v43  ;;  %2873 = vrot.lane.b32.xlu0 %v2832_v42, %s8510_s11 }
 0xb2e   : > { %v2831_v46 = vsel %vm2830_vm9, %v9310_v45, 0.0 }
 0xb2f   : > { %2871 = vrot.lane.b32.xlu1 %v2831_v46, %s8510_s11 }
 0xb31   : > { %2867 = vrot.lane.b32.xlu0 %v2832_v42, %s10476_s18 }
 0xb33   : > { %2865 = vrot.lane.b32.xlu1 %v2831_v46, %s10476_s18 }
 0xb35   : > { %2861 = vrot.lane.b32.xlu0 %v2832_v42, %s8511_s10 }
 0xb37   : > { %2859 = vrot.lane.b32.xlu1 %v2831_v46, %s8511_s10 }
 0xb39   : > { %2855 = vrot.lane.b32.xlu0 %v2832_v42, %s8512_s23 }
 0xb3b   : > { %2853 = vrot.lane.b32.xlu1 %v2831_v46, %s8512_s23 }
 0xb3d   : > { %2849 = vrot.lane.b32.xlu0 %v2832_v42, %s8513_s7 }
 0xb3f   : > { %2847 = vrot.lane.b32.xlu1 %v2831_v46, %s8513_s7 }
 0xb41   : > { %2843 = vrot.lane.b32.xlu0 %v2832_v42, %s10480_s16 }
 0xb43   : > { %2841 = vrot.lane.b32.xlu1 %v2831_v46, %s10480_s16 }
 0xb45   : > { %2837 = vrot.lane.b32.xlu0 %v2832_v42, %s10478_s15 }
 0xb47   : > { %2835 = vrot.lane.b32.xlu1 %v2831_v46, %s10478_s15 }
 0xb49   : > { %2879 = vrot.lane.b32.xlu0 %v2832_v42, %s8514_s0  ;;  %v3759_v42 = vld [vmem:[#allocation6 + $0x28] sm:$0xff] }
 0xb4b   : > { %2877 = vrot.lane.b32.xlu1 %v2831_v46, %s8514_s0 }
 0xb4d   : > { %2900 = vperm.xlu0 %8281, %v2818_v48  }
 0xb4f   : > { %2895 = vperm.xlu1 %8270, %v2817_v50  }
 0xb51   : > { %2890 = vperm.xlu0 %8281, %v2816_v51  }
 0xb53   : > { %2885 = vperm.xlu1 %8270, %v2815_v53  }
 0xb9f   : > { %v2874_v54 = vpop.permute.xlu0 %2873 }
 0xba0   : > { %2916 = vmatpush1.msra.mxu0 %v2874_v54 }
 0xba1   : > { %2917 = vmatprep.subr.mxu0 %v8501_v49  ;;  %v2872_v55 = vpop.permute.xlu1 %2871 }
 0xba2   : > { %2918 = vmatpush1.msra.mxu0 %v2872_v55 }
 0xba3   : > { %v2868_v56 = vpop.permute.xlu0 %2867  ;;  %2919 = vmatprep.subr.mxu0 %v8501_v49 }
 0xba4   : > { %2920 = vmatpush1.msra.mxu0 %v2868_v56 }
 0xba5   : > { %2921 = vmatprep.subr.mxu0 %v8501_v49  ;;  %v2866_v57 = vpop.permute.xlu1 %2865 }
 0xba6   : > { %2922 = vmatpush1.msra.mxu0 %v2866_v57 }
 0xba7   : > { %v2862_v58 = vpop.permute.xlu0 %2861  ;;  %2923 = vmatprep.subr.mxu0 %v8501_v49 }
 0xba8   : > { %2924 = vmatpush1.msra.mxu0 %v2862_v58 }
 0xba9   : > { %2925 = vmatprep.subr.mxu0 %v8501_v49  ;;  %v2860_v59 = vpop.permute.xlu1 %2859 }
 0xbaa   : > { %2926 = vmatpush1.msra.mxu0 %v2860_v59 }
 0xbab   : > { %v2856_v60 = vpop.permute.xlu0 %2855  ;;  %2927 = vmatprep.subr.mxu0 %v8501_v49 }
 0xbac   : > { %2928 = vmatpush1.msra.mxu0 %v2856_v60 }
 0xbad   : > { %2929 = vmatprep.subr.mxu0 %v8501_v49  ;;  %v2854_v61 = vpop.permute.xlu1 %2853 }
 0xbae   : > { %2930 = vmatpush1.msra.mxu0 %v2854_v61 }
 0xbaf   : > { %v2850_v62 = vpop.permute.xlu0 %2849  ;;  %2931 = vmatprep.subr.mxu0 %v8501_v49 }
 0xbb0   : > { %2932 = vmatpush1.msra.mxu0 %v2850_v62 }
 0xbb1   : > { %2933 = vmatprep.subr.mxu0 %v8501_v49  ;;  %v2848_v1 = vpop.permute.xlu1 %2847 }
 0xbb2   : > { %2934 = vmatpush1.msra.mxu0 %v2848_v1 }
 0xbb3   : > { %v2844_v2 = vpop.permute.xlu0 %2843  ;;  %2935 = vmatprep.subr.mxu0 %v8501_v49 }
 0xbb4   : > { %2936 = vmatpush1.msra.mxu0 %v2844_v2 }
 0xbb5   : > { %2937 = vmatprep.subr.mxu0 %v8501_v49  ;;  %v2842_v4 = vpop.permute.xlu1 %2841 }
 0xbb6   : > { %2938 = vmatpush1.msra.mxu0 %v2842_v4 }
 0xbb7   : > { %v2838_v5 = vpop.permute.xlu0 %2837  ;;  %2939 = vmatprep.subr.mxu0 %v8501_v49 }
 0xbb8   : > { %2940 = vmatpush1.msra.mxu0 %v2838_v5 }
 0xbb9   : > { %2941 = vmatprep.subr.mxu0 %v8501_v49  ;;  %v2836_v6 = vpop.permute.xlu1 %2835 }
 0xbba   : > { %2942 = vmatpush1.msra.mxu0 %v2836_v6 }
 0xbbb   : > { %2943 = vmatprep.subr.mxu0 %v8501_v49  ;;  %v2880_v8 = vpop.permute.xlu0 %2879 }
 0xbbc   : > { %7336 = vmatpush1.msk.msra.mxu0 %vm2830_vm9, %v9305_v33 }
 0xbbd   : > { %2945 = vmatprep.subr.mxu0 %v8501_v49  ;;  %v2878_v10 = vpop.permute.xlu1 %2877 }
 0xbbe   : > { %7337 = vmatpush1.msk.msra.mxu0 %vm2830_vm9, %v9310_v45 }
 0xbbf   : > { %2975 = vmatprep.subr.mxu0 %v8501_v49 }
 0xbc0   : > { %2976 = vmatpush2.msra.mxu0 %v2880_v8 }
 0xbc1   : > { %2977 = vmatprep.subr.mxu0 %v8501_v49 }
 0xbc2   : > { %2978 = vmatpush2.msra.mxu0 %v2878_v10 }
 0xbc3   : > { %2980 = vmatmul.mubr.f32.vlgmr.msra.gmra.mxu0 %v2807_v9 }
 0xbc4   : > { %7339 = vmatprep.mubr.msk.f32.mxu0 %vm2607_vm4, %v2810_v11 }
 0xbc7   : > { %2985 = vmatmul.mubr.f32.gmra.mxu0 %v2809_v12 }
 0xbc8   : > { %7340 = vmatprep.mubr.msk.f32.mxu0 %vm2607_vm4, %v2812_v13  ;;  %v2901_v30 = vpop.permute.xlu0 %2900 }
 0xbca   : > { %v2896_v25 = vpop.permute.xlu1 %2895 }
 0xbcb   : > { %2990 = vmatmul.mubr.f32.gmra.mxu0 %v2811_v14 }
 0xbcc   : > { %7341 = vmatprep.mubr.msk.f32.mxu0 %vm2607_vm4, %v2814_v15  ;;  %v2891_v7 = vpop.permute.xlu0 %2890 }
 0xbce   : > { %v2886_v26 = vpop.permute.xlu1 %2885 }
 0xbcf   : > { %2995 = vmatmul.mubr.f32.gmra.mxu0 %v2813_v16 }
 0xc83   : > { %v2981_v23 = vpop.f32.mrf.mxu0 }
 0xc84   : > { %v2982_v38 = vadd.f32 %v2981_v23, %v2886_v26 }
 0xc85   : > { %v2983_v27 = vpop.f32.mrf.mxu0 }
 0xc86   : > { %v3000_v45 = vmax.f32 %v2982_v38, 0.0 }
 0xc87   : > { %v2986_v28 = vpop.f32.mrf.mxu0 }
 0xc88   : > { %v2987_v46 = vadd.f32 %v2986_v28, %v2891_v7  ;;  %v3023_v53 = vsel %vm9373_vm0, %v3000_v45, 0.0 }
 0xc89   : > { %v2988_v32 = vpop.f32.mrf.mxu0 }
 0xc8a   : > { %v3001_v54 = vmax.f32 %v2987_v46, 0.0 }
 0xc8b   : > { %v2991_v34 = vpop.f32.mrf.mxu0 }
 0xc8c   : > { %v2992_v40 = vadd.f32 %v2991_v34, %v2896_v25  ;;  %v3024_v56 = vsel %vm9373_vm0, %v3001_v54, 0.0 }
 0xc8d   : > { %v2993_v41 = vpop.f32.mrf.mxu0 }
 0xc8e   : > { %v3002_v33 = vmax.f32 %v2992_v40, 0.0 }
 0xc8f   : > { %v2996_v43 = vpop.f32.mrf.mxu0 }
 0xc90   : > { %v3025_v63 = vsel %vm9373_vm0, %v3002_v33, 0.0  ;;  %v2997_v48 = vadd.f32 %v2996_v43, %v2901_v30 }
 0xc91   : > { %v2998_v50 = vpop.f32.mrf.mxu0  ;;  %3051 = vrot.lane.b32.xlu1 %v3025_v63, %s8509_s26 }
 0xc92   : > { %v3003_v51 = vmax.f32 %v2997_v48, 0.0 }
 0xc94   : > { %v3026_v55 = vsel %vm9373_vm0, %v3003_v51, 0.0 }
 0xc95   : > { %3053 = vrot.lane.b32.xlu0 %v3026_v55, %s8509_s26  ;;  %3047 = vrot.lane.b32.xlu1 %v3023_v53, %s8509_s26 }
 0xc99   : > { %3049 = vrot.lane.b32.xlu0 %v3024_v56, %s8509_s26  ;;  %s10572_s26 = sld [smem:[#allocation19_spill]] }
 0xc9f   : > { %v3028_v9 = vld [vmem:[%s10572_s26 + $0x8] sm:$0xff]  ;;  %v3029_v10 = vld [vmem:[%s10572_s26 + $0x10] sm:$0xff]  ;;  %v3027_v54 = vld [vmem:[%s10572_s26] sm:$0xff] }
 0xca0   : > { %3264 = vmatprep.mubr.f32.mxu1 %v3028_v9  ;;  %7875 = vmatprep.mubr.msk.f32.mxu0 %vm3187_vm1, %v3029_v10  ;;  %v3031_v55 = vld [vmem:[%s10572_s26 + $0x20] sm:$0xff] }
 0xd03   : > { %v3052_v57 = vpop.permute.xlu1 %3051 }
 0xd04   : > { %v9404_v4 = vsel %vm2827_vm15, 0.0, %v3052_v57 }
 0xd05   : > { %v3065_v5 = vsel %vm2830_vm9, %v9404_v4, 0.0 }
 0xd07   : > { %v3054_v58 = vpop.permute.xlu0 %3053  ;;  %v3048_v59 = vpop.permute.xlu1 %3047 }
 0xd08   : > { %v9390_v60 = vsel %vm2827_vm15, 0.0, %v3048_v59  ;;  %v9413_v6 = vsel %vm2827_vm15, 0.0, %v3054_v58  ;;  %v3030_v58 = vld [vmem:[%s10572_s26 + $0x18] sm:$0xff] }
 0xd09   : > { %v3063_v61 = vsel %vm2830_vm9, %v9390_v60, 0.0  ;;  %v3066_v8 = vsel %vm2830_vm9, %v9413_v6, 0.0  ;;  %v3034_v59 = vld [vmem:[%s10572_s26 + $0x38] sm:$0xff] }
 0xd0a   : > { %3095 = vrot.lane.b32.xlu1 %v3063_v61, %s8513_s7  ;;  %3143 = vrot.lane.b32.xlu0 %v3063_v61, %s8510_s11 }
 0xd0b   : > { %v3050_v62 = vpop.permute.xlu0 %3049 }
 0xd0c   : > { %v9397_v1 = vsel %vm2827_vm15, 0.0, %v3050_v62  ;;  %vm3749_vm15 = vcmask 392192  }
 0xd0d   : > { %v3064_v2 = vsel %vm2830_vm9, %v9397_v1, 0.0 }
 0xd0e   : > { %3097 = vrot.lane.b32.xlu1 %v3064_v2, %s8513_s7  ;;  %3131 = vrot.lane.b32.xlu0 %v3063_v61, %s10476_s18 }
 0xd12   : > { %3085 = vrot.lane.b32.xlu1 %v3064_v2, %s10480_s16  ;;  %3145 = vrot.lane.b32.xlu0 %v3064_v2, %s8510_s11 }
 0xd16   : > { %3099 = vrot.lane.b32.xlu1 %v3065_v5, %s8513_s7  ;;  %3133 = vrot.lane.b32.xlu0 %v3064_v2, %s10476_s18 }
 0xd1a   : > { %3087 = vrot.lane.b32.xlu1 %v3065_v5, %s10480_s16  ;;  %3147 = vrot.lane.b32.xlu0 %v3065_v5, %s8510_s11 }
 0xd1e   : > { %3101 = vrot.lane.b32.xlu1 %v3066_v8, %s8513_s7  ;;  %3135 = vrot.lane.b32.xlu0 %v3065_v5, %s10476_s18  ;;  %s10573_s7 = sld [smem:[#allocation18_spill]] }
 0xd22   : > { %3083 = vrot.lane.b32.xlu1 %v3063_v61, %s10480_s16  ;;  %3149 = vrot.lane.b32.xlu0 %v3066_v8, %s8510_s11  ;;  %s10574_s11 = sld [smem:[#allocation29_spill]] }
 0xd24   : > { %v3041_v11 = vld [vmem:[%s10573_s7 + $0x10] sm:$0xff]  ;;  %v3042_v12 = vld [vmem:[%s10573_s7 + $0x18] sm:$0xff]  ;;  %v3039_v13 = vld [vmem:[%s10573_s7] sm:$0xff] }
 0xd25   : > { %v3040_v14 = vld [vmem:[%s10573_s7 + $0x8] sm:$0xff]  ;;  %s10592_s7 = smov 116  }
 0xd26   : > { %3089 = vrot.lane.b32.xlu1 %v3066_v8, %s10480_s16  ;;  %3123 = vrot.lane.b32.xlu0 %v3065_v5, %s8511_s10  ;;  %s8515_s16 = smov 24  }
 0xd28   : > { %v3378_v15 = vld [vmem:[%s10574_s11] sm:$0xff]  ;;  %v3379_v16 = vld [vmem:[%s10574_s11 + $0x8] sm:$0xff] }
 0xd2a   : > { %3075 = vrot.lane.b32.xlu1 %v3065_v5, %s10478_s15  ;;  %3137 = vrot.lane.b32.xlu0 %v3066_v8, %s10476_s18  ;;  %s10578_s18 = sld [smem:[#allocation33_spill]] }
 0xd2e   : > { %3077 = vrot.lane.b32.xlu1 %v3066_v8, %s10478_s15  ;;  %3121 = vrot.lane.b32.xlu0 %v3064_v2, %s8511_s10 }
 0xd32   : > { %3073 = vrot.lane.b32.xlu1 %v3064_v2, %s10478_s15  ;;  %3125 = vrot.lane.b32.xlu0 %v3066_v8, %s8511_s10 }
 0xd36   : > { %3071 = vrot.lane.b32.xlu1 %v3063_v61, %s10478_s15  ;;  %3119 = vrot.lane.b32.xlu0 %v3063_v61, %s8511_s10  ;;  %s10576_s10 = sld [smem:[#allocation31_spill]] }
 0xd37   : > { %s10579_s15 = sld [smem:[#allocation37_spill]] }
 0xd3a   : > { %3111 = vrot.lane.b32.xlu1 %v3065_v5, %s8512_s23  ;;  %3113 = vrot.lane.b32.xlu0 %v3066_v8, %s8512_s23 }
 0xd3c   : > { %v3473_v9 = vld [vmem:[%s10576_s10] sm:$0xff] }
 0xd3e   : > { %3107 = vrot.lane.b32.xlu1 %v3063_v61, %s8512_s23  ;;  %3109 = vrot.lane.b32.xlu0 %v3064_v2, %s8512_s23  ;;  %s10575_s23 = sld [smem:[#allocation30_spill]] }
 0xd42   : > { %3159 = vrot.lane.b32.xlu1 %v3065_v5, %s8514_s0  ;;  %3161 = vrot.lane.b32.xlu0 %v3066_v8, %s8514_s0  ;;  %v3036_v5 = vld [vmem:[%s10572_s26 + $0x48] sm:$0xff] }
 0xd44   : > { %v3380_v8 = vld [vmem:[%s10575_s23] sm:$0xff] }
 0xd46   : > { %3155 = vrot.lane.b32.xlu1 %v3063_v61, %s8514_s0  ;;  %3157 = vrot.lane.b32.xlu0 %v3064_v2, %s8514_s0  ;;  %v3037_v2 = vld [vmem:[%s10572_s26 + $0x50] sm:$0xff]  ;;  %s10577_s0 = sld [smem:[#allocation32_spill]] }
 0xd4a   : > { %3179 = vperm.xlu1 %8270, %v3041_v11   ;;  %3184 = vperm.xlu0 %8281, %v3042_v12  }
 0xd4e   : > { %3169 = vperm.xlu1 %8270, %v3039_v13   ;;  %3174 = vperm.xlu0 %8281, %v3040_v14  }
 0xd52   : > { %3384 = vperm.xlu1 %8270, %v3378_v15   ;;  %3389 = vperm.xlu0 %8281, %v3379_v16  }
 0xd7c   : > { %v3096_v18 = vpop.permute.xlu1 %3095  ;;  %v3144_v19 = vpop.permute.xlu0 %3143 }
 0xd80   : > { %v3098_v20 = vpop.permute.xlu1 %3097  ;;  %v3132_v0 = vpop.permute.xlu0 %3131 }
 0xd84   : > { %v3086_v22 = vpop.permute.xlu1 %3085  ;;  %v3146_v23 = vpop.permute.xlu0 %3145 }
 0xd88   : > { %v3100_v25 = vpop.permute.xlu1 %3099  ;;  %v3134_v27 = vpop.permute.xlu0 %3133 }
 0xd8c   : > { %v3088_v28 = vpop.permute.xlu1 %3087  ;;  %v3148_v29 = vpop.permute.xlu0 %3147 }
 0xd90   : > { %v3102_v30 = vpop.permute.xlu1 %3101  ;;  %v3136_v32 = vpop.permute.xlu0 %3135 }
 0xd94   : > { %v3084_v26 = vpop.permute.xlu1 %3083  ;;  %v3150_v34 = vpop.permute.xlu0 %3149 }
 0xd95   : > { %7519 = vmatprep.subr.mxu1 %v3150_v34 }
 0xd96   : > { %7520 = vmatpush3.msra.mxu1 %v3102_v30 }
 0xd97   : > { %7521 = vmatprep.subr.mxu1 %v3148_v29 }
 0xd98   : > { %v3090_v36 = vpop.permute.xlu1 %3089  ;;  %7522 = vmatpush3.msra.mxu1 %v3100_v25  ;;  %v3124_v38 = vpop.permute.xlu0 %3123 }
 0xd99   : > { %7523 = vmatprep.subr.mxu1 %v3146_v23 }
 0xd9a   : > { %7524 = vmatpush3.msra.mxu1 %v3098_v20 }
 0xd9b   : > { %7525 = vmatprep.subr.mxu1 %v3144_v19 }
 0xd9c   : > { %v3076_v40 = vpop.permute.xlu1 %3075  ;;  %7526 = vmatpush3.msra.mxu1 %v3096_v18  ;;  %v3138_v41 = vpop.permute.xlu0 %3137 }
 0xd9d   : > { %7527 = vmatprep.subr.mxu1 %v3138_v41 }
 0xd9e   : > { %7528 = vmatpush3.msra.mxu1 %v3090_v36 }
 0xd9f   : > { %7529 = vmatprep.subr.mxu1 %v3136_v32 }
 0xda0   : > { %v3078_v33 = vpop.permute.xlu1 %3077  ;;  %7530 = vmatpush3.msra.mxu1 %v3088_v28  ;;  %v3122_v7 = vpop.permute.xlu0 %3121 }
 0xda1   : > { %7531 = vmatprep.subr.mxu1 %v3134_v27 }
 0xda2   : > { %7532 = vmatpush3.msra.mxu1 %v3086_v22 }
 0xda3   : > { %7533 = vmatprep.subr.mxu1 %v3132_v0 }
 0xda4   : > { %v3074_v43 = vpop.permute.xlu1 %3073  ;;  %7534 = vmatpush3.msra.mxu1 %v3084_v26  ;;  %v3126_v45 = vpop.permute.xlu0 %3125 }
 0xda5   : > { %7535 = vmatprep.subr.mxu1 %v3126_v45 }
 0xda6   : > { %7536 = vmatpush3.msra.mxu1 %v3078_v33 }
 0xda7   : > { %7537 = vmatprep.subr.mxu1 %v3124_v38 }
 0xda8   : > { %v3072_v46 = vpop.permute.xlu1 %3071  ;;  %7538 = vmatpush3.msra.mxu1 %v3076_v40  ;;  %v3120_v63 = vpop.permute.xlu0 %3119 }
 0xda9   : > { %7539 = vmatprep.subr.mxu1 %v3122_v7 }
 0xdaa   : > { %7540 = vmatpush3.msra.mxu1 %v3074_v43 }
 0xdab   : > { %7541 = vmatprep.subr.mxu1 %v3120_v63 }
 0xdac   : > { %v3112_v48 = vpop.permute.xlu1 %3111  ;;  %7542 = vmatpush3.msra.mxu1 %v3072_v46  ;;  %v3114_v50 = vpop.permute.xlu0 %3113 }
 0xdad   : > { %7543 = vmatprep.subr.mxu1 %v3114_v50  ;;  %v3381_v50 = vld [vmem:[%s10575_s23 + $0x8] sm:$0xff] }
 0xdae   : > { %7544 = vmatpush3.msk.msra.mxu1 %vm2830_vm9, %v9413_v6  ;;  %v3038_v6 = vld [vmem:[%s10572_s26 + $0x58] sm:$0xff] }
 0xdaf   : > { %7545 = vmatprep.subr.mxu1 %v3112_v48 }
 0xdb0   : > { %v3108_v51 = vpop.permute.xlu1 %3107  ;;  %7546 = vmatpush3.msk.msra.mxu1 %vm2830_vm9, %v9404_v4  ;;  %v3110_v53 = vpop.permute.xlu0 %3109  ;;  %v3035_v4 = vld [vmem:[%s10572_s26 + $0x40] sm:$0xff] }
 0xdb1   : > { %7547 = vmatprep.subr.mxu1 %v3110_v53  ;;  %v3556_v53 = vld [vmem:[%s10577_s0] sm:$0xff] }
 0xdb2   : > { %7548 = vmatpush3.msk.msra.mxu1 %vm2830_vm9, %v9397_v1  ;;  %v3032_v1 = vld [vmem:[%s10572_s26 + $0x28] sm:$0xff] }
 0xdb3   : > { %7549 = vmatprep.subr.mxu1 %v3108_v51  ;;  %v3474_v51 = vld [vmem:[%s10576_s10 + $0x8] sm:$0xff]  ;;  %s10595_s10 = smov 106  }
 0xdb4   : > { %v3160_v56 = vpop.permute.xlu1 %3159  ;;  %7550 = vmatpush3.msk.msra.mxu1 %vm2830_vm9, %v9390_v60  ;;  %v3162_v57 = vpop.permute.xlu0 %3161  ;;  %v3033_v60 = vld [vmem:[%s10572_s26 + $0x30] sm:$0xff]  ;;  %vm4161_vm9 = vcmask 785408  }
 0xdb5   : > { %3265 = vmatmul.mubr.f32.vlgmr.msra.gmra.mxu1 %v3027_v54  ;;  %7867 = vmatprep.subr.mxu0 %v3162_v57  ;;  %v3639_v54 = vld [vmem:[%s10578_s18] sm:$0xff] }
 0xdb6   : > { %7868 = vmatpush3.msra.mxu0 %v3162_v57  ;;  %3269 = vmatprep.mubr.f32.mxu1 %v3031_v55  ;;  %v3557_v55 = vld [vmem:[%s10577_s0 + $0x8] sm:$0xff]  ;;  %v3763_v57 = vld [vmem:[#allocation6 + $0x48] sm:$0xff]  ;;  %s10580_s0 = sld [smem:[#allocation36_spill]] }
 0xdb7   : > { %7869 = vmatprep.subr.mxu0 %v3160_v56 }
 0xdb8   : > { %7870 = vmatpush3.msra.mxu0 %v3160_v56  ;;  %v3158_v61 = vpop.permute.xlu0 %3157  ;;  %v3156_v62 = vpop.permute.xlu1 %3155  ;;  %v3640_v56 = vld [vmem:[%s10578_s18 + $0x8] sm:$0xff] }
 0xdb9   : > { %3270 = vmatmul.mubr.f32.gmra.mxu1 %v3030_v58  ;;  %7871 = vmatprep.subr.mxu0 %v3158_v61  ;;  %v3762_v58 = vld [vmem:[#allocation6 + $0x40] sm:$0xff] }
 0xdba   : > { %7872 = vmatpush3.msra.mxu0 %v3158_v61  ;;  %3274 = vmatprep.mubr.f32.mxu1 %v3034_v59  ;;  %v3761_v59 = vld [vmem:[#allocation6 + $0x38] sm:$0xff]  ;;  %v3760_v61 = vld [vmem:[#allocation6 + $0x30] sm:$0xff] }
 0xdbb   : > { %7873 = vmatprep.subr.mxu0 %v3156_v62 }
 0xdbc   : > { %7874 = vmatpush3.msra.mxu0 %v3156_v62  ;;  %v3758_v62 = vld [vmem:[#allocation6 + $0x20] sm:$0xff] }
 0xdbd   : > { %3275 = vmatmul.mubr.f32.gmra.mxu1 %v3033_v60  ;;  %7876 = vmatmul.mubr.msk.f32.vlgmr.msra.gmra.mxu0 %vm3187_vm1, %v3032_v1  ;;  %v3757_v60 = vld [vmem:[#allocation6 + $0x18] sm:$0xff]  ;;  %v3756_v1 = vld [vmem:[#allocation6 + $0x10] sm:$0xff] }
 0xdbe   : > { %3279 = vmatprep.mubr.f32.mxu1 %v3037_v2  ;;  %7878 = vmatprep.mubr.msk.f32.mxu0 %vm3187_vm1, %v3035_v4  ;;  %v3754_v2 = vld [vmem:[#allocation6] sm:$0xff] }
 0xdc1   : > { %3280 = vmatmul.mubr.f32.gmra.mxu1 %v3036_v5  ;;  %7879 = vmatmul.mubr.msk.f32.gmra.mxu0 %vm3187_vm1, %v3038_v6 }
 0xdc2   : > { %7889 = vmatprep.mubr.msk.f32.mxu1 %vm3187_vm1, %v3380_v8  ;;  %7900 = vmatprep.mubr.msk.f32.mxu0 %vm3187_vm1, %v3473_v9 }
 0xdc5   : > { %v3185_v16 = vpop.permute.xlu0 %3184  ;;  %v3180_v25 = vpop.permute.xlu1 %3179 }
 0xdc9   : > { %v3175_v30 = vpop.permute.xlu0 %3174  ;;  %v3170_v41 = vpop.permute.xlu1 %3169 }
 0xdcd   : > { %v3390_v4 = vpop.permute.xlu0 %3389  ;;  %v3385_v9 = vpop.permute.xlu1 %3384 }
 0xe75   : > { %v7551_v10 = vpop.f32.mrf.mxu1 }
 0xe77   : > { %v7552_v11 = vpop.f32.mrf.mxu1 }
 0xe78   : > { %v7553_v26 = vadd.f32 %v7552_v11, %v7551_v10 }
 0xe79   : > { %v7554_v12 = vpop.f32.mrf.mxu1 }
 0xe7a   : > { %v3267_v7 = vadd.f32 %v7553_v26, %v3170_v41 }
 0xe7b   : > { %v7555_v13 = vpop.f32.mrf.mxu1 }
 0xe7c   : > { %v7556_v23 = vadd.f32 %v7555_v13, %v7554_v12 }
 0xe7d   : > { %v7557_v14 = vpop.f32.mrf.mxu1  ;;  %v7877_v15 = vpop.f32.mrf.mxu0 }
 0xe7e   : > { %v3272_v34 = vadd.f32 %v7556_v23, %v3175_v30  ;;  %v3846_v23 = vld [vmem:[%s10580_s0] sm:$0xff] }
 0xe7f   : > { %v7558_v18 = vpop.f32.mrf.mxu1  ;;  %v3351_v19 = vpop.f32.mrf.mxu0 }
 0xe80   : > { %v7559_v20 = vadd.f32 %v7558_v18, %v7557_v14  ;;  %v3357_v33 = vadd.f32 %v7877_v15, %v3272_v34  ;;  %v3352_v45 = vadd.f32 %v3351_v19, %v3267_v7  ;;  %v3844_v14 = vld [vmem:[%s10579_s15] sm:$0xff] }
 0xe81   : > { %v7560_v0 = vpop.f32.mrf.mxu1  ;;  %v7880_v22 = vpop.f32.mrf.mxu0 }
 0xe82   : > { %v3277_v29 = vadd.f32 %v7559_v20, %v3180_v25  ;;  %v3371_v63 = vmax.f32 %v3357_v33, 0.0  ;;  %v3370_v48 = vmax.f32 %v3352_v45, 0.0  ;;  %v3942_v25 = vld [vmem:[%s10581_s1 + $0x8] sm:$0xff] }
 0xe83   : > { %v7561_v27 = vpop.f32.mrf.mxu1  ;;  %v3361_v32 = vpop.f32.mrf.mxu0 }
 0xe84   : > { %v7562_v28 = vadd.f32 %v7561_v27, %v7560_v0  ;;  %v3362_v40 = vadd.f32 %v3361_v32, %v3277_v29  ;;  %v3847_v0 = vld [vmem:[%s10580_s0 + $0x8] sm:$0xff]  ;;  %v4040_v27 = vld [vmem:[%s10582_s2] sm:$0xff]  ;;  %s10585_s0 = smov 11  }
 0xe85   : > { %v4041_v29 = vld [vmem:[%s10582_s2 + $0x8] sm:$0xff]  ;;  %s10587_s2 = smov 118  }
 0xe86   : > { %v3282_v36 = vadd.f32 %v7562_v28, %v3185_v16  ;;  %v3372_v46 = vmax.f32 %v3362_v40, 0.0  ;;  %v3941_v28 = vld [vmem:[%s10581_s1] sm:$0xff]  ;;  %s10586_s1 = smov 107  }
 0xe88   : > { %v3367_v38 = vadd.f32 %v7880_v22, %v3282_v36 }
 0xe8a   : > { %v3373_v43 = vmax.f32 %v3367_v38, 0.0 }
 0xe8c   : > { %7881 = vmatprep.subr.msk.mxu1 %vm9373_vm0, %v3373_v43  ;;  %7892 = vmatprep.subr.msk.mxu0 %vm9373_vm0, %v3373_v43 }
 0xe8d   : > { %7882 = vmatpush3.msk.msra.mxu1 %vm9373_vm0, %v3373_v43  ;;  %7893 = vmatpush3.msk.msra.mxu0 %vm9373_vm0, %v3373_v43 }
 0xe8e   : > { %7883 = vmatprep.subr.msk.mxu1 %vm9373_vm0, %v3372_v46  ;;  %7894 = vmatprep.subr.msk.mxu0 %vm9373_vm0, %v3372_v46 }
 0xe8f   : > { %7884 = vmatpush3.msk.msra.mxu1 %vm9373_vm0, %v3372_v46  ;;  %7895 = vmatpush3.msk.msra.mxu0 %vm9373_vm0, %v3372_v46 }
 0xe90   : > { %7885 = vmatprep.subr.msk.mxu1 %vm9373_vm0, %v3371_v63  ;;  %7896 = vmatprep.subr.msk.mxu0 %vm9373_vm0, %v3371_v63 }
 0xe91   : > { %7886 = vmatpush3.msk.msra.mxu1 %vm9373_vm0, %v3371_v63  ;;  %7897 = vmatpush3.msk.msra.mxu0 %vm9373_vm0, %v3371_v63 }
 0xe92   : > { %7887 = vmatprep.subr.msk.mxu1 %vm9373_vm0, %v3370_v48  ;;  %7898 = vmatprep.subr.msk.mxu0 %vm9373_vm0, %v3370_v48 }
 0xe93   : > { %7888 = vmatpush3.msk.msra.mxu1 %vm9373_vm0, %v3370_v48  ;;  %7899 = vmatpush3.msk.msra.mxu0 %vm9373_vm0, %v3370_v48 }
 0xe94   : > { %7890 = vmatmul.mubr.msk.f32.vlgmr.msra.gmra.mxu1 %vm3187_vm1, %v3381_v50  ;;  %7901 = vmatmul.mubr.msk.f32.vlgmr.msra.gmra.mxu0 %vm3187_vm1, %v3474_v51  ;;  %v3845_v50 = vld [vmem:[%s10579_s15 + $0x8] sm:$0xff] }
 0xe95   : > { %7903 = vmatprep.subr.msk.mxu1 %vm9373_vm0, %v3373_v43  ;;  %7914 = vmatprep.subr.msk.mxu0 %vm9373_vm0, %v3373_v43 }
 0xe96   : > { %7904 = vmatpush3.msk.msra.mxu1 %vm9373_vm0, %v3373_v43  ;;  %7915 = vmatpush3.msk.msra.mxu0 %vm9373_vm0, %v3373_v43 }
 0xe97   : > { %7905 = vmatprep.subr.msk.mxu1 %vm9373_vm0, %v3372_v46  ;;  %7916 = vmatprep.subr.msk.mxu0 %vm9373_vm0, %v3372_v46 }
 0xe98   : > { %7906 = vmatpush3.msk.msra.mxu1 %vm9373_vm0, %v3372_v46  ;;  %7917 = vmatpush3.msk.msra.mxu0 %vm9373_vm0, %v3372_v46 }
 0xe99   : > { %7907 = vmatprep.subr.msk.mxu1 %vm9373_vm0, %v3371_v63  ;;  %7918 = vmatprep.subr.msk.mxu0 %vm9373_vm0, %v3371_v63 }
 0xe9a   : > { %7908 = vmatpush3.msk.msra.mxu1 %vm9373_vm0, %v3371_v63  ;;  %7919 = vmatpush3.msk.msra.mxu0 %vm9373_vm0, %v3371_v63 }
 0xe9b   : > { %7909 = vmatprep.subr.msk.mxu1 %vm9373_vm0, %v3370_v48  ;;  %7920 = vmatprep.subr.msk.mxu0 %vm9373_vm0, %v3370_v48 }
 0xe9c   : > { %7910 = vmatpush3.msk.msra.mxu1 %vm9373_vm0, %v3370_v48  ;;  %7911 = vmatprep.mubr.msk.f32.mxu1 %vm3187_vm1, %v3556_v53 }
 0xe9d   : > { %7921 = vmatpush3.msk.msra.mxu0 %vm9373_vm0, %v3370_v48  ;;  %7922 = vmatprep.mubr.msk.f32.mxu0 %vm3187_vm1, %v3639_v54  ;;  %vm3746_vm0 = vcmask 195584  }
 0xe9e   : > { %7912 = vmatmul.mubr.msk.f32.vlgmr.msra.gmra.mxu1 %vm3187_vm1, %v3557_v55  ;;  %7923 = vmatmul.mubr.msk.f32.vlgmr.msra.gmra.mxu0 %vm3187_vm1, %v3640_v56 }
 0xe9f   : > { %7925 = vmatprep.subr.mxu1 %v3763_v57  ;;  %7945 = vmatprep.mubr.msk.f32.mxu1 %vm3764_vm7, %v9287_v17  ;;  %v3755_v17 = vld [vmem:[#allocation6 + $0x8] sm:$0xff] }
 0xea0   : > { %7926 = vmatpush3.msra.mxu1 %v3763_v57  ;;  %7952 = vmatprep.mubr.msk.f32.mxu0 %vm2607_vm4, %v3844_v14  ;;  %v4157_v14 = vld [vmem:[#allocation7 + $0x40] sm:$0xff] }
 0xea1   : > { %7927 = vmatprep.subr.mxu1 %v3762_v58 }
 0xea2   : > { %7928 = vmatpush3.msra.mxu1 %v3762_v58 }
 0xea3   : > { %7929 = vmatprep.subr.mxu1 %v3761_v59 }
 0xea4   : > { %7930 = vmatpush3.msra.mxu1 %v3761_v59 }
 0xea5   : > { %7931 = vmatprep.subr.mxu1 %v3760_v61 }
 0xea6   : > { %7932 = vmatpush3.msra.mxu1 %v3760_v61 }
 0xea7   : > { %7933 = vmatprep.subr.mxu1 %v3759_v42 }
 0xea8   : > { %7934 = vmatpush3.msra.mxu1 %v3759_v42 }
 0xea9   : > { %7935 = vmatprep.subr.mxu1 %v3758_v62 }
 0xeaa   : > { %7936 = vmatpush3.msra.mxu1 %v3758_v62 }
 0xeab   : > { %7937 = vmatprep.subr.mxu1 %v3757_v60 }
 0xeac   : > { %7938 = vmatpush3.msra.mxu1 %v3757_v60 }
 0xead   : > { %7939 = vmatprep.subr.mxu1 %v3756_v1 }
 0xeae   : > { %7940 = vmatpush3.msra.mxu1 %v3756_v1 }
 0xeaf   : > { %7941 = vmatprep.subr.mxu1 %v3755_v17 }
 0xeb0   : > { %7942 = vmatpush3.msra.mxu1 %v3755_v17 }
 0xeb1   : > { %7943 = vmatprep.subr.mxu1 %v3754_v2 }
 0xeb2   : > { %7944 = vmatpush3.msra.mxu1 %v3754_v2 }
 0xeb3   : > { %7946 = vmatmul.mubr.msk.f32.vlgmr.msra.gmra.mxu1 %vm3764_vm7, %v9293_v21 }
 0xf54   : > { %v7902_v5 = vpop.f32.mrf.mxu0  ;;  %v7891_v10 = vpop.f32.mrf.mxu1 }
 0xf55   : > { %v3553_v6 = vadd.f32 %v7902_v5, %v3390_v4  ;;  %v3470_v26 = vadd.f32 %v7891_v10, %v3390_v4 }
 0xf56   : > { %v3547_v8 = vpop.f32.mrf.mxu0  ;;  %v3464_v12 = vpop.f32.mrf.mxu1 }
 0xf57   : > { %3726 = vrot.lane.b32.xlu0 %v3553_v6, %s8515_s16  ;;  %v3548_v11 = vadd.f32 %v3547_v8, %v3385_v9  ;;  %v3465_v41 = vadd.f32 %v3464_v12, %v3385_v9  ;;  %v4159_v12 = vld [vmem:[#allocation7 + $0x50] sm:$0xff] }
 0xf5b   : > { %3724 = vrot.lane.b32.xlu0 %v3548_v11, %s8515_s16  ;;  %s8517_s16 = smov 72   ;;  %v4160_v11 = vld [vmem:[#allocation7 + $0x58] sm:$0xff] }
 0xf5e   : > { %v7913_v13 = vpop.f32.mrf.mxu1  ;;  %v7924_v21 = vpop.f32.mrf.mxu0 }
 0xf5f   : > { %v3636_v15 = vadd.f32 %v7913_v13, %v3390_v4  ;;  %v3719_v19 = vadd.f32 %v7924_v21, %v3390_v4  ;;  %v4158_v13 = vld [vmem:[#allocation7 + $0x48] sm:$0xff]  ;;  %v4155_v21 = vld [vmem:[#allocation7 + $0x30] sm:$0xff] }
 0xf60   : > { %v3630_v16 = vpop.f32.mrf.mxu1  ;;  %v3713_v20 = vpop.f32.mrf.mxu0 }
 0xf61   : > { %v3631_v18 = vadd.f32 %v3630_v16, %v3385_v9  ;;  %3734 = vrot.lane.b32.xlu1 %v3636_v15, %s8516_s3  ;;  %v3714_v22 = vadd.f32 %v3713_v20, %v3385_v9  ;;  %v4156_v15 = vld [vmem:[#allocation7 + $0x38] sm:$0xff]  ;;  %v4154_v16 = vld [vmem:[#allocation7 + $0x28] sm:$0xff]  ;;  %v4151_v20 = vld [vmem:[#allocation7 + $0x10] sm:$0xff] }
 0xf63   : > { %3732 = vrot.lane.b32.xlu0 %v3631_v18, %s8516_s3  ;;  %s10583_s3 = sld [smem:[#allocation35_spill]]  ;;  %v4153_v18 = vld [vmem:[#allocation7 + $0x20] sm:$0xff] }
 0xf65   : > { %3742 = vrot.lane.b32.xlu1 %v3719_v19, %s8517_s16  ;;  %v4152_v19 = vld [vmem:[#allocation7 + $0x18] sm:$0xff] }
 0xf67   : > { %3855 = vperm.xlu0 %8281, %v3847_v0   ;;  %v4150_v0 = vld [vmem:[#allocation7 + $0x8] sm:$0xff] }
 0xf69   : > { %3740 = vrot.lane.b32.xlu1 %v3714_v22, %s8517_s16  ;;  %s10584_s16 = sld [smem:[#allocation28_spill]]  ;;  %v3939_v51 = vld [vmem:[%s10583_s3] sm:$0xff]  ;;  %v3940_v54 = vld [vmem:[%s10583_s3 + $0x8] sm:$0xff]  ;;  %s10588_s3 = smov 126  }
 0xf6a   : > { %v4149_v22 = vld [vmem:[#allocation7] sm:$0xff] }
 0xf6b   : > { %3850 = vperm.xlu0 %8281, %v3846_v23  }
 0xf6d   : > { %3950 = vperm.xlu1 %8270, %v3942_v25  }
 0xf6f   : > { %4044 = vperm.xlu0 %8281, %v4040_v27   ;;  %v4038_v55 = vld [vmem:[%s10584_s16] sm:$0xff]  ;;  %v4039_v10 = vld [vmem:[%s10584_s16 + $0x8] sm:$0xff] }
 0xf71   : > { %3945 = vperm.xlu1 %8270, %v3941_v28  }
 0xf73   : > { %v7947_v63 = vpop.f32.mrf.mxu1 }
 0xf75   : > { %4049 = vperm.xlu1 %8270, %v4041_v29   ;;  %v3835_v53 = vpop.f32.mrf.mxu1 }
 0xfc9   : > { %v3727_v30 = vpop.permute.xlu0 %3726 }
 0xfca   : > { %v3748_v36 = vsel %vm3746_vm0, %v3470_v26, %v3727_v30 }
 0xfcd   : > { %v3725_v34 = vpop.permute.xlu0 %3724 }
 0xfce   : > { %v3747_v43 = vsel %vm3746_vm0, %v3465_v41, %v3725_v34 }
 0xfd3   : > { %v3735_v32 = vpop.permute.xlu1 %3734 }
 0xfd4   : > { %v3751_v38 = vsel %vm3749_vm15, %v3748_v36, %v3735_v32 }
 0xfd5   : > { %v3733_v33 = vpop.permute.xlu0 %3732 }
 0xfd6   : > { %v3750_v45 = vsel %vm3749_vm15, %v3747_v43, %v3733_v33 }
 0xfd7   : > { %v3743_v40 = vpop.permute.xlu1 %3742 }
 0xfd8   : > { %v9564_v7 = vsel %vm2012_vm14, %v3751_v38, %v3743_v40 }
 0xfd9   : > { %7948 = vmatprep.subr.mxu0 %v9564_v7 }
 0xfda   : > { %7949 = vmatpush3.msra.mxu0 %v9564_v7 }
 0xfdb   : > { %v3741_v46 = vpop.permute.xlu1 %3740 }
 0xfdc   : > { %v9569_v48 = vsel %vm2012_vm14, %v3750_v45, %v3741_v46 }
 0xfdd   : > { %7950 = vmatprep.subr.mxu0 %v9569_v48 }
 0xfde   : > { %7951 = vmatpush3.msra.mxu0 %v9569_v48 }
 0xfdf   : > { %7953 = vmatmul.mubr.msk.f32.vlgmr.msra.gmra.mxu0 %vm2607_vm4, %v3845_v50  ;;  %7955 = vmatprep.subr.mxu0 %v7947_v63 }
 0xfe0   : > { %7956 = vmatpush3.msra.mxu0 %v7947_v63  ;;  %7959 = vmatprep.mubr.msk.f32.mxu0 %vm2607_vm4, %v3939_v51 }
 0xfe1   : > { %7957 = vmatprep.subr.mxu0 %v3835_v53 }
 0xfe2   : > { %7958 = vmatpush3.msra.mxu0 %v3835_v53  ;;  %v3856_v56 = vpop.permute.xlu0 %3855 }
 0xfe3   : > { %7960 = vmatmul.mubr.msk.f32.vlgmr.msra.gmra.mxu0 %vm2607_vm4, %v3940_v54 }
 0xfe4   : > { %7966 = vmatprep.mubr.msk.f32.mxu0 %vm2607_vm4, %v4038_v55 }
 0xfe6   : > { %v3851_v42 = vpop.permute.xlu0 %3850 }
 0xfe8   : > { %v3951_v57 = vpop.permute.xlu1 %3950 }
 0xfea   : > { %v4045_v28 = vpop.permute.xlu0 %4044 }
 0xfec   : > { %v3946_v1 = vpop.permute.xlu1 %3945 }
 0xff0   : > { %v4050_v23 = vpop.permute.xlu1 %4049 }
0x109f   : > { %v7954_v58 = vpop.f32.mrf.mxu0 }
0x10a0   : > { %v3936_v62 = vadd.f32 %v7954_v58, %v3856_v56 }
0x10a1   : > { %v3930_v59 = vpop.f32.mrf.mxu0 }
0x10a2   : > { %v3931_v2 = vadd.f32 %v3930_v59, %v3851_v42 }
0x10a3   : > { %v7961_v61 = vpop.f32.mrf.mxu0 }
0x10a4   : > { %v4031_v60 = vadd.f32 %v7961_v61, %v3951_v57 }
0x10a5   : > { %v4025_v17 = vpop.f32.mrf.mxu0 }
0x10a6   : > { %v4035_v4 = vadd.f32 %v4031_v60, %v3936_v62  ;;  %v4026_v5 = vadd.f32 %v4025_v17, %v3946_v1  ;;  %v4260_v17 = vld [vmem:[%s10590_s5 + $0x8] sm:$0xff] }
0x10a7   : > { %4471 = vmatprep.mubr.f32.mxu1 %v4260_v17 }
0x10a8   : > { %v4037_v6 = vmax.f32 %v4035_v4, 0.0  ;;  %v4034_v8 = vadd.f32 %v4026_v5, %v3931_v2  ;;  %v4261_v2 = vld [vmem:[%s10590_s5 + $0x10] sm:$0xff]  ;;  %v4265_v4 = vld [vmem:[%s10593_s8] sm:$0xff]  ;;  %v4266_v5 = vld [vmem:[%s10593_s8 + $0x8] sm:$0xff]  ;;  %s10598_s8 = sld [smem:[#allocation46_spill]] }
0x10aa   : > { %v4036_v9 = vmax.f32 %v4034_v8, 0.0  ;;  %7962 = vmatprep.subr.mxu0 %v4037_v6 }
0x10ab   : > { %7963 = vmatpush3.msra.mxu0 %v4037_v6 }
0x10ac   : > { %7964 = vmatprep.subr.mxu0 %v4036_v9 }
0x10ad   : > { %7965 = vmatpush3.msra.mxu0 %v4036_v9 }
0x10ae   : > { %7967 = vmatmul.mubr.msk.f32.vlgmr.msra.gmra.mxu0 %vm2607_vm4, %v4039_v10  ;;  %7969 = vmatprep.subr.mxu0 %v4160_v11 }
0x10af   : > { %7970 = vmatpush3.msra.mxu0 %v4160_v11  ;;  %7993 = vmatprep.mubr.msk.f32.mxu0 %vm4161_vm9, %v9569_v48 }
0x10b0   : > { %7971 = vmatprep.subr.mxu0 %v4159_v12 }
0x10b1   : > { %7972 = vmatpush3.msra.mxu0 %v4159_v12 }
0x10b2   : > { %7973 = vmatprep.subr.mxu0 %v4158_v13 }
0x10b3   : > { %7974 = vmatpush3.msra.mxu0 %v4158_v13 }
0x10b4   : > { %7975 = vmatprep.subr.mxu0 %v4157_v14 }
0x10b5   : > { %7976 = vmatpush3.msra.mxu0 %v4157_v14 }
0x10b6   : > { %7977 = vmatprep.subr.mxu0 %v4156_v15 }
0x10b7   : > { %7978 = vmatpush3.msra.mxu0 %v4156_v15 }
0x10b8   : > { %7979 = vmatprep.subr.mxu0 %v4155_v21 }
0x10b9   : > { %7980 = vmatpush3.msra.mxu0 %v4155_v21 }
0x10ba   : > { %7981 = vmatprep.subr.mxu0 %v4154_v16 }
0x10bb   : > { %7982 = vmatpush3.msra.mxu0 %v4154_v16 }
0x10bc   : > { %7983 = vmatprep.subr.mxu0 %v4153_v18 }
0x10bd   : > { %7984 = vmatpush3.msra.mxu0 %v4153_v18 }
0x10be   : > { %7985 = vmatprep.subr.mxu0 %v4152_v19 }
0x10bf   : > { %7986 = vmatpush3.msra.mxu0 %v4152_v19 }
0x10c0   : > { %7987 = vmatprep.subr.mxu0 %v4151_v20 }
0x10c1   : > { %7988 = vmatpush3.msra.mxu0 %v4151_v20 }
0x10c2   : > { %7989 = vmatprep.subr.mxu0 %v4150_v0 }
0x10c3   : > { %7990 = vmatpush3.msra.mxu0 %v4150_v0 }
0x10c4   : > { %7991 = vmatprep.subr.mxu0 %v4149_v22 }
0x10c5   : > { %7992 = vmatpush3.msra.mxu0 %v4149_v22 }
0x10c6   : > { %7994 = vmatmul.mubr.msk.f32.vlgmr.msra.gmra.mxu0 %vm4161_vm9, %v9564_v7 }
0x116e   : > { %v7968_v25 = vpop.f32.mrf.mxu0 }
0x116f   : > { %v4130_v27 = vadd.f32 %v7968_v25, %v4050_v23 }
0x1170   : > { %v4124_v29 = vpop.f32.mrf.mxu0 }
0x1171   : > { %v7383_v30 = vmul.f32 -1.442695, %v4130_v27  ;;  %v4125_v32 = vadd.f32 %v4124_v29, %v4045_v28 }
0x1173   : > { %8282 = vpow2.f32 %v7383_v30  ;;  %v7382_v26 = vmul.f32 -1.442695, %v4125_v32 }
0x1175   : > { %8284 = vpow2.f32 %v7382_v26 }
0x1180   : > { %v8283_v34 = vpop.eup %8282 }
0x1181   : > { %v4140_v36 = vadd.f32 1.0, %v8283_v34 }
0x1182   : > { %v8285_v38 = vpop.eup %8284 }
0x1183   : > { %8286 = vrcp.f32 %v4140_v36  ;;  %v4139_v40 = vadd.f32 1.0, %v8285_v38 }
0x1185   : > { %8288 = vrcp.f32 %v4139_v40 }
0x1186   : > { %v7995_v50 = vpop.f32.mrf.mxu0 }
0x1188   : > { %v4240_v51 = vpop.f32.mrf.mxu0 }
0x1190   : > { %v8287_v41 = vpop.eup %8286 }
0x1191   : > { %v4146_v43 = vadd.f32 1.0, %v8287_v41  ;;  %v4259_v41 = vld [vmem:[%s10590_s5] sm:$0xff] }
0x1192   : > { %v8289_v33 = vpop.eup %8288 }
0x1193   : > { %v4145_v45 = vadd.f32 1.0, %v8289_v33  ;;  %v4148_v63 = vmul.f32 %v4146_v43, %v9564_v7  ;;  %v4263_v33 = vld [vmem:[%s10590_s5 + $0x20] sm:$0xff] }
0x1195   : > { %v4147_v46 = vmul.f32 %v4145_v45, %v9569_v48 }
0x1197   : > { %7996 = vmatprep.mubr.msk.f32.mxu0 %vm4161_vm9, %v4147_v46  ;;  %v4262_v46 = vld [vmem:[%s10590_s5 + $0x18] sm:$0xff] }
0x1198   : > { %7997 = vmatmul.mubr.msk.f32.gmra.mxu0 %vm4161_vm9, %v4148_v63  ;;  %vm10617_vm9 = vcmask 416768  }
0x1199   : > { %8007 = vmatprep.mubr.msk.f32.mxu0 %vm3187_vm1, %v4261_v2 }
0x1258   : > { %v7998_v53 = vpop.f32.mrf.mxu0 }
0x1259   : > { %4277 = vrot.lane.b32.xlu0 %v7998_v53, %s10585_s0 }
0x125a   : > { %v4250_v54 = vpop.f32.mrf.mxu0 }
0x125b   : > { %4275 = vrot.lane.b32.xlu1 %v4250_v54, %s10585_s0 }
0x125d   : > { %4273 = vrot.lane.b32.xlu0 %v7995_v50, %s10585_s0 }
0x125f   : > { %4271 = vrot.lane.b32.xlu1 %v4240_v51, %s10585_s0  ;;  %v4264_v51 = vld [vmem:[%s10590_s5 + $0x28] sm:$0xff]  ;;  %s10596_s5 = sld [smem:[#allocation26_spill]] }
0x12cb   : > { %v4278_v55 = vpop.permute.xlu0 %4277 }
0x12cc   : > { %v9612_v42 = vsel %vm2387_vm5, 0.0, %v4278_v55 }
0x12cd   : > { %v4276_v48 = vpop.permute.xlu1 %4275  ;;  %v4290_v62 = vsel %vm1790_vm8, %v9612_v42, 0.0 }
0x12ce   : > { %v9621_v60 = vsel %vm2387_vm5, 0.0, %v4276_v48 }
0x12cf   : > { %v4274_v56 = vpop.permute.xlu0 %4273  ;;  %v4289_v1 = vsel %vm1790_vm8, %v9621_v60, 0.0 }
0x12d0   : > { %v9596_v7 = vsel %vm2387_vm5, 0.0, %v4274_v56 }
0x12d1   : > { %v4288_v57 = vsel %vm1790_vm8, %v9596_v7, 0.0  ;;  %v4272_v58 = vpop.permute.xlu1 %4271 }
0x12d2   : > { %v9601_v59 = vsel %vm2387_vm5, 0.0, %v4272_v58  ;;  %4369 = vrot.lane.b32.xlu0 %v4288_v57, %s10586_s1  ;;  %4321 = vrot.lane.b32.xlu1 %v4288_v57, %s10587_s2 }
0x12d3   : > { %v4287_v61 = vsel %vm1790_vm8, %v9601_v59, 0.0 }
0x12d6   : > { %4319 = vrot.lane.b32.xlu1 %v4287_v61, %s10587_s2  ;;  %4367 = vrot.lane.b32.xlu0 %v4287_v61, %s10586_s1 }
0x12da   : > { %4309 = vrot.lane.b32.xlu1 %v4288_v57, %s10588_s3  ;;  %4357 = vrot.lane.b32.xlu0 %v4288_v57, %s10589_s4 }
0x12de   : > { %4307 = vrot.lane.b32.xlu1 %v4287_v61, %s10588_s3  ;;  %4355 = vrot.lane.b32.xlu0 %v4287_v61, %s10589_s4 }
0x12e2   : > { %4325 = vrot.lane.b32.xlu1 %v4290_v62, %s10587_s2  ;;  %4373 = vrot.lane.b32.xlu0 %v4290_v62, %s10586_s1 }
0x12e6   : > { %4313 = vrot.lane.b32.xlu1 %v4290_v62, %s10588_s3  ;;  %4361 = vrot.lane.b32.xlu0 %v4290_v62, %s10589_s4 }
0x12ea   : > { %4323 = vrot.lane.b32.xlu1 %v4289_v1, %s10587_s2  ;;  %4371 = vrot.lane.b32.xlu0 %v4289_v1, %s10586_s1 }
0x12ee   : > { %4301 = vrot.lane.b32.xlu1 %v4290_v62, %s10591_s6  ;;  %4349 = vrot.lane.b32.xlu0 %v4290_v62, %s10592_s7 }
0x12f2   : > { %4311 = vrot.lane.b32.xlu1 %v4289_v1, %s10588_s3  ;;  %4359 = vrot.lane.b32.xlu0 %v4289_v1, %s10589_s4 }
0x12f6   : > { %4297 = vrot.lane.b32.xlu1 %v4288_v57, %s10591_s6  ;;  %4345 = vrot.lane.b32.xlu0 %v4288_v57, %s10592_s7 }
0x12fa   : > { %4299 = vrot.lane.b32.xlu1 %v4289_v1, %s10591_s6  ;;  %4347 = vrot.lane.b32.xlu0 %v4289_v1, %s10592_s7 }
0x12fe   : > { %4295 = vrot.lane.b32.xlu1 %v4287_v61, %s10591_s6  ;;  %4343 = vrot.lane.b32.xlu0 %v4287_v61, %s10592_s7 }
0x1302   : > { %4335 = vrot.lane.b32.xlu1 %v4289_v1, %s10594_s9  ;;  %4337 = vrot.lane.b32.xlu0 %v4290_v62, %s10594_s9 }
0x1306   : > { %4331 = vrot.lane.b32.xlu1 %v4287_v61, %s10594_s9  ;;  %4333 = vrot.lane.b32.xlu0 %v4288_v57, %s10594_s9 }
0x130a   : > { %4383 = vrot.lane.b32.xlu1 %v4289_v1, %s10595_s10  ;;  %4385 = vrot.lane.b32.xlu0 %v4290_v62, %s10595_s10 }
0x130e   : > { %4379 = vrot.lane.b32.xlu1 %v4287_v61, %s10595_s10  ;;  %4381 = vrot.lane.b32.xlu0 %v4288_v57, %s10595_s10 }
0x1312   : > { %4393 = vperm.xlu1 %8270, %v4265_v4   ;;  %4398 = vperm.xlu0 %8281, %v4266_v5  }
0x1344   : > { %v4370_v6 = vpop.permute.xlu0 %4369  ;;  %v4322_v8 = vpop.permute.xlu1 %4321 }
0x1348   : > { %v4368_v9 = vpop.permute.xlu0 %4367  ;;  %v4320_v10 = vpop.permute.xlu1 %4319 }
0x134c   : > { %v4358_v11 = vpop.permute.xlu0 %4357  ;;  %v4310_v12 = vpop.permute.xlu1 %4309 }
0x1350   : > { %v4356_v13 = vpop.permute.xlu0 %4355  ;;  %v4308_v14 = vpop.permute.xlu1 %4307 }
0x1354   : > { %v4374_v15 = vpop.permute.xlu0 %4373  ;;  %v4326_v21 = vpop.permute.xlu1 %4325 }
0x1355   : > { %7635 = vmatprep.subr.mxu1 %v4374_v15 }
0x1356   : > { %7636 = vmatpush3.msra.mxu1 %v4326_v21  ;;  %v4724_v21 = vld [vmem:[%s10598_s8] sm:$0xff]  ;;  %s10600_s8 = sld [smem:[#allocation47_spill]] }
0x1358   : > { %v4362_v16 = vpop.permute.xlu0 %4361  ;;  %v4314_v18 = vpop.permute.xlu1 %4313 }
0x135c   : > { %v4372_v19 = vpop.permute.xlu0 %4371  ;;  %v4324_v20 = vpop.permute.xlu1 %4323 }
0x135d   : > { %7637 = vmatprep.subr.mxu1 %v4372_v19 }
0x135e   : > { %7638 = vmatpush3.msra.mxu1 %v4324_v20 }
0x135f   : > { %7639 = vmatprep.subr.mxu1 %v4370_v6 }
0x1360   : > { %v4350_v0 = vpop.permute.xlu0 %4349  ;;  %7640 = vmatpush3.msra.mxu1 %v4322_v8  ;;  %v4302_v22 = vpop.permute.xlu1 %4301 }
0x1361   : > { %7641 = vmatprep.subr.mxu1 %v4368_v9 }
0x1362   : > { %7642 = vmatpush3.msra.mxu1 %v4320_v10 }
0x1363   : > { %7643 = vmatprep.subr.mxu1 %v4362_v16 }
0x1364   : > { %v4360_v23 = vpop.permute.xlu0 %4359  ;;  %7644 = vmatpush3.msra.mxu1 %v4314_v18  ;;  %v4312_v25 = vpop.permute.xlu1 %4311 }
0x1365   : > { %7645 = vmatprep.subr.mxu1 %v4360_v23 }
0x1366   : > { %7646 = vmatpush3.msra.mxu1 %v4312_v25 }
0x1367   : > { %7647 = vmatprep.subr.mxu1 %v4358_v11 }
0x1368   : > { %v4346_v27 = vpop.permute.xlu0 %4345  ;;  %7648 = vmatpush3.msra.mxu1 %v4310_v12  ;;  %v4298_v28 = vpop.permute.xlu1 %4297 }
0x1369   : > { %7649 = vmatprep.subr.mxu1 %v4356_v13  ;;  %v4562_v13 = vld [vmem:[%s10596_s5 + $0x8] sm:$0xff] }
0x136a   : > { %7650 = vmatpush3.msra.mxu1 %v4308_v14 }
0x136b   : > { %7651 = vmatprep.subr.mxu1 %v4350_v0 }
0x136c   : > { %v4348_v29 = vpop.permute.xlu0 %4347  ;;  %7652 = vmatpush3.msra.mxu1 %v4302_v22  ;;  %v4300_v30 = vpop.permute.xlu1 %4299 }
0x136d   : > { %7653 = vmatprep.subr.mxu1 %v4348_v29 }
0x136e   : > { %7654 = vmatpush3.msra.mxu1 %v4300_v30 }
0x136f   : > { %7655 = vmatprep.subr.mxu1 %v4346_v27 }
0x1370   : > { %v4344_v32 = vpop.permute.xlu0 %4343  ;;  %7656 = vmatpush3.msra.mxu1 %v4298_v28  ;;  %v4296_v26 = vpop.permute.xlu1 %4295 }
0x1371   : > { %7657 = vmatprep.subr.mxu1 %v4344_v32 }
0x1372   : > { %7658 = vmatpush3.msra.mxu1 %v4296_v26 }
0x1374   : > { %v4338_v34 = vpop.permute.xlu0 %4337  ;;  %v4336_v36 = vpop.permute.xlu1 %4335 }
0x1375   : > { %7659 = vmatprep.subr.mxu1 %v4338_v34 }
0x1376   : > { %7660 = vmatpush3.msk.msra.mxu1 %vm1790_vm8, %v9612_v42 }
0x1377   : > { %7661 = vmatprep.subr.mxu1 %v4336_v36  ;;  %v4561_v36 = vld [vmem:[%s10596_s5] sm:$0xff] }
0x1378   : > { %v4334_v38 = vpop.permute.xlu0 %4333  ;;  %7662 = vmatpush3.msk.msra.mxu1 %vm1790_vm8, %v9621_v60  ;;  %v4332_v40 = vpop.permute.xlu1 %4331 }
0x1379   : > { %7663 = vmatprep.subr.mxu1 %v4334_v38 }
0x137a   : > { %7664 = vmatpush3.msk.msra.mxu1 %vm1790_vm8, %v9596_v7 }
0x137b   : > { %7665 = vmatprep.subr.mxu1 %v4332_v40 }
0x137c   : > { %v4386_v43 = vpop.permute.xlu0 %4385  ;;  %7666 = vmatpush3.msk.msra.mxu1 %vm1790_vm8, %v9601_v59  ;;  %v4384_v45 = vpop.permute.xlu1 %4383 }
0x137d   : > { %4472 = vmatmul.mubr.f32.vlgmr.msra.gmra.mxu1 %v4259_v41  ;;  %7999 = vmatprep.subr.mxu0 %v4386_v43 }
0x137e   : > { %8000 = vmatpush3.msra.mxu0 %v4386_v43  ;;  %4476 = vmatprep.mubr.f32.mxu1 %v4263_v33  ;;  %v4564_v33 = vld [vmem:[%s10596_s5 + $0x18] sm:$0xff] }
0x137f   : > { %8001 = vmatprep.subr.mxu0 %v4384_v45  ;;  %8010 = vmatprep.subr.mxu1 %v8501_v49 }
0x1380   : > { %v4382_v63 = vpop.permute.xlu0 %4381  ;;  %8002 = vmatpush3.msra.mxu0 %v4384_v45  ;;  %v4380_v50 = vpop.permute.xlu1 %4379 }
0x1381   : > { %4477 = vmatmul.mubr.f32.gmra.mxu1 %v4262_v46  ;;  %8003 = vmatprep.subr.mxu0 %v4382_v63  ;;  %v4563_v46 = vld [vmem:[%s10596_s5 + $0x10] sm:$0xff]  ;;  %s10619_s5 = smov 90  }
0x1382   : > { %8004 = vmatpush3.msra.mxu0 %v4382_v63  ;;  %8014 = vmatprep.mubr.msk.f32.mxu1 %vm8502_vm3, %v8501_v49 }
0x1383   : > { %8005 = vmatprep.subr.mxu0 %v4380_v50 }
0x1384   : > { %8006 = vmatpush3.msra.mxu0 %v4380_v50 }
0x1385   : > { %8008 = vmatmul.mubr.msk.f32.vlgmr.msra.gmra.mxu0 %vm3187_vm1, %v4264_v51  ;;  %4645 = vmatprep.subr.mxu0 %v8501_v49 }
0x1386   : > { %7396 = vmatprep.mubr.msk.f32.mxu0 %vm2607_vm4, %v4562_v13 }
0x138d   : > { %v4399_v7 = vpop.permute.xlu0 %4398  ;;  %v4394_v58 = vpop.permute.xlu1 %4393 }
0x143d   : > { %v7667_v53 = vpop.f32.mrf.mxu1 }
0x143f   : > { %v7668_v54 = vpop.f32.mrf.mxu1 }
0x1440   : > { %v7669_v48 = vadd.f32 %v7668_v54, %v7667_v53 }
0x1441   : > { %v7670_v55 = vpop.f32.mrf.mxu1 }
0x1442   : > { %v4474_v42 = vadd.f32 %v7669_v48, %v4394_v58 }
0x1443   : > { %v7671_v56 = vpop.f32.mrf.mxu1 }
0x1444   : > { %v7672_v57 = vadd.f32 %v7671_v56, %v7670_v55 }
0x1445   : > { %v8009_v59 = vpop.f32.mrf.mxu0 }
0x1446   : > { %v4479_v61 = vadd.f32 %v7672_v57, %v4399_v7 }
0x1447   : > { %v4548_v62 = vpop.f32.mrf.mxu0 }
0x1448   : > { %v4554_v60 = vadd.f32 %v8009_v59, %v4479_v61  ;;  %v4549_v1 = vadd.f32 %v4548_v62, %v4474_v42 }
0x144a   : > { %v4558_v17 = vmax.f32 %v4554_v60, 0.0  ;;  %v4557_v2 = vmax.f32 %v4549_v1, 0.0 }
0x144c   : > { %v4560_v4 = vsel %vm9218_vm6, %v4558_v17, 0.0  ;;  %v4559_v5 = vsel %vm9218_vm6, %v4557_v2, 0.0 }
0x144d   : > { %4571 = vrot.lane.b32.xlu0 %v4560_v4, %s10585_s0  ;;  %4569 = vrot.lane.b32.xlu1 %v4559_v5, %s10585_s0  ;;  %s10597_s0 = sld [smem:[#allocation25_spill]] }
0x1453   : > { %v4566_v14 = vld [vmem:[%s10597_s0 + $0x8] sm:$0xff]  ;;  %v4565_v15 = vld [vmem:[%s10597_s0] sm:$0xff]  ;;  %s10614_s0 = smov 110  }
0x14bf   : > { %v4572_v6 = vpop.permute.xlu0 %4571  ;;  %v4570_v8 = vpop.permute.xlu1 %4569 }
0x14c0   : > { %v9676_v9 = vsel %vm2387_vm5, 0.0, %v4572_v6  ;;  %v9679_v10 = vsel %vm2387_vm5, 0.0, %v4570_v8  ;;  %vm5040_vm5 = vcmask 916480  }
0x14c1   : > { %v4578_v11 = vsel %vm1790_vm8, %v9676_v9, 0.0  ;;  %v4577_v12 = vsel %vm1790_vm8, %v9679_v10, 0.0 }
0x14c2   : > { %4619 = vrot.lane.b32.xlu0 %v4578_v11, %s10586_s1  ;;  %4617 = vrot.lane.b32.xlu1 %v4577_v12, %s10586_s1  ;;  %s10601_s1 = sld [smem:[#allocation48_spill]] }
0x14c6   : > { %4613 = vrot.lane.b32.xlu0 %v4578_v11, %s10589_s4  ;;  %4611 = vrot.lane.b32.xlu1 %v4577_v12, %s10589_s4 }
0x14ca   : > { %4607 = vrot.lane.b32.xlu0 %v4578_v11, %s10592_s7  ;;  %4605 = vrot.lane.b32.xlu1 %v4577_v12, %s10592_s7  ;;  %s10603_s7 = sld [smem:[#allocation50_spill]] }
0x14ce   : > { %4601 = vrot.lane.b32.xlu0 %v4578_v11, %s10594_s9  ;;  %4599 = vrot.lane.b32.xlu1 %v4577_v12, %s10594_s9  ;;  %s10599_s9 = sld [smem:[#allocation38_spill]] }
0x14d2   : > { %4595 = vrot.lane.b32.xlu0 %v4578_v11, %s10587_s2  ;;  %4593 = vrot.lane.b32.xlu1 %v4577_v12, %s10587_s2  ;;  %s10602_s2 = sld [smem:[#allocation49_spill]] }
0x14d4   : > { %v5148_v38 = vld [vmem:[%s10599_s9 + $0x350] sm:$0xff]  ;;  %v5147_v41 = vld [vmem:[%s10599_s9 + $0x348] sm:$0xff]  ;;  %v5145_v43 = vld [vmem:[%s10599_s9 + $0x338] sm:$0xff] }
0x14d5   : > { %v5144_v45 = vld [vmem:[%s10599_s9 + $0x330] sm:$0xff]  ;;  %v5142_v63 = vld [vmem:[%s10599_s9 + $0x320] sm:$0xff]  ;;  %v5141_v50 = vld [vmem:[%s10599_s9 + $0x318] sm:$0xff] }
0x14d6   : > { %4589 = vrot.lane.b32.xlu0 %v4578_v11, %s10588_s3  ;;  %4587 = vrot.lane.b32.xlu1 %v4577_v12, %s10588_s3  ;;  %v5139_v51 = vld [vmem:[%s10599_s9 + $0x308] sm:$0xff]  ;;  %v5138_v53 = vld [vmem:[%s10599_s9 + $0x300] sm:$0xff] }
0x14d7   : > { %v5137_v54 = vld [vmem:[%s10599_s9 + $0x2f8] sm:$0xff]  ;;  %v5134_v48 = vld [vmem:[%s10599_s9 + $0x2e0] sm:$0xff]  ;;  %v5131_v7 = vld [vmem:[%s10599_s9 + $0x2c8] sm:$0xff] }
0x14d8   : > { %v5089_v55 = vld [vmem:[%s10599_s9 + $0x178] sm:$0xff]  ;;  %v5086_v56 = vld [vmem:[%s10599_s9 + $0x160] sm:$0xff]  ;;  %v5083_v57 = vld [vmem:[%s10599_s9 + $0x148] sm:$0xff] }
0x14d9   : > { %v5128_v58 = vld [vmem:[%s10599_s9 + $0x2b0] sm:$0xff]  ;;  %v5125_v61 = vld [vmem:[%s10599_s9 + $0x298] sm:$0xff]  ;;  %v5122_v62 = vld [vmem:[%s10599_s9 + $0x280] sm:$0xff] }
0x14da   : > { %4583 = vrot.lane.b32.xlu0 %v4578_v11, %s10591_s6  ;;  %4581 = vrot.lane.b32.xlu1 %v4577_v12, %s10591_s6  ;;  %v5080_v59 = vld [vmem:[%s10599_s9 + $0x130] sm:$0xff]  ;;  %v5077_v42 = vld [vmem:[%s10599_s9 + $0x118] sm:$0xff] }
0x14db   : > { %v5074_v60 = vld [vmem:[%s10599_s9 + $0x100] sm:$0xff]  ;;  %v5119_v1 = vld [vmem:[%s10599_s9 + $0x268] sm:$0xff]  ;;  %v5116_v2 = vld [vmem:[%s10599_s9 + $0x250] sm:$0xff] }
0x14dc   : > { %v5071_v17 = vld [vmem:[%s10599_s9 + $0xe8] sm:$0xff]  ;;  %v5068_v4 = vld [vmem:[%s10599_s9 + $0xd0] sm:$0xff]  ;;  %v5113_v5 = vld [vmem:[%s10599_s9 + $0x238] sm:$0xff] }
0x14dd   : > { %v5065_v6 = vld [vmem:[%s10599_s9 + $0xb8] sm:$0xff]  ;;  %v5110_v8 = vld [vmem:[%s10599_s9 + $0x220] sm:$0xff]  ;;  %v5056_v13 = vld [vmem:[%s10599_s9 + $0x70] sm:$0xff] }
0x14de   : > { %4625 = vrot.lane.b32.xlu0 %v4578_v11, %s10595_s10  ;;  %4623 = vrot.lane.b32.xlu1 %v4577_v12, %s10595_s10  ;;  %v5059_v11 = vld [vmem:[%s10599_s9 + $0x88] sm:$0xff]  ;;  %v5104_v12 = vld [vmem:[%s10599_s9 + $0x1f0] sm:$0xff]  ;;  %s10604_s10 = sld [smem:[#allocation44_spill]] }
0x14df   : > { %v5079_v24 = vld [vmem:[%s10599_s9 + $0x128] sm:$0xff] }
0x14e2   : > { %4636 = vperm.xlu0 %8281, %v4566_v14   ;;  %4631 = vperm.xlu1 %8270, %v4565_v15   ;;  %v5101_v14 = vld [vmem:[%s10599_s9 + $0x1d8] sm:$0xff] }
0x14e3   : > { %v5053_v15 = vld [vmem:[%s10599_s9 + $0x58] sm:$0xff] }
0x14e6   : > { %4728 = vperm.xlu0 %8281, %v4724_v21   ;;  %v5098_v21 = vld [vmem:[%s10599_s9 + $0x1c0] sm:$0xff] }
0x1534   : > { %v4620_v16 = vpop.permute.xlu0 %4619  ;;  %v4618_v18 = vpop.permute.xlu1 %4617 }
0x1535   : > { %4646 = vmatpush1.msra.mxu0 %v4620_v16  ;;  %v5050_v16 = vld [vmem:[%s10599_s9 + $0x40] sm:$0xff] }
0x1536   : > { %4647 = vmatprep.subr.mxu0 %v8501_v49 }
0x1537   : > { %4648 = vmatpush1.msra.mxu0 %v4618_v18  ;;  %v5095_v18 = vld [vmem:[%s10599_s9 + $0x1a8] sm:$0xff] }
0x1538   : > { %v4614_v19 = vpop.permute.xlu0 %4613  ;;  %4649 = vmatprep.subr.mxu0 %v8501_v49  ;;  %v4612_v20 = vpop.permute.xlu1 %4611 }
0x1539   : > { %4650 = vmatpush1.msra.mxu0 %v4614_v19  ;;  %v5047_v19 = vld [vmem:[%s10599_s9 + $0x28] sm:$0xff] }
0x153a   : > { %4651 = vmatprep.subr.mxu0 %v8501_v49 }
0x153b   : > { %4652 = vmatpush1.msra.mxu0 %v4612_v20  ;;  %v5092_v20 = vld [vmem:[%s10599_s9 + $0x190] sm:$0xff] }
0x153c   : > { %v4608_v0 = vpop.permute.xlu0 %4607  ;;  %4653 = vmatprep.subr.mxu0 %v8501_v49  ;;  %v4606_v22 = vpop.permute.xlu1 %4605 }
0x153d   : > { %4654 = vmatpush1.msra.mxu0 %v4608_v0  ;;  %v5044_v0 = vld [vmem:[%s10599_s9 + $0x10] sm:$0xff] }
0x153e   : > { %4655 = vmatprep.subr.mxu0 %v8501_v49 }
0x153f   : > { %4656 = vmatpush1.msra.mxu0 %v4606_v22  ;;  %v5149_v22 = vld [vmem:[%s10599_s9 + $0x358] sm:$0xff] }
0x1540   : > { %v4602_v23 = vpop.permute.xlu0 %4601  ;;  %4657 = vmatprep.subr.mxu0 %v8501_v49  ;;  %v4600_v25 = vpop.permute.xlu1 %4599 }
0x1541   : > { %4658 = vmatpush1.msra.mxu0 %v4602_v23  ;;  %v5146_v23 = vld [vmem:[%s10599_s9 + $0x340] sm:$0xff] }
0x1542   : > { %4659 = vmatprep.subr.mxu0 %v8501_v49 }
0x1543   : > { %4660 = vmatpush1.msra.mxu0 %v4600_v25  ;;  %v5143_v25 = vld [vmem:[%s10599_s9 + $0x328] sm:$0xff] }
0x1544   : > { %v4596_v27 = vpop.permute.xlu0 %4595  ;;  %4661 = vmatprep.subr.mxu0 %v8501_v49  ;;  %v4594_v28 = vpop.permute.xlu1 %4593 }
0x1545   : > { %4662 = vmatpush1.msra.mxu0 %v4596_v27  ;;  %v5140_v27 = vld [vmem:[%s10599_s9 + $0x310] sm:$0xff] }
0x1546   : > { %4663 = vmatprep.subr.mxu0 %v8501_v49 }
0x1547   : > { %4664 = vmatpush1.msra.mxu0 %v4594_v28 }
0x1548   : > { %v4590_v29 = vpop.permute.xlu0 %4589  ;;  %4665 = vmatprep.subr.mxu0 %v8501_v49  ;;  %v4588_v30 = vpop.permute.xlu1 %4587 }
0x1549   : > { %4666 = vmatpush1.msra.mxu0 %v4590_v29 }
0x154a   : > { %4667 = vmatprep.subr.mxu0 %v8501_v49 }
0x154b   : > { %4668 = vmatpush1.msra.mxu0 %v4588_v30 }
0x154c   : > { %v4584_v32 = vpop.permute.xlu0 %4583  ;;  %4669 = vmatprep.subr.mxu0 %v8501_v49  ;;  %v4582_v26 = vpop.permute.xlu1 %4581 }
0x154d   : > { %4670 = vmatpush1.msra.mxu0 %v4584_v32 }
0x154e   : > { %4671 = vmatprep.subr.mxu0 %v8501_v49 }
0x154f   : > { %4672 = vmatpush1.msra.mxu0 %v4582_v26 }
0x1550   : > { %4673 = vmatprep.subr.mxu0 %v8501_v49  ;;  %v4626_v34 = vpop.permute.xlu0 %4625  ;;  %v4624_v40 = vpop.permute.xlu1 %4623 }
0x1551   : > { %7394 = vmatpush1.msk.msra.mxu0 %vm1790_vm8, %v9676_v9  ;;  %v5062_v9 = vld [vmem:[%s10599_s9 + $0xa0] sm:$0xff] }
0x1552   : > { %4675 = vmatprep.subr.mxu0 %v8501_v49 }
0x1553   : > { %7395 = vmatpush1.msk.msra.mxu0 %vm1790_vm8, %v9679_v10  ;;  %v5107_v10 = vld [vmem:[%s10599_s9 + $0x208] sm:$0xff] }
0x1554   : > { %4705 = vmatprep.subr.mxu0 %v8501_v49 }
0x1555   : > { %4706 = vmatpush2.msra.mxu0 %v4626_v34 }
0x1556   : > { %4707 = vmatprep.subr.mxu0 %v8501_v49 }
0x1557   : > { %4708 = vmatpush2.msra.mxu0 %v4624_v40 }
0x1558   : > { %4710 = vmatmul.mubr.f32.vlgmr.msra.gmra.mxu0 %v4561_v36  ;;  %5247 = vmatprep.subr.mxu0 %v5148_v38 }
0x1559   : > { %5248 = vmatpush1.msra.mxu0 %v5147_v41  ;;  %7397 = vmatprep.mubr.msk.f32.mxu0 %vm2607_vm4, %v4564_v33  ;;  %v4725_v33 = vld [vmem:[%s10600_s8] sm:$0xff]  ;;  %s10605_s8 = sld [smem:[#allocation51_spill]] }
0x155a   : > { %5249 = vmatprep.subr.mxu0 %v5145_v43  ;;  %v4878_v43 = vld [vmem:[%s10602_s2] sm:$0xff]  ;;  %s8519_s2 = smov 32  }
0x155b   : > { %5250 = vmatpush1.msra.mxu0 %v5144_v45  ;;  %v4952_v45 = vld [vmem:[%s10603_s7] sm:$0xff]  ;;  %s8520_s7 = smov 112  }
0x155c   : > { %4715 = vmatmul.mubr.f32.gmra.mxu0 %v4563_v46  ;;  %5251 = vmatprep.subr.mxu0 %v5142_v63  ;;  %v5088_v46 = vld [vmem:[%s10599_s9 + $0x170] sm:$0xff]  ;;  %v5087_v63 = vld [vmem:[%s10599_s9 + $0x168] sm:$0xff] }
0x155d   : > { %5252 = vmatpush1.msra.mxu0 %v5141_v50  ;;  %5287 = vmatprep.mubr.f32.mxu0 %v8501_v49  ;;  %v4637_v30 = vpop.permute.xlu0 %4636  ;;  %v4632_v32 = vpop.permute.xlu1 %4631  ;;  %v5085_v50 = vld [vmem:[%s10599_s9 + $0x158] sm:$0xff] }
0x155e   : > { %5253 = vmatprep.subr.mxu0 %v5139_v51  ;;  %v5084_v51 = vld [vmem:[%s10599_s9 + $0x150] sm:$0xff] }
0x155f   : > { %5254 = vmatpush1.msra.mxu0 %v5138_v53  ;;  %v5082_v53 = vld [vmem:[%s10599_s9 + $0x140] sm:$0xff] }
0x1560   : > { %7412 = vmatmul.mubr.msk.f32.vlgmr.msra.gmra.mxu0 %vm3187_vm1, %v9126_v47  ;;  %7691 = vmatprep.subr.mxu0 %v5137_v54  ;;  %v5081_v54 = vld [vmem:[%s10599_s9 + $0x138] sm:$0xff] }
0x1561   : > { %7692 = vmatpush3.msra.mxu0 %v5089_v55  ;;  %7413 = vmatprep.mubr.msk.f32.mxu0 %vm9013_vm11, %v9135_v52  ;;  %v5078_v55 = vld [vmem:[%s10599_s9 + $0x120] sm:$0xff] }
0x1562   : > { %7693 = vmatprep.subr.mxu0 %v5134_v48  ;;  %v5076_v48 = vld [vmem:[%s10599_s9 + $0x110] sm:$0xff] }
0x1563   : > { %7694 = vmatpush3.msra.mxu0 %v5086_v56  ;;  %v5075_v56 = vld [vmem:[%s10599_s9 + $0x108] sm:$0xff] }
0x1564   : > { %7695 = vmatprep.subr.mxu0 %v5131_v7  ;;  %v5073_v7 = vld [vmem:[%s10599_s9 + $0xf8] sm:$0xff] }
0x1565   : > { %7696 = vmatpush3.msra.mxu0 %v5083_v57  ;;  %v5070_v57 = vld [vmem:[%s10599_s9 + $0xe0] sm:$0xff] }
0x1566   : > { %7697 = vmatprep.subr.mxu0 %v5128_v58 }
0x1567   : > { %7698 = vmatpush3.msra.mxu0 %v5080_v59  ;;  %v5069_v59 = vld [vmem:[%s10599_s9 + $0xd8] sm:$0xff] }
0x1568   : > { %7699 = vmatprep.subr.mxu0 %v5125_v61  ;;  %v5067_v61 = vld [vmem:[%s10599_s9 + $0xc8] sm:$0xff] }
0x1569   : > { %7700 = vmatpush3.msra.mxu0 %v5077_v42  ;;  %v5066_v42 = vld [vmem:[%s10599_s9 + $0xc0] sm:$0xff] }
0x156a   : > { %7701 = vmatprep.subr.mxu0 %v5122_v62  ;;  %v5064_v62 = vld [vmem:[%s10599_s9 + $0xb0] sm:$0xff] }
0x156b   : > { %7702 = vmatpush3.msra.mxu0 %v5074_v60 }
0x156c   : > { %7703 = vmatprep.subr.mxu0 %v5119_v1  ;;  %v5063_v1 = vld [vmem:[%s10599_s9 + $0xa8] sm:$0xff] }
0x156d   : > { %7704 = vmatpush3.msra.mxu0 %v5071_v17  ;;  %v5061_v17 = vld [vmem:[%s10599_s9 + $0x98] sm:$0xff] }
0x156e   : > { %7705 = vmatprep.subr.mxu0 %v5116_v2 }
0x156f   : > { %7706 = vmatpush3.msra.mxu0 %v5068_v4  ;;  %v5060_v4 = vld [vmem:[%s10599_s9 + $0x90] sm:$0xff] }
0x1570   : > { %7707 = vmatprep.subr.mxu0 %v5113_v5  ;;  %v5058_v5 = vld [vmem:[%s10599_s9 + $0x80] sm:$0xff] }
0x1571   : > { %7708 = vmatpush3.msra.mxu0 %v5065_v6 }
0x1572   : > { %7709 = vmatprep.subr.mxu0 %v5110_v8  ;;  %v5057_v8 = vld [vmem:[%s10599_s9 + $0x78] sm:$0xff] }
0x1573   : > { %7710 = vmatpush3.msra.mxu0 %v5062_v9 }
0x1574   : > { %7711 = vmatprep.subr.mxu0 %v5107_v10  ;;  %v5055_v10 = vld [vmem:[%s10599_s9 + $0x68] sm:$0xff] }
0x1575   : > { %7712 = vmatpush3.msra.mxu0 %v5059_v11  ;;  %v5054_v11 = vld [vmem:[%s10599_s9 + $0x60] sm:$0xff] }
0x1576   : > { %7713 = vmatprep.subr.mxu0 %v5104_v12  ;;  %v5052_v12 = vld [vmem:[%s10599_s9 + $0x50] sm:$0xff] }
0x1577   : > { %7714 = vmatpush3.msra.mxu0 %v5056_v13  ;;  %v5051_v13 = vld [vmem:[%s10599_s9 + $0x48] sm:$0xff] }
0x1578   : > { %7715 = vmatprep.subr.mxu0 %v5101_v14  ;;  %v5049_v14 = vld [vmem:[%s10599_s9 + $0x38] sm:$0xff] }
0x1579   : > { %7716 = vmatpush3.msra.mxu0 %v5053_v15 }
0x157a   : > { %7717 = vmatprep.subr.mxu0 %v5098_v21  ;;  %v5048_v21 = vld [vmem:[%s10599_s9 + $0x30] sm:$0xff] }
0x157b   : > { %7718 = vmatpush3.msra.mxu0 %v5050_v16 }
0x157c   : > { %7719 = vmatprep.subr.mxu0 %v5095_v18  ;;  %v5046_v18 = vld [vmem:[%s10599_s9 + $0x20] sm:$0xff] }
0x157d   : > { %7720 = vmatpush3.msra.mxu0 %v5047_v19 }
0x157e   : > { %7721 = vmatprep.subr.mxu0 %v5092_v20  ;;  %v5045_v20 = vld [vmem:[%s10599_s9 + $0x18] sm:$0xff] }
0x157f   : > { %7722 = vmatpush3.msra.mxu0 %v5044_v0  ;;  %v5043_v0 = vld [vmem:[%s10599_s9 + $0x8] sm:$0xff] }
0x1580   : > { %7414 = vmatmul.mubr.msk.f32.vlgmr.msra.gmra.mxu0 %vm9025_vm2, %v9128_v31  ;;  %8038 = vmatprep.subr.mxu0 %v8501_v49 }
0x1581   : > { %8039 = vmatpush3.msra.mxu0 %v5149_v22  ;;  %8046 = vmatprep.mubr.msk.f32.mxu0 %vm8502_vm3, %v8501_v49  ;;  %v5042_v22 = vld [vmem:[%s10599_s9] sm:$0xff] }
0x1582   : > { %8040 = vmatprep.subr.mxu0 %v8501_v49 }
0x1583   : > { %8041 = vmatpush3.msra.mxu0 %v5146_v23  ;;  %v5136_v23 = vld [vmem:[%s10599_s9 + $0x2f0] sm:$0xff] }
0x1584   : > { %8042 = vmatprep.subr.mxu0 %v8501_v49 }
0x1585   : > { %8043 = vmatpush3.msra.mxu0 %v5143_v25  ;;  %v5135_v25 = vld [vmem:[%s10599_s9 + $0x2e8] sm:$0xff] }
0x1586   : > { %8044 = vmatprep.subr.mxu0 %v8501_v49 }
0x1587   : > { %8045 = vmatpush3.msra.mxu0 %v5140_v27  ;;  %v5133_v27 = vld [vmem:[%s10599_s9 + $0x2d8] sm:$0xff] }
0x1588   : > { %8047 = vmatmul.mubr.msk.f32.vlgmr.msra.gmra.mxu0 %vm3187_vm1, %v9126_v47  ;;  %v4804_v47 = vld [vmem:[%s10601_s1] sm:$0xff]  ;;  %s8518_s1 = smov 80  }
0x1589   : > { %5509 = vmatprep.mubr.f32.mxu0 %v8501_v49 }
0x1618   : > { %v4711_v28 = vpop.f32.mrf.mxu0 }
0x1619   : > { %v4712_v34 = vadd.f32 %v4711_v28, %v4632_v32  ;;  %v5132_v28 = vld [vmem:[%s10599_s9 + $0x2d0] sm:$0xff]  ;;  %v5127_v32 = vld [vmem:[%s10599_s9 + $0x2a8] sm:$0xff] }
0x161a   : > { %v4713_v29 = vpop.f32.mrf.mxu0 }
0x161b   : > { %v4720_v41 = vmax.f32 %v4712_v34, 0.0  ;;  %v5130_v29 = vld [vmem:[%s10599_s9 + $0x2c0] sm:$0xff]  ;;  %v5124_v34 = vld [vmem:[%s10599_s9 + $0x290] sm:$0xff] }
0x161c   : > { %v4716_v26 = vpop.f32.mrf.mxu0 }
0x161d   : > { %v4717_v36 = vadd.f32 %v4716_v26, %v4637_v30  ;;  %v5129_v30 = vld [vmem:[%s10599_s9 + $0x2b8] sm:$0xff]  ;;  %v5126_v26 = vld [vmem:[%s10599_s9 + $0x2a0] sm:$0xff] }
0x161e   : > { %v4718_v38 = vpop.f32.mrf.mxu0 }
0x161f   : > { %v4721_v40 = vmax.f32 %v4717_v36, 0.0  ;;  %v5123_v36 = vld [vmem:[%s10599_s9 + $0x288] sm:$0xff]  ;;  %v5121_v38 = vld [vmem:[%s10599_s9 + $0x278] sm:$0xff] }
0x1620   : > { %v9846_v58 = vpop.f32.mrf.mxu0 }
0x1621   : > { %8011 = vmatpush3.msk.msra.mxu1 %vm9218_vm6, %v4721_v40 }
0x1622   : > { %8012 = vmatprep.subr.mxu1 %v8501_v49  ;;  %v9852_v60 = vpop.f32.mrf.mxu0 }
0x1623   : > { %8013 = vmatpush3.msk.msra.mxu1 %vm9218_vm6, %v4720_v41 }
0x1624   : > { %8015 = vmatmul.mubr.msk.f32.vlgmr.msra.gmra.mxu1 %vm2607_vm4, %v4725_v33  ;;  %8017 = vmatprep.subr.mxu1 %v8501_v49  ;;  %v5117_v33 = vld [vmem:[%s10599_s9 + $0x258] sm:$0xff] }
0x1625   : > { %8018 = vmatpush3.msk.msra.mxu1 %vm9218_vm6, %v4721_v40  ;;  %8021 = vmatprep.mubr.msk.f32.mxu1 %vm8502_vm3, %v8501_v49 }
0x1626   : > { %8019 = vmatprep.subr.mxu1 %v8501_v49 }
0x1627   : > { %8020 = vmatpush3.msk.msra.mxu1 %vm9218_vm6, %v4720_v41 }
0x1628   : > { %8022 = vmatmul.mubr.msk.f32.vlgmr.msra.gmra.mxu1 %vm2607_vm4, %v4804_v47  ;;  %8024 = vmatprep.subr.mxu1 %v8501_v49  ;;  %v5115_v47 = vld [vmem:[%s10599_s9 + $0x248] sm:$0xff] }
0x1629   : > { %8025 = vmatpush3.msk.msra.mxu1 %vm9218_vm6, %v4721_v40  ;;  %8028 = vmatprep.mubr.msk.f32.mxu1 %vm8502_vm3, %v8501_v49 }
0x162a   : > { %8026 = vmatprep.subr.mxu1 %v8501_v49 }
0x162b   : > { %8027 = vmatpush3.msk.msra.mxu1 %vm9218_vm6, %v4720_v41 }
0x162c   : > { %8029 = vmatmul.mubr.msk.f32.vlgmr.msra.gmra.mxu1 %vm2607_vm4, %v4878_v43  ;;  %8031 = vmatprep.subr.mxu1 %v8501_v49  ;;  %v5114_v43 = vld [vmem:[%s10599_s9 + $0x240] sm:$0xff] }
0x162d   : > { %8032 = vmatpush3.msk.msra.mxu1 %vm9218_vm6, %v4721_v40  ;;  %8035 = vmatprep.mubr.msk.f32.mxu1 %vm8502_vm3, %v8501_v49  ;;  %v5120_v40 = vld [vmem:[%s10599_s9 + $0x270] sm:$0xff] }
0x162e   : > { %8033 = vmatprep.subr.mxu1 %v8501_v49 }
0x162f   : > { %8034 = vmatpush3.msk.msra.mxu1 %vm9218_vm6, %v4720_v41  ;;  %v5118_v41 = vld [vmem:[%s10599_s9 + $0x260] sm:$0xff]  ;;  %vm5441_vm6 = vcmask 64512  }
0x1630   : > { %8036 = vmatmul.mubr.msk.f32.vlgmr.msra.gmra.mxu1 %vm2607_vm4, %v4952_v45  ;;  %5152 = vmatprep.subr.mxu1 %v5088_v46  ;;  %v5112_v45 = vld [vmem:[%s10599_s9 + $0x230] sm:$0xff]  ;;  %v5111_v46 = vld [vmem:[%s10599_s9 + $0x228] sm:$0xff] }
0x1631   : > { %5153 = vmatpush1.msra.mxu1 %v5087_v63  ;;  %7410 = vmatprep.mubr.msk.f32.mxu1 %vm9013_vm11, %v9135_v52  ;;  %v5072_v52 = vld [vmem:[%s10599_s9 + $0xf0] sm:$0xff]  ;;  %v5109_v63 = vld [vmem:[%s10599_s9 + $0x218] sm:$0xff] }
0x1632   : > { %5154 = vmatprep.subr.mxu1 %v5085_v50  ;;  %v5108_v50 = vld [vmem:[%s10599_s9 + $0x210] sm:$0xff] }
0x1633   : > { %5155 = vmatpush1.msra.mxu1 %v5084_v51  ;;  %v5106_v51 = vld [vmem:[%s10599_s9 + $0x200] sm:$0xff] }
0x1634   : > { %5156 = vmatprep.subr.mxu1 %v5082_v53  ;;  %v5105_v53 = vld [vmem:[%s10599_s9 + $0x1f8] sm:$0xff] }
0x1635   : > { %5157 = vmatpush1.msra.mxu1 %v5081_v54  ;;  %v5103_v54 = vld [vmem:[%s10599_s9 + $0x1e8] sm:$0xff] }
0x1636   : > { %5158 = vmatprep.subr.mxu1 %v5079_v24  ;;  %v5102_v24 = vld [vmem:[%s10599_s9 + $0x1e0] sm:$0xff] }
0x1637   : > { %5159 = vmatpush1.msra.mxu1 %v5078_v55  ;;  %v5100_v55 = vld [vmem:[%s10599_s9 + $0x1d0] sm:$0xff] }
0x1638   : > { %5160 = vmatprep.subr.mxu1 %v5076_v48  ;;  %v5099_v48 = vld [vmem:[%s10599_s9 + $0x1c8] sm:$0xff] }
0x1639   : > { %5161 = vmatpush1.msra.mxu1 %v5075_v56  ;;  %v5097_v56 = vld [vmem:[%s10599_s9 + $0x1b8] sm:$0xff] }
0x163a   : > { %5162 = vmatprep.subr.mxu1 %v5073_v7  ;;  %v5096_v7 = vld [vmem:[%s10599_s9 + $0x1b0] sm:$0xff] }
0x163b   : > { %5163 = vmatpush1.msra.mxu1 %v5072_v52  ;;  %v5094_v52 = vld [vmem:[%s10599_s9 + $0x1a0] sm:$0xff] }
0x163c   : > { %5164 = vmatprep.subr.mxu1 %v5070_v57  ;;  %v5093_v57 = vld [vmem:[%s10599_s9 + $0x198] sm:$0xff] }
0x163d   : > { %5165 = vmatpush1.msra.mxu1 %v5069_v59  ;;  %v5091_v59 = vld [vmem:[%s10599_s9 + $0x188] sm:$0xff] }
0x163e   : > { %5166 = vmatprep.subr.mxu1 %v5067_v61  ;;  %v5090_v61 = vld [vmem:[%s10599_s9 + $0x180] sm:$0xff]  ;;  %s10623_s9 = sld [smem:[#allocation40_spill]] }
0x163f   : > { %5167 = vmatpush1.msra.mxu1 %v5066_v42 }
0x1640   : > { %5168 = vmatprep.subr.mxu1 %v5064_v62  ;;  %v7723_v2 = vpop.f32.mrf.mxu0 }
0x1641   : > { %5169 = vmatpush1.msra.mxu1 %v5063_v1  ;;  %v4729_v1 = vpop.permute.xlu0 %4728 }
0x1642   : > { %5170 = vmatprep.subr.mxu1 %v5061_v17  ;;  %v7724_v6 = vpop.f32.mrf.mxu0 }
0x1643   : > { %v7725_v9 = vadd.f32 %v7724_v6, %v7723_v2  ;;  %5171 = vmatpush1.msra.mxu1 %v5060_v4 }
0x1644   : > { %5172 = vmatprep.subr.mxu1 %v5058_v5 }
0x1645   : > { %5173 = vmatpush1.msra.mxu1 %v5057_v8 }
0x1646   : > { %5174 = vmatprep.subr.mxu1 %v5055_v10 }
0x1647   : > { %5175 = vmatpush1.msra.mxu1 %v5054_v11 }
0x1648   : > { %5176 = vmatprep.subr.mxu1 %v5052_v12  ;;  %v5430_v15 = vpop.f32.mrf.mxu0  ;;  %v5744_v12 = vld [vmem:[%s10604_s10] sm:$0xff]  ;;  %s10606_s10 = sld [smem:[#allocation45_spill]] }
0x1649   : > { %v9865_v16 = vadd.f32 %v7725_v9, %v5430_v15  ;;  %5177 = vmatpush1.msra.mxu1 %v5051_v13  ;;  %v5587_v13 = vld [vmem:[%s10605_s8] sm:$0xff]  ;;  %s10607_s8 = sld [smem:[#allocation39_spill]] }
0x164a   : > { %5178 = vmatprep.subr.mxu1 %v5049_v14  ;;  %v8048_v19 = vpop.f32.mrf.mxu0 }
0x164b   : > { %5179 = vmatpush1.msra.mxu1 %v5048_v21  ;;  %v5586_v19 = vld [vmem:[%s8770_s30] sm:$0xff] }
0x164c   : > { %5180 = vmatprep.subr.mxu1 %v5046_v18 }
0x164d   : > { %5181 = vmatpush1.msra.mxu1 %v5045_v20 }
0x164e   : > { %5182 = vmatprep.subr.mxu1 %v5043_v0 }
0x164f   : > { %5183 = vmatpush1.msra.mxu1 %v5042_v22 }
0x1650   : > { %5184 = vmatprep.subr.mxu1 %v5136_v23 }
0x1651   : > { %5185 = vmatpush2.msra.mxu1 %v5135_v25 }
0x1652   : > { %5186 = vmatprep.subr.mxu1 %v5133_v27 }
0x1653   : > { %5187 = vmatpush2.msra.mxu1 %v5132_v28 }
0x1654   : > { %5188 = vmatprep.subr.mxu1 %v5130_v29 }
0x1655   : > { %5189 = vmatpush2.msra.mxu1 %v5129_v30 }
0x1656   : > { %5190 = vmatprep.subr.mxu1 %v5127_v32 }
0x1657   : > { %5191 = vmatpush2.msra.mxu1 %v5126_v26 }
0x1658   : > { %5192 = vmatprep.subr.mxu1 %v5124_v34 }
0x1659   : > { %5193 = vmatpush2.msra.mxu1 %v5123_v36 }
0x165a   : > { %5194 = vmatprep.subr.mxu1 %v5121_v38 }
0x165b   : > { %5195 = vmatpush2.msra.mxu1 %v5120_v40 }
0x165c   : > { %5196 = vmatprep.subr.mxu1 %v5118_v41 }
0x165d   : > { %5197 = vmatpush2.msra.mxu1 %v5117_v33 }
0x165e   : > { %5198 = vmatprep.subr.mxu1 %v5115_v47 }
0x165f   : > { %5199 = vmatpush2.msra.mxu1 %v5114_v43 }
0x1660   : > { %5200 = vmatprep.subr.mxu1 %v5112_v45 }
0x1661   : > { %5201 = vmatpush2.msra.mxu1 %v5111_v46 }
0x1662   : > { %5202 = vmatprep.subr.mxu1 %v5109_v63 }
0x1663   : > { %5203 = vmatpush2.msra.mxu1 %v5108_v50  ;;  %v5743_v50 = vld [vmem:[%s10606_s10] sm:$0xff]  ;;  %s10613_s10 = smov 109  }
0x1664   : > { %5204 = vmatprep.subr.mxu1 %v5106_v51  ;;  %v5964_v51 = vld [vmem:[%s10607_s8 + $0x170] sm:$0xff] }
0x1665   : > { %5205 = vmatpush2.msra.mxu1 %v5105_v53 }
0x1666   : > { %5206 = vmatprep.subr.mxu1 %v5103_v54 }
0x1667   : > { %5207 = vmatpush2.msra.mxu1 %v5102_v24  ;;  %v5963_v24 = vld [vmem:[%s10607_s8 + $0x168] sm:$0xff] }
0x1668   : > { %5208 = vmatprep.subr.mxu1 %v5100_v55 }
0x1669   : > { %5209 = vmatpush2.msra.mxu1 %v5099_v48  ;;  %v5961_v48 = vld [vmem:[%s10607_s8 + $0x158] sm:$0xff] }
0x166a   : > { %5210 = vmatprep.subr.mxu1 %v5097_v56 }
0x166b   : > { %5211 = vmatpush2.msra.mxu1 %v5096_v7  ;;  %v5960_v7 = vld [vmem:[%s10607_s8 + $0x150] sm:$0xff] }
0x166c   : > { %5212 = vmatprep.subr.mxu1 %v5094_v52  ;;  %v5958_v52 = vld [vmem:[%s10607_s8 + $0x140] sm:$0xff] }
0x166d   : > { %5213 = vmatpush2.msra.mxu1 %v5093_v57 }
0x166e   : > { %5214 = vmatprep.subr.mxu1 %v5091_v59  ;;  %v5957_v59 = vld [vmem:[%s10607_s8 + $0x138] sm:$0xff] }
0x166f   : > { %5215 = vmatpush2.msra.mxu1 %v5090_v61  ;;  %v6036_v61 = vld [vmem:[%s10607_s8 + $0x3b0] sm:$0xff] }
0x1670   : > { %7411 = vmatmul.mubr.msk.f32.vlgmr.msra.gmra.mxu1 %vm9025_vm2, %v9128_v31  ;;  %v5435_v31 = vld [vmem:[%s8775_s14] sm:$0xff] }
0x1671   : > { %5660 = vmatprep.mubr.f32.mxu1 %v8501_v49 }
0x16e4   : > { %v4800_v42 = vpop.f32.mrf.mxu1 }
0x16e5   : > { %v4801_v22 = vadd.f32 %v4800_v42, %v4729_v1  ;;  %v5955_v42 = vld [vmem:[%s10607_s8 + $0x128] sm:$0xff] }
0x16e6   : > { %v8016_v62 = vpop.f32.mrf.mxu1 }
0x16e7   : > { %v6035_v62 = vld [vmem:[%s10607_s8 + $0x3a8] sm:$0xff] }
0x16e8   : > { %v4874_v17 = vpop.f32.mrf.mxu1 }
0x16e9   : > { %v4875_v2 = vadd.f32 %v4874_v17, %v4729_v1  ;;  %v6033_v17 = vld [vmem:[%s10607_s8 + $0x398] sm:$0xff] }
0x16ea   : > { %v8023_v4 = vpop.f32.mrf.mxu1 }
0x16eb   : > { %5027 = vrot.lane.b32.xlu1 %v4875_v2, %s8518_s1  ;;  %v5952_v2 = vld [vmem:[%s10607_s8 + $0x110] sm:$0xff]  ;;  %s10608_s1 = smov 19  }
0x16ec   : > { %v4948_v5 = vpop.f32.mrf.mxu1  ;;  %v6032_v4 = vld [vmem:[%s10607_s8 + $0x390] sm:$0xff] }
0x16ed   : > { %v4949_v6 = vadd.f32 %v4948_v5, %v4729_v1  ;;  %v5951_v5 = vld [vmem:[%s10607_s8 + $0x108] sm:$0xff] }
0x16ee   : > { %v8030_v8 = vpop.f32.mrf.mxu1 }
0x16ef   : > { %5031 = vrot.lane.b32.xlu0 %v4949_v6, %s8519_s2  ;;  %v6030_v6 = vld [vmem:[%s10607_s8 + $0x380] sm:$0xff]  ;;  %v5949_v8 = vld [vmem:[%s10607_s8 + $0xf8] sm:$0xff]  ;;  %s10610_s2 = smov 91  }
0x16f0   : > { %v5022_v9 = vpop.f32.mrf.mxu1 }
0x16f1   : > { %v5023_v10 = vadd.f32 %v5022_v9, %v4729_v1  ;;  %v5954_v1 = vld [vmem:[%s10607_s8 + $0x120] sm:$0xff]  ;;  %v6029_v9 = vld [vmem:[%s10607_s8 + $0x378] sm:$0xff] }
0x16f2   : > { %v8037_v11 = vpop.f32.mrf.mxu1 }
0x16f3   : > { %5438 = vperm.xlu0 %8281, %v5435_v31   ;;  %5035 = vrot.lane.b32.xlu1 %v5023_v10, %s8520_s7  ;;  %v5948_v31 = vld [vmem:[%s10607_s8 + $0xf0] sm:$0xff]  ;;  %v6027_v10 = vld [vmem:[%s10607_s8 + $0x368] sm:$0xff]  ;;  %v5946_v11 = vld [vmem:[%s10607_s8 + $0xe0] sm:$0xff]  ;;  %s10612_s7 = smov 92  }
0x16f7   : > { %5747 = vperm.xlu0 %8281, %v5744_v12   ;;  %5590 = vperm.xlu1 %8270, %v5587_v13   ;;  %v6026_v12 = vld [vmem:[%s10607_s8 + $0x360] sm:$0xff]  ;;  %v5945_v13 = vld [vmem:[%s10607_s8 + $0xd8] sm:$0xff] }
0x1730   : > { %v5218_v14 = vpop.f32.mrf.mxu1 }
0x1731   : > { %v5290_v18 = vadd.f32 %v9846_v58, %v5218_v14  ;;  %v5434_v58 = vld [vmem:[%s8780_s19] sm:$0xff]  ;;  %v6024_v14 = vld [vmem:[%s10607_s8 + $0x350] sm:$0xff] }
0x1732   : > { %v5220_v15 = vpop.f32.mrf.mxu1 }
0x1733   : > { %v5292_v21 = vadd.f32 %v9852_v60, %v5220_v15  ;;  %v5943_v15 = vld [vmem:[%s10607_s8 + $0xc8] sm:$0xff] }
0x1735   : > { %5626 = vmatprep.subr.mxu1 %v5292_v21  ;;  %v6023_v21 = vld [vmem:[%s10607_s8 + $0x348] sm:$0xff] }
0x1736   : > { %5627 = vmatpush1.msra.mxu1 %v5290_v18  ;;  %v5942_v18 = vld [vmem:[%s10607_s8 + $0xc0] sm:$0xff] }
0x1737   : > { %7418 = vmatmul.mubr.msk.f32.vlgmr.msra.gmra.mxu1 %vm5441_vm6, %v5586_v19 }
0x1738   : > { %5817 = vmatprep.mubr.f32.mxu1 %v8501_v49 }
0x175d   : > { %v5028_v20 = vpop.permute.xlu1 %5027 }
0x175e   : > { %v9923_v27 = vsel %vm3764_vm7, %v4801_v22, %v5028_v20  ;;  %v5939_v22 = vld [vmem:[%s10607_s8 + $0xa8] sm:$0xff] }
0x1761   : > { %v5032_v0 = vpop.permute.xlu0 %5031 }
0x1762   : > { %v5039_v23 = vsel %vm3187_vm1, %v5028_v20, %v5032_v0  ;;  %v5940_v20 = vld [vmem:[%s10607_s8 + $0xb0] sm:$0xff]  ;;  %vm10609_vm1 = vcmask 154624  }
0x1763   : > { %v6020_v0 = vld [vmem:[%s10607_s8 + $0x330] sm:$0xff]  ;;  %vm10611_vm7 = vmmov %vm10609_vm1 }
0x1764   : > { %vm10615_vm0 = vmmov %vm10609_vm1 }
0x1765   : > { %v9916_v25 = vpop.permute.xlu1 %5035  ;;  %vm10616_vm15 = vmmov %vm10615_vm0 }
0x1766   : > { %v9919_v60 = vsel %vm5040_vm5, %v5039_v23, %v9916_v25  ;;  %v6018_v23 = vld [vmem:[%s10607_s8 + $0x320] sm:$0xff]  ;;  %vm10618_vm5 = vmmov %vm10615_vm0 }
0x1767   : > { %5475 = vmatprep.subr.mxu0 %v9919_v60 }
0x1768   : > { %5476 = vmatpush1.msra.mxu0 %v9923_v27 }
0x1769   : > { %7416 = vmatmul.mubr.msk.f32.vlgmr.msra.gmra.mxu0 %vm5441_vm6, %v5434_v58  ;;  %8049 = vmatprep.subr.mxu0 %v8501_v49 }
0x176a   : > { %8050 = vmatpush3.msra.mxu0 %v9916_v25  ;;  %8051 = vmatprep.mubr.msk.f32.mxu0 %vm8502_vm3, %v8501_v49 }
0x176b   : > { %8054 = vmatprep.subr.mxu0 %v8501_v49 }
0x176d   : > { %8052 = vmatmul.mubr.msk.f32.vlgmr.msra.gmra.mxu0 %vm5441_vm6, %v5434_v58  ;;  %v5937_v58 = vld [vmem:[%s10607_s8 + $0x98] sm:$0xff] }
0x176e   : > { %8055 = vmatpush3.msra.mxu0 %v9865_v16  ;;  %8056 = vmatprep.mubr.msk.f32.mxu0 %vm8502_vm3, %v8501_v49  ;;  %v5439_v29 = vpop.permute.xlu0 %5438 }
0x176f   : > { %8059 = vmatprep.subr.mxu0 %v8501_v49 }
0x1771   : > { %8057 = vmatmul.mubr.msk.f32.vlgmr.msra.gmra.mxu0 %vm5441_vm6, %v5586_v19  ;;  %v6021_v19 = vld [vmem:[%s10607_s8 + $0x338] sm:$0xff] }
0x1772   : > { %8061 = vmatprep.mubr.msk.f32.mxu0 %vm8502_vm3, %v8501_v49  ;;  %v5591_v26 = vpop.permute.xlu1 %5590 }
0x17f7   : > { %v5662_v28 = vpop.f32.mrf.mxu1 }
0x17f8   : > { %v5663_v36 = vadd.f32 %v5662_v28, %v5591_v26  ;;  %v6017_v28 = vld [vmem:[%s10607_s8 + $0x318] sm:$0xff] }
0x17f9   : > { %v5664_v30 = vpop.f32.mrf.mxu1 }
0x17fa   : > { %v5665_v38 = vadd.f32 %v5664_v30, %v5591_v26  ;;  %v6015_v30 = vld [vmem:[%s10607_s8 + $0x308] sm:$0xff] }
0x1829   : > { %v5511_v32 = vpop.f32.mrf.mxu0 }
0x182a   : > { %v5512_v34 = vadd.f32 %v5511_v32, %v5439_v29  ;;  %v5934_v32 = vld [vmem:[%s10607_s8 + $0x80] sm:$0xff] }
0x182b   : > { %v5513_v16 = vpop.f32.mrf.mxu0 }
0x182c   : > { %v5514_v40 = vadd.f32 %v5513_v16, %v5439_v29  ;;  %v5737_v41 = vadd.f32 %v5663_v36, %v5512_v34  ;;  %v5933_v34 = vld [vmem:[%s10607_s8 + $0x78] sm:$0xff]  ;;  %v5931_v36 = vld [vmem:[%s10607_s8 + $0x68] sm:$0xff]  ;;  %v5930_v16 = vld [vmem:[%s10607_s8 + $0x60] sm:$0xff] }
0x182d   : > { %v5582_v33 = vpop.f32.mrf.mxu0 }
0x182e   : > { %v5738_v47 = vadd.f32 %v5665_v38, %v5514_v40  ;;  %v5740_v46 = vmax.f32 %v5737_v41, 0.0  ;;  %v5583_v53 = vadd.f32 %v5582_v33, %v5439_v29  ;;  %v5936_v29 = vld [vmem:[%s10607_s8 + $0x90] sm:$0xff]  ;;  %v5927_v40 = vld [vmem:[%s10607_s8 + $0x48] sm:$0xff]  ;;  %v5925_v41 = vld [vmem:[%s10607_s8 + $0x38] sm:$0xff] }
0x182f   : > { %v8053_v43 = vpop.f32.mrf.mxu0  ;;  %v5928_v38 = vld [vmem:[%s10607_s8 + $0x50] sm:$0xff] }
0x1830   : > { %v5741_v45 = vmax.f32 %v5738_v47, 0.0  ;;  %v5924_v33 = vld [vmem:[%s10607_s8 + $0x30] sm:$0xff]  ;;  %v5922_v47 = vld [vmem:[%s10607_s8 + $0x20] sm:$0xff]  ;;  %v5921_v43 = vld [vmem:[%s10607_s8 + $0x18] sm:$0xff] }
0x1831   : > { %v5733_v63 = vpop.f32.mrf.mxu0 }
0x1832   : > { %v5734_v54 = vadd.f32 %v5733_v63, %v5591_v26  ;;  %5783 = vmatprep.subr.mxu1 %v5741_v45  ;;  %v6014_v26 = vld [vmem:[%s10607_s8 + $0x300] sm:$0xff]  ;;  %v5919_v45 = vld [vmem:[%s10607_s8 + $0x8] sm:$0xff]  ;;  %v6012_v63 = vld [vmem:[%s10607_s8 + $0x2f0] sm:$0xff] }
0x1833   : > { %5784 = vmatpush1.msra.mxu1 %v5740_v46  ;;  %v8058_v55 = vpop.f32.mrf.mxu0  ;;  %v5918_v46 = vld [vmem:[%s10607_s8] sm:$0xff] }
0x1834   : > { %v5739_v56 = vadd.f32 %v5734_v54, %v5583_v53  ;;  %7420 = vmatmul.mubr.msk.f32.vlgmr.msra.gmra.mxu1 %vm5441_vm6, %v5743_v50  ;;  %6044 = vmatprep.subr.mxu1 %v5964_v51  ;;  %v6009_v51 = vld [vmem:[%s10607_s8 + $0x2d8] sm:$0xff]  ;;  %v6008_v53 = vld [vmem:[%s10607_s8 + $0x2d0] sm:$0xff]  ;;  %v6006_v54 = vld [vmem:[%s10607_s8 + $0x2c0] sm:$0xff] }
0x1835   : > { %6045 = vmatpush1.msra.mxu1 %v5963_v24  ;;  %6108 = vmatprep.mubr.f32.mxu1 %v9919_v60  ;;  %v6005_v24 = vld [vmem:[%s10607_s8 + $0x2b8] sm:$0xff]  ;;  %v6003_v55 = vld [vmem:[%s10607_s8 + $0x2a8] sm:$0xff] }
0x1836   : > { %v5742_v57 = vmax.f32 %v5739_v56, 0.0  ;;  %6046 = vmatprep.subr.mxu1 %v5961_v48  ;;  %v6002_v48 = vld [vmem:[%s10607_s8 + $0x2a0] sm:$0xff]  ;;  %v6000_v56 = vld [vmem:[%s10607_s8 + $0x290] sm:$0xff] }
0x1837   : > { %6047 = vmatpush1.msra.mxu1 %v5960_v7  ;;  %v5999_v7 = vld [vmem:[%s10607_s8 + $0x288] sm:$0xff] }
0x1838   : > { %8060 = vmatpush3.msra.mxu0 %v5742_v57  ;;  %6048 = vmatprep.subr.mxu1 %v5958_v52  ;;  %v5997_v52 = vld [vmem:[%s10607_s8 + $0x278] sm:$0xff]  ;;  %v5996_v57 = vld [vmem:[%s10607_s8 + $0x270] sm:$0xff] }
0x1839   : > { %8062 = vmatmul.mubr.msk.f32.vlgmr.msra.gmra.mxu0 %vm5441_vm6, %v5743_v50  ;;  %6049 = vmatpush1.msra.mxu1 %v5957_v59  ;;  %v6011_v50 = vld [vmem:[%s10607_s8 + $0x2e8] sm:$0xff]  ;;  %v5994_v59 = vld [vmem:[%s10607_s8 + $0x260] sm:$0xff] }
0x183a   : > { %6137 = vmatprep.subr.mxu0 %v6036_v61  ;;  %6050 = vmatprep.subr.mxu1 %v5955_v42  ;;  %v5993_v61 = vld [vmem:[%s10607_s8 + $0x258] sm:$0xff]  ;;  %v5991_v42 = vld [vmem:[%s10607_s8 + $0x248] sm:$0xff] }
0x183b   : > { %6138 = vmatpush1.msra.mxu0 %v6035_v62  ;;  %6051 = vmatpush1.msra.mxu1 %v5954_v1  ;;  %v5990_v62 = vld [vmem:[%s10607_s8 + $0x240] sm:$0xff]  ;;  %v5988_v1 = vld [vmem:[%s10607_s8 + $0x230] sm:$0xff] }
0x183c   : > { %6139 = vmatprep.subr.mxu0 %v6033_v17  ;;  %6052 = vmatprep.subr.mxu1 %v5952_v2  ;;  %v5987_v17 = vld [vmem:[%s10607_s8 + $0x228] sm:$0xff]  ;;  %v5985_v2 = vld [vmem:[%s10607_s8 + $0x218] sm:$0xff] }
0x183d   : > { %6140 = vmatpush1.msra.mxu0 %v6032_v4  ;;  %6053 = vmatpush1.msra.mxu1 %v5951_v5  ;;  %v5984_v4 = vld [vmem:[%s10607_s8 + $0x210] sm:$0xff]  ;;  %v5982_v5 = vld [vmem:[%s10607_s8 + $0x200] sm:$0xff] }
0x183e   : > { %6141 = vmatprep.subr.mxu0 %v6030_v6  ;;  %6054 = vmatprep.subr.mxu1 %v5949_v8  ;;  %v5981_v6 = vld [vmem:[%s10607_s8 + $0x1f8] sm:$0xff]  ;;  %v5979_v8 = vld [vmem:[%s10607_s8 + $0x1e8] sm:$0xff] }
0x183f   : > { %6142 = vmatpush1.msra.mxu0 %v6029_v9  ;;  %6055 = vmatpush1.msra.mxu1 %v5948_v31  ;;  %v5978_v9 = vld [vmem:[%s10607_s8 + $0x1e0] sm:$0xff]  ;;  %v5976_v31 = vld [vmem:[%s10607_s8 + $0x1d0] sm:$0xff] }
0x1840   : > { %6143 = vmatprep.subr.mxu0 %v6027_v10  ;;  %6056 = vmatprep.subr.mxu1 %v5946_v11  ;;  %v5975_v10 = vld [vmem:[%s10607_s8 + $0x1c8] sm:$0xff]  ;;  %v5973_v11 = vld [vmem:[%s10607_s8 + $0x1b8] sm:$0xff] }
0x1841   : > { %6144 = vmatpush1.msra.mxu0 %v6026_v12  ;;  %6057 = vmatpush1.msra.mxu1 %v5945_v13  ;;  %v5972_v12 = vld [vmem:[%s10607_s8 + $0x1b0] sm:$0xff]  ;;  %v5970_v13 = vld [vmem:[%s10607_s8 + $0x1a0] sm:$0xff] }
0x1842   : > { %6145 = vmatprep.subr.mxu0 %v6024_v14  ;;  %6058 = vmatprep.subr.mxu1 %v5943_v15  ;;  %v5969_v14 = vld [vmem:[%s10607_s8 + $0x198] sm:$0xff]  ;;  %v5967_v15 = vld [vmem:[%s10607_s8 + $0x188] sm:$0xff] }
0x1843   : > { %6146 = vmatpush1.msra.mxu0 %v6023_v21  ;;  %6059 = vmatpush1.msra.mxu1 %v5942_v18  ;;  %v5966_v21 = vld [vmem:[%s10607_s8 + $0x180] sm:$0xff]  ;;  %v6013_v18 = vld [vmem:[%s10607_s8 + $0x2f8] sm:$0xff] }
0x1844   : > { %6147 = vmatprep.subr.mxu0 %v6021_v19  ;;  %6060 = vmatprep.subr.mxu1 %v5940_v20  ;;  %v5965_v19 = vld [vmem:[%s10607_s8 + $0x178] sm:$0xff]  ;;  %v6010_v20 = vld [vmem:[%s10607_s8 + $0x2e0] sm:$0xff] }
0x1845   : > { %6148 = vmatpush1.msra.mxu0 %v6020_v0  ;;  %6061 = vmatpush1.msra.mxu1 %v5939_v22  ;;  %v5962_v0 = vld [vmem:[%s10607_s8 + $0x160] sm:$0xff]  ;;  %v6007_v22 = vld [vmem:[%s10607_s8 + $0x2c8] sm:$0xff] }
0x1846   : > { %6149 = vmatprep.subr.mxu0 %v6018_v23  ;;  %6062 = vmatprep.subr.mxu1 %v5937_v58  ;;  %v5959_v23 = vld [vmem:[%s10607_s8 + $0x148] sm:$0xff]  ;;  %v6004_v58 = vld [vmem:[%s10607_s8 + $0x2b0] sm:$0xff] }
0x1847   : > { %6150 = vmatpush1.msra.mxu0 %v6017_v28  ;;  %6063 = vmatpush1.msra.mxu1 %v5936_v29  ;;  %v5956_v28 = vld [vmem:[%s10607_s8 + $0x130] sm:$0xff]  ;;  %v6001_v29 = vld [vmem:[%s10607_s8 + $0x298] sm:$0xff] }
0x1848   : > { %6151 = vmatprep.subr.mxu0 %v6015_v30  ;;  %6064 = vmatprep.subr.mxu1 %v5934_v32  ;;  %v5953_v30 = vld [vmem:[%s10607_s8 + $0x118] sm:$0xff]  ;;  %v5998_v32 = vld [vmem:[%s10607_s8 + $0x280] sm:$0xff] }
0x1849   : > { %6152 = vmatpush1.msra.mxu0 %v6014_v26  ;;  %6185 = vmatprep.mubr.f32.mxu0 %v8501_v49  ;;  %v5950_v26 = vld [vmem:[%s10607_s8 + $0x100] sm:$0xff] }
0x184a   : > { %6065 = vmatpush1.msra.mxu1 %v5933_v34  ;;  %7425 = vmatmul.mubr.msk.f32.vlgmr.msra.gmra.mxu0 %vm6038_vm13, %v9916_v25  ;;  %v5995_v34 = vld [vmem:[%s10607_s8 + $0x268] sm:$0xff] }
0x184b   : > { %6066 = vmatprep.subr.mxu1 %v5931_v36  ;;  %6191 = vmatprep.mubr.f32.mxu0 %v8501_v49  ;;  %v5947_v36 = vld [vmem:[%s10607_s8 + $0xe8] sm:$0xff] }
0x184c   : > { %6067 = vmatpush1.msra.mxu1 %v5930_v16  ;;  %7737 = vmatprep.subr.mxu0 %v6013_v18  ;;  %v5992_v16 = vld [vmem:[%s10607_s8 + $0x250] sm:$0xff] }
0x184d   : > { %6068 = vmatprep.subr.mxu1 %v5928_v38  ;;  %7738 = vmatpush3.msra.mxu0 %v5965_v19  ;;  %v5944_v38 = vld [vmem:[%s10607_s8 + $0xd0] sm:$0xff] }
0x184e   : > { %6069 = vmatpush1.msra.mxu1 %v5927_v40  ;;  %7739 = vmatprep.subr.mxu0 %v6010_v20  ;;  %v5989_v40 = vld [vmem:[%s10607_s8 + $0x238] sm:$0xff] }
0x184f   : > { %6070 = vmatprep.subr.mxu1 %v5925_v41  ;;  %7740 = vmatpush3.msra.mxu0 %v5962_v0  ;;  %v5941_v41 = vld [vmem:[%s10607_s8 + $0xb8] sm:$0xff] }
0x1850   : > { %6071 = vmatpush1.msra.mxu1 %v5924_v33  ;;  %7741 = vmatprep.subr.mxu0 %v6007_v22  ;;  %v5986_v33 = vld [vmem:[%s10607_s8 + $0x220] sm:$0xff] }
0x1851   : > { %6072 = vmatprep.subr.mxu1 %v5922_v47  ;;  %7742 = vmatpush3.msra.mxu0 %v5959_v23  ;;  %v5938_v47 = vld [vmem:[%s10607_s8 + $0xa0] sm:$0xff]  ;;  %v6031_v23 = vld [vmem:[%s10607_s8 + $0x388] sm:$0xff] }
0x1852   : > { %6073 = vmatpush1.msra.mxu1 %v5921_v43  ;;  %7743 = vmatprep.subr.mxu0 %v6004_v58  ;;  %v5983_v43 = vld [vmem:[%s10607_s8 + $0x208] sm:$0xff]  ;;  %v6034_v22 = vld [vmem:[%s10607_s8 + $0x3a0] sm:$0xff]  ;;  %v6028_v58 = vld [vmem:[%s10607_s8 + $0x370] sm:$0xff] }
0x1853   : > { %6074 = vmatprep.subr.mxu1 %v5919_v45  ;;  %7744 = vmatpush3.msra.mxu0 %v5956_v28  ;;  %v5935_v45 = vld [vmem:[%s10607_s8 + $0x88] sm:$0xff]  ;;  %v6025_v28 = vld [vmem:[%s10607_s8 + $0x358] sm:$0xff] }
0x1854   : > { %6075 = vmatpush1.msra.mxu1 %v5918_v46  ;;  %7745 = vmatprep.subr.mxu0 %v6001_v29  ;;  %v5980_v46 = vld [vmem:[%s10607_s8 + $0x1f0] sm:$0xff] }
0x1855   : > { %6076 = vmatprep.subr.mxu1 %v6012_v63  ;;  %7746 = vmatpush3.msra.mxu0 %v5953_v30  ;;  %v5932_v63 = vld [vmem:[%s10607_s8 + $0x70] sm:$0xff] }
0x1856   : > { %6077 = vmatpush2.msra.mxu1 %v6011_v50  ;;  %7747 = vmatprep.subr.mxu0 %v5998_v32  ;;  %v5977_v50 = vld [vmem:[%s10607_s8 + $0x1d8] sm:$0xff]  ;;  %v6016_v29 = vld [vmem:[%s10607_s8 + $0x310] sm:$0xff] }
0x1857   : > { %6078 = vmatprep.subr.mxu1 %v6009_v51  ;;  %7748 = vmatpush3.msra.mxu0 %v5950_v26  ;;  %v5929_v51 = vld [vmem:[%s10607_s8 + $0x58] sm:$0xff] }
0x1858   : > { %6079 = vmatpush2.msra.mxu1 %v6008_v53  ;;  %7749 = vmatprep.subr.mxu0 %v5995_v34  ;;  %v5974_v53 = vld [vmem:[%s10607_s8 + $0x1c0] sm:$0xff] }
0x1859   : > { %6080 = vmatprep.subr.mxu1 %v6006_v54  ;;  %7750 = vmatpush3.msra.mxu0 %v5947_v36  ;;  %v5926_v54 = vld [vmem:[%s10607_s8 + $0x40] sm:$0xff] }
0x185a   : > { %6081 = vmatpush2.msra.mxu1 %v6005_v24  ;;  %7751 = vmatprep.subr.mxu0 %v5992_v16  ;;  %v5971_v24 = vld [vmem:[%s10607_s8 + $0x1a8] sm:$0xff] }
0x185b   : > { %6082 = vmatprep.subr.mxu1 %v6003_v55  ;;  %7752 = vmatpush3.msra.mxu0 %v5944_v38  ;;  %v5923_v55 = vld [vmem:[%s10607_s8 + $0x28] sm:$0xff] }
0x185c   : > { %6083 = vmatpush2.msra.mxu1 %v6002_v48  ;;  %7753 = vmatprep.subr.mxu0 %v5989_v40  ;;  %v5968_v48 = vld [vmem:[%s10607_s8 + $0x190] sm:$0xff] }
0x185d   : > { %6084 = vmatprep.subr.mxu1 %v6000_v56  ;;  %7754 = vmatpush3.msra.mxu0 %v5941_v41  ;;  %v5920_v56 = vld [vmem:[%s10607_s8 + $0x10] sm:$0xff] }
0x185e   : > { %6085 = vmatpush2.msra.mxu1 %v5999_v7  ;;  %7755 = vmatprep.subr.mxu0 %v5986_v33  ;;  %v6037_v7 = vld [vmem:[%s10607_s8 + $0x3b8] sm:$0xff] }
0x185f   : > { %6086 = vmatprep.subr.mxu1 %v5997_v52  ;;  %7756 = vmatpush3.msra.mxu0 %v5938_v47  ;;  %v5748_v52 = vpop.permute.xlu0 %5747 }
0x1860   : > { %6087 = vmatpush2.msra.mxu1 %v5996_v57  ;;  %7757 = vmatprep.subr.mxu0 %v5983_v43 }
0x1861   : > { %6088 = vmatprep.subr.mxu1 %v5994_v59  ;;  %7758 = vmatpush3.msra.mxu0 %v5935_v45 }
0x1862   : > { %6089 = vmatpush2.msra.mxu1 %v5993_v61  ;;  %7759 = vmatprep.subr.mxu0 %v5980_v46 }
0x1863   : > { %6090 = vmatprep.subr.mxu1 %v5991_v42  ;;  %7760 = vmatpush3.msra.mxu0 %v5932_v63 }
0x1864   : > { %6091 = vmatpush2.msra.mxu1 %v5990_v62  ;;  %7761 = vmatprep.subr.mxu0 %v5977_v50 }
0x1865   : > { %6092 = vmatprep.subr.mxu1 %v5988_v1  ;;  %7762 = vmatpush3.msra.mxu0 %v5929_v51 }
0x1866   : > { %6093 = vmatpush2.msra.mxu1 %v5987_v17  ;;  %7763 = vmatprep.subr.mxu0 %v5974_v53 }
0x1867   : > { %6094 = vmatprep.subr.mxu1 %v5985_v2  ;;  %7764 = vmatpush3.msra.mxu0 %v5926_v54 }
0x1868   : > { %6095 = vmatpush2.msra.mxu1 %v5984_v4  ;;  %7765 = vmatprep.subr.mxu0 %v5971_v24 }
0x1869   : > { %6096 = vmatprep.subr.mxu1 %v5982_v5  ;;  %7766 = vmatpush3.msra.mxu0 %v5923_v55 }
0x186a   : > { %6097 = vmatpush2.msra.mxu1 %v5981_v6  ;;  %7767 = vmatprep.subr.mxu0 %v5968_v48 }
0x186b   : > { %6098 = vmatprep.subr.mxu1 %v5979_v8  ;;  %7768 = vmatpush3.msra.mxu0 %v5920_v56 }
0x186c   : > { %6099 = vmatpush2.msra.mxu1 %v5978_v9  ;;  %8064 = vmatprep.subr.mxu0 %v6037_v7 }
0x186d   : > { %6100 = vmatprep.subr.mxu1 %v5976_v31 }
0x186e   : > { %6101 = vmatpush2.msra.mxu1 %v5975_v10 }
0x186f   : > { %6102 = vmatprep.subr.mxu1 %v5973_v11 }
0x1870   : > { %6103 = vmatpush2.msra.mxu1 %v5972_v12 }
0x1871   : > { %6104 = vmatprep.subr.mxu1 %v5970_v13 }
0x1872   : > { %6105 = vmatpush2.msra.mxu1 %v5969_v14 }
0x1873   : > { %6106 = vmatprep.subr.mxu1 %v5967_v15 }
0x1874   : > { %6107 = vmatpush2.msra.mxu1 %v5966_v21 }
0x1875   : > { %6109 = vmatmul.mubr.f32.vlgmr.msra.gmra.mxu1 %v9923_v27 }
0x18f4   : > { %v5819_v57 = vpop.f32.mrf.mxu1 }
0x18f5   : > { %v5820_v59 = vadd.f32 %v5819_v57, %v5748_v52 }
0x18f6   : > { %v5821_v61 = vpop.f32.mrf.mxu1 }
0x18f7   : > { %v7422_v42 = vmul.f32 -1.442695, %v5820_v59  ;;  %v5822_v62 = vadd.f32 %v5821_v61, %v5748_v52 }
0x18f9   : > { %8290 = vpow2.f32 %v7422_v42  ;;  %v7423_v1 = vmul.f32 -1.442695, %v5822_v62  ;;  %v5890_v17 = vpop.f32.mrf.mxu0 }
0x18fa   : > { %v5891_v2 = vadd.f32 %v5890_v17, %v5748_v52 }
0x18fb   : > { %8292 = vpow2.f32 %v7423_v1  ;;  %v8063_v4 = vpop.f32.mrf.mxu0 }
0x18fc   : > { %v7424_v5 = vmul.f32 -1.442695, %v5891_v2 }
0x18fe   : > { %8294 = vpow2.f32 %v7424_v5 }
0x1906   : > { %v8291_v6 = vpop.eup %8290 }
0x1907   : > { %v5903_v8 = vadd.f32 1.0, %v8291_v6 }
0x1908   : > { %v8293_v9 = vpop.eup %8292 }
0x1909   : > { %8296 = vrcp.f32 %v5903_v8  ;;  %v5904_v31 = vadd.f32 1.0, %v8293_v9 }
0x190a   : > { %v6187_v30 = vpop.f32.mrf.mxu0 }
0x190b   : > { %v8295_v10 = vpop.eup %8294  ;;  %8298 = vrcp.f32 %v5904_v31 }
0x190c   : > { %v5905_v11 = vadd.f32 1.0, %v8295_v10  ;;  %v6189_v34 = vpop.f32.mrf.mxu0 }
0x190e   : > { %8300 = vrcp.f32 %v5905_v11 }
0x1916   : > { %v8297_v12 = vpop.eup %8296 }
0x1917   : > { %v5912_v14 = vadd.f32 1.0, %v8297_v12 }
0x1918   : > { %v8299_v13 = vpop.eup %8298 }
0x1919   : > { %v5913_v15 = vadd.f32 1.0, %v8299_v13  ;;  %v5915_v20 = vmul.f32 %v5912_v14, %v9923_v27  ;;  %v6350_v14 = vld [vmem:[%s10623_s9] sm:$0xff]  ;;  %s10656_s9 = sld [smem:[#allocation20_spill]] }
0x191b   : > { %v8301_v21 = vpop.eup %8300  ;;  %v5916_v18 = vmul.f32 %v5913_v15, %v9919_v60 }
0x191c   : > { %v5914_v19 = vadd.f32 1.0, %v8301_v21 }
0x191d   : > { %6114 = vmatprep.mubr.f32.mxu1 %v5916_v18 }
0x191e   : > { %6115 = vmatmul.mubr.f32.gmra.mxu1 %v5915_v20  ;;  %v5917_v0 = vmul.f32 %v5914_v19, %v9916_v25 }
0x1920   : > { %7426 = vmatmul.mubr.msk.f32.gmra.mxu0 %vm6038_vm13, %v5917_v0 }
0x1921   : > { %6262 = vmatprep.mubr.f32.mxu0 %v9919_v60  ;;  %v6022_v60 = vld [vmem:[%s10607_s8 + $0x340] sm:$0xff] }
0x1924   : > { %6263 = vmatmul.mubr.f32.vlgmr.msra.gmra.mxu0 %v9923_v27  ;;  %v6019_v27 = vld [vmem:[%s10607_s8 + $0x328] sm:$0xff]  ;;  %s10620_s8 = sld [smem:[#allocation41_spill]] }
0x1925   : > { %8065 = vmatpush3.msra.mxu0 %v6037_v7  ;;  %6267 = vmatprep.mubr.f32.mxu0 %v5916_v18 }
0x1926   : > { %8066 = vmatprep.subr.mxu0 %v6034_v22 }
0x1927   : > { %8067 = vmatpush3.msra.mxu0 %v6034_v22 }
0x1928   : > { %8068 = vmatprep.subr.mxu0 %v6031_v23  ;;  %6268 = vmatmul.mubr.f32.gmra.mxu0 %v5915_v20 }
0x1929   : > { %8069 = vmatpush3.msra.mxu0 %v6031_v23  ;;  %8080 = vmatprep.mubr.msk.f32.mxu0 %vm6038_vm13, %v9916_v25 }
0x192a   : > { %8070 = vmatprep.subr.mxu0 %v6028_v58  ;;  %v6349_v11 = vld [vmem:[%s10620_s8 + $0x8] sm:$0xff] }
0x192b   : > { %8071 = vmatpush3.msra.mxu0 %v6028_v58  ;;  %7433 = vmatprep.mubr.msk.f32.mxu1 %vm2607_vm4, %v6349_v11 }
0x192c   : > { %8072 = vmatprep.subr.mxu0 %v6025_v28 }
0x192d   : > { %8073 = vmatpush3.msra.mxu0 %v6025_v28 }
0x192e   : > { %8074 = vmatprep.subr.mxu0 %v6022_v60 }
0x192f   : > { %8075 = vmatpush3.msra.mxu0 %v6022_v60 }
0x1930   : > { %8076 = vmatprep.subr.mxu0 %v6019_v27 }
0x1931   : > { %8077 = vmatpush3.msra.mxu0 %v6019_v27 }
0x1932   : > { %8078 = vmatprep.subr.mxu0 %v6016_v29 }
0x1933   : > { %8079 = vmatpush3.msra.mxu0 %v6016_v29 }
0x1934   : > { %8081 = vmatmul.mubr.msk.f32.vlgmr.msra.gmra.mxu0 %vm6038_vm13, %v5917_v0  ;;  %6642 = vmatprep.subr.mxu0 %v8501_v49  ;;  %vm10621_vm13 = vmmov %vm10615_vm0 }
0x1935   : > { %v6110_v25 = vpop.f32.mrf.mxu1  ;;  %7436 = vmatprep.mubr.msk.f32.mxu0 %vm2607_vm4, %v6349_v11  ;;  %vm10624_vm4 = vcmask 752640  }
0x1936   : > { %v6188_v32 = vadd.f32 %v6187_v30, %v6110_v25 }
0x1937   : > { %v6112_v26 = vpop.f32.mrf.mxu1 }
0x1938   : > { %6357 = vrot.lane.b32.xlu0 %v6188_v32, %s10608_s1  ;;  %v6190_v36 = vadd.f32 %v6189_v34, %v6112_v26 }
0x193c   : > { %6359 = vrot.lane.b32.xlu0 %v6190_v36, %s10608_s1 }
0x19aa   : > { %v10084_v50 = vpop.permute.xlu0 %6357 }
0x19ab   : > { %v6379_v52 = vsel %vm10611_vm7, 0.0, %v10084_v50  ;;  %vm10625_vm7 = vmmov %vm10624_vm4 }
0x19ae   : > { %v6360_v48 = vpop.permute.xlu0 %6359 }
0x19af   : > { %v10090_v7 = vsel %vm10609_vm1, %v10084_v50, %v6360_v48  ;;  %vm10622_vm1 = vmmov %vm10617_vm9 }
0x19de   : > { %v6116_v16 = vpop.f32.mrf.mxu1 }
0x19e0   : > { %v6193_v38 = vpop.f32.mrf.mxu0  ;;  %v6118_v33 = vpop.f32.mrf.mxu1 }
0x19e1   : > { %v6194_v40 = vadd.f32 %v6193_v38, %v6116_v16 }
0x19e2   : > { %v6195_v41 = vpop.f32.mrf.mxu0 }
0x19e3   : > { %6363 = vrot.lane.b32.xlu1 %v6194_v40, %s10608_s1  ;;  %v6196_v43 = vadd.f32 %v6195_v41, %v6118_v33 }
0x19e4   : > { %v7769_v47 = vpop.f32.mrf.mxu0 }
0x19e6   : > { %v7770_v45 = vpop.f32.mrf.mxu0 }
0x19e7   : > { %6365 = vrot.lane.b32.xlu1 %v6196_v43, %s10608_s1  ;;  %v7771_v54 = vadd.f32 %v7770_v45, %v7769_v47 }
0x19e8   : > { %v7772_v46 = vpop.f32.mrf.mxu0 }
0x19ea   : > { %v7773_v63 = vpop.f32.mrf.mxu0 }
0x19eb   : > { %v7774_v51 = vadd.f32 %v7773_v63, %v7772_v46 }
0x19f4   : > { %v8082_v53 = vpop.f32.mrf.mxu0 }
0x19f5   : > { %v6345_v24 = vadd.f32 %v8082_v53, %v7774_v51 }
0x19f6   : > { %v6339_v55 = vpop.f32.mrf.mxu0 }
0x19f7   : > { %v6340_v56 = vadd.f32 %v7771_v54, %v6339_v55  ;;  %6367 = vrot.lane.b32.xlu0 %v6345_v24, %s10608_s1 }
0x19f9   : > { %6361 = vrot.lane.b32.xlu1 %v6340_v56, %s10608_s1 }
0x19fb   : > { %6521 = vrot.lane.b32.xlu0 %v10090_v7, %s10610_s2 }
0x19ff   : > { %6519 = vrot.lane.b32.xlu0 %v6379_v52, %s10610_s2 }
0x1a03   : > { %6499 = vrot.lane.b32.xlu0 %v10090_v7, %s10612_s7 }
0x1a07   : > { %6497 = vrot.lane.b32.xlu0 %v6379_v52, %s10612_s7 }
0x1a0b   : > { %6477 = vrot.lane.b32.xlu0 %v10090_v7, %s10589_s4 }
0x1a0f   : > { %6475 = vrot.lane.b32.xlu0 %v6379_v52, %s10589_s4 }
0x1a13   : > { %6455 = vrot.lane.b32.xlu0 %v10090_v7, %s10613_s10 }
0x1a17   : > { %6453 = vrot.lane.b32.xlu0 %v6379_v52, %s10613_s10 }
0x1a1b   : > { %6433 = vrot.lane.b32.xlu0 %v10090_v7, %s10614_s0 }
0x1a1f   : > { %6431 = vrot.lane.b32.xlu0 %v6379_v52, %s10614_s0 }
0x1a23   : > { %6411 = vrot.lane.b32.xlu0 %v10090_v7, %s10588_s3 }
0x1a27   : > { %6409 = vrot.lane.b32.xlu0 %v6379_v52, %s10588_s3 }
0x1a2b   : > { %6389 = vrot.lane.b32.xlu0 %v10090_v7, %s10591_s6 }
0x1a2f   : > { %6387 = vrot.lane.b32.xlu0 %v6379_v52, %s10591_s6 }
0x1a55   : > { %v10115_v57 = vpop.permute.xlu1 %6363 }
0x1a56   : > { %v6380_v59 = vsel %vm10615_vm0, 0.0, %v10115_v57  ;;  %vm10626_vm0 = vmmov %vm10624_vm4 }
0x1a57   : > { %6525 = vrot.lane.b32.xlu1 %v6380_v59, %s10610_s2 }
0x1a59   : > { %v6366_v61 = vpop.permute.xlu1 %6365 }
0x1a5a   : > { %v10135_v17 = vsel %vm10618_vm5, %v10115_v57, %v6366_v61 }
0x1a5b   : > { %6503 = vrot.lane.b32.xlu1 %v6380_v59, %s10612_s7 }
0x1a5f   : > { %6481 = vrot.lane.b32.xlu1 %v6380_v59, %s10589_s4 }
0x1a63   : > { %6459 = vrot.lane.b32.xlu1 %v6380_v59, %s10613_s10 }
0x1a67   : > { %6437 = vrot.lane.b32.xlu1 %v6380_v59, %s10614_s0 }
0x1a69   : > { %v6368_v42 = vpop.permute.xlu0 %6367 }
0x1a6a   : > { %v10125_v62 = vsel %vm10616_vm15, %v6366_v61, %v6368_v42  ;;  %vm10627_vm15 = vmmov %vm10626_vm0 }
0x1a6b   : > { %v6382_v1 = vsel %vm10617_vm9, %v10125_v62, 0.0  ;;  %6415 = vrot.lane.b32.xlu1 %v6380_v59, %s10588_s3  ;;  %v6362_v2 = vpop.permute.xlu1 %6361  ;;  %vm10628_vm9 = vcmask 883712  }
0x1a6c   : > { %6529 = vrot.lane.b32.xlu0 %v6382_v1, %s10610_s2  ;;  %v10162_v5 = vsel %vm10621_vm13, %v6360_v48, %v6362_v2  ;;  %vm10629_vm5 = vmmov %vm10628_vm9 }
0x1a6d   : > { %v10157_v4 = vpop.permute.xlu0 %6521  ;;  %v6381_v6 = vsel %vm10622_vm1, %v10162_v5, 0.0  ;;  %vm10630_vm13 = vmmov %vm10629_vm5 }
0x1a6e   : > { %vm10631_vm1 = vmmov %vm10629_vm5 }
0x1a6f   : > { %6393 = vrot.lane.b32.xlu1 %v6380_v59, %s10591_s6 }
0x1a70   : > { %6507 = vrot.lane.b32.xlu0 %v6382_v1, %s10612_s7 }
0x1a71   : > { %v6520_v8 = vpop.permute.xlu0 %6519 }
0x1a72   : > { %v6531_v54 = vsel %vm1790_vm8, %v6520_v8, %v10157_v4 }
0x1a73   : > { %6527 = vrot.lane.b32.xlu1 %v10135_v17, %s10610_s2 }
0x1a74   : > { %6485 = vrot.lane.b32.xlu0 %v6382_v1, %s10589_s4 }
0x1a75   : > { %v10171_v9 = vpop.permute.xlu0 %6499 }
0x1a77   : > { %6505 = vrot.lane.b32.xlu1 %v10135_v17, %s10612_s7 }
0x1a78   : > { %6463 = vrot.lane.b32.xlu0 %v6382_v1, %s10613_s10 }
0x1a79   : > { %v10174_v31 = vpop.permute.xlu0 %6497 }
0x1a7b   : > { %6483 = vrot.lane.b32.xlu1 %v10135_v17, %s10589_s4 }
0x1a7c   : > { %6441 = vrot.lane.b32.xlu0 %v6382_v1, %s10614_s0 }
0x1a7d   : > { %v10178_v10 = vpop.permute.xlu0 %6477 }
0x1a7f   : > { %6461 = vrot.lane.b32.xlu1 %v10135_v17, %s10613_s10 }
0x1a80   : > { %6419 = vrot.lane.b32.xlu0 %v6382_v1, %s10588_s3 }
0x1a81   : > { %v10184_v12 = vpop.permute.xlu0 %6475 }
0x1a83   : > { %6439 = vrot.lane.b32.xlu1 %v10135_v17, %s10614_s0 }
0x1a84   : > { %6397 = vrot.lane.b32.xlu0 %v6382_v1, %s10591_s6 }
0x1a85   : > { %v10188_v13 = vpop.permute.xlu0 %6455 }
0x1a87   : > { %6417 = vrot.lane.b32.xlu1 %v10135_v17, %s10588_s3 }
0x1a88   : > { %6551 = vrot.lane.b32.xlu0 %v6382_v1, %s10619_s5 }
0x1a89   : > { %v10192_v15 = vpop.permute.xlu0 %6453 }
0x1a8b   : > { %6395 = vrot.lane.b32.xlu1 %v10135_v17, %s10591_s6 }
0x1a8c   : > { %6543 = vrot.lane.b32.xlu0 %v10090_v7, %s10619_s5 }
0x1a8d   : > { %v10194_v21 = vpop.permute.xlu0 %6433 }
0x1a8f   : > { %6549 = vrot.lane.b32.xlu1 %v10135_v17, %s10619_s5 }
0x1a90   : > { %6541 = vrot.lane.b32.xlu0 %v6379_v52, %s10619_s5  ;;  %v6509_v52 = vsel %vm10627_vm15, %v10174_v31, %v10171_v9 }
0x1a91   : > { %v10196_v18 = vpop.permute.xlu0 %6431 }
0x1a93   : > { %6523 = vrot.lane.b32.xlu1 %v6381_v6, %s10610_s2 }
0x1a95   : > { %v10198_v19 = vpop.permute.xlu0 %6411 }
0x1a97   : > { %6501 = vrot.lane.b32.xlu1 %v6381_v6, %s10612_s7 }
0x1a99   : > { %v10200_v22 = vpop.permute.xlu0 %6409 }
0x1a9b   : > { %6479 = vrot.lane.b32.xlu1 %v6381_v6, %s10589_s4 }
0x1a9d   : > { %v10202_v58 = vpop.permute.xlu0 %6389 }
0x1a9f   : > { %6457 = vrot.lane.b32.xlu1 %v6381_v6, %s10613_s10 }
0x1aa1   : > { %v10206_v27 = vpop.permute.xlu0 %6387 }
0x1aa3   : > { %6435 = vrot.lane.b32.xlu1 %v6381_v6, %s10614_s0 }
0x1aa7   : > { %6413 = vrot.lane.b32.xlu1 %v6381_v6, %s10588_s3 }
0x1aab   : > { %6391 = vrot.lane.b32.xlu1 %v6381_v6, %s10591_s6 }
0x1aaf   : > { %6547 = vrot.lane.b32.xlu1 %v6380_v59, %s10619_s5 }
0x1ab3   : > { %6545 = vrot.lane.b32.xlu1 %v6381_v6, %s10619_s5 }
0x1ab7   : > { %6565 = vperm.xlu1 %8270, %v6350_v14  }
0x1ac9   : > { %v6526_v20 = vpop.permute.xlu1 %6525 }
0x1acd   : > { %v6504_v0 = vpop.permute.xlu1 %6503 }
0x1ad1   : > { %v6482_v23 = vpop.permute.xlu1 %6481 }
0x1ad5   : > { %v6460_v28 = vpop.permute.xlu1 %6459 }
0x1ad9   : > { %v10204_v60 = vpop.permute.xlu1 %6437 }
0x1add   : > { %v10208_v29 = vpop.permute.xlu1 %6415 }
0x1ade   : > { %v6530_v30 = vpop.permute.xlu0 %6529 }
0x1adf   : > { %6643 = vmatpush1.msra.mxu0 %v6530_v30 }
0x1ae0   : > { %6644 = vmatprep.subr.mxu0 %v8501_v49 }
0x1ae1   : > { %v10211_v25 = vpop.permute.xlu1 %6393 }
0x1ae2   : > { %v6508_v40 = vpop.permute.xlu0 %6507 }
0x1ae5   : > { %v6528_v32 = vpop.permute.xlu1 %6527 }
0x1ae6   : > { %v6533_v26 = vsel %vm1790_vm8, %v6526_v20, %v6528_v32  ;;  %v6534_v34 = vsel %vm1790_vm8, %v6528_v32, %v6530_v30  ;;  %v6486_v47 = vpop.permute.xlu0 %6485 }
0x1ae7   : > { %6571 = vmatprep.subr.mxu1 %v6534_v34 }
0x1ae8   : > { %6572 = vmatpush1.msra.mxu1 %v6533_v26 }
0x1ae9   : > { %v6506_v36 = vpop.permute.xlu1 %6505 }
0x1aea   : > { %v6464_v45 = vpop.permute.xlu0 %6463  ;;  %v6512_v24 = vsel %vm10624_vm4, %v6506_v36, %v6508_v40  ;;  %v6511_v55 = vsel %vm10625_vm7, %v6504_v0, %v6506_v36  ;;  %vm10632_vm4 = vcmask 891904  }
0x1aeb   : > { %vm10633_vm7 = vmmov %vm10632_vm4 }
0x1aed   : > { %v6484_v16 = vpop.permute.xlu1 %6483 }
0x1aee   : > { %v6442_v51 = vpop.permute.xlu0 %6441  ;;  %v6490_v61 = vsel %vm10628_vm9, %v6484_v16, %v6486_v47  ;;  %v6489_v42 = vsel %vm10629_vm5, %v6482_v23, %v6484_v16  ;;  %vm10636_vm9 = vcmask 900096  }
0x1aef   : > { %vm10637_vm5 = vmmov %vm10636_vm9 }
0x1af1   : > { %v6462_v38 = vpop.permute.xlu1 %6461 }
0x1af2   : > { %v6420_v59 = vpop.permute.xlu0 %6419  ;;  %v6468_v6 = vsel %vm10632_vm4, %v6462_v38, %v6464_v45  ;;  %v6467_v8 = vsel %vm10633_vm7, %v6460_v28, %v6462_v38 }
0x1af5   : > { %v6440_v41 = vpop.permute.xlu1 %6439 }
0x1af6   : > { %v6398_v31 = vpop.permute.xlu0 %6397  ;;  %v6445_v14 = vsel %vm10637_vm5, %v10204_v60, %v6440_v41 }
0x1af9   : > { %v10215_v33 = vpop.permute.xlu1 %6417 }
0x1afd   : > { %v10217_v43 = vpop.permute.xlu1 %6395 }
0x1b01   : > { %v10219_v46 = vpop.permute.xlu1 %6549 }
0x1b05   : > { %v6524_v63 = vpop.permute.xlu1 %6523 }
0x1b06   : > { %6645 = vmatpush1.msra.mxu0 %v6524_v63  ;;  %v6532_v53 = vsel %vm1790_vm8, %v10157_v4, %v6524_v63  ;;  %v6487_v4 = vsel %vm10631_vm1, %v10184_v12, %v10178_v10  ;;  %v6446_v12 = vsel %vm10636_vm9, %v6440_v41, %v6442_v51  ;;  %vm10639_vm1 = vmmov %vm10637_vm5  ;;  %vm10644_vm9 = vcmask 1039360  }
0x1b07   : > { %6573 = vmatprep.subr.mxu1 %v6532_v53  ;;  %6646 = vmatprep.subr.mxu0 %v8501_v49 }
0x1b08   : > { %6574 = vmatpush1.msra.mxu1 %v6531_v54  ;;  %6647 = vmatpush1.msra.mxu0 %v6508_v40 }
0x1b09   : > { %6575 = vmatprep.subr.mxu1 %v6512_v24  ;;  %6648 = vmatprep.subr.mxu0 %v8501_v49  ;;  %v6502_v48 = vpop.permute.xlu1 %6501 }
0x1b0a   : > { %6576 = vmatpush1.msra.mxu1 %v6511_v55  ;;  %6649 = vmatpush1.msra.mxu0 %v6502_v48  ;;  %v6510_v56 = vsel %vm10626_vm0, %v10171_v9, %v6502_v48  ;;  %vm10634_vm0 = vmmov %vm10632_vm4  ;;  %vm10640_vm4 = vcmask 1031168  }
0x1b0b   : > { %6577 = vmatprep.subr.mxu1 %v6510_v56  ;;  %6650 = vmatprep.subr.mxu0 %v8501_v49  ;;  %vm10635_vm15 = vmmov %vm10634_vm0  ;;  %v6424_v23 = vsel %vm10640_vm4, %v10215_v33, %v6420_v59 }
0x1b0c   : > { %6578 = vmatpush1.msra.mxu1 %v6509_v52  ;;  %6651 = vmatpush1.msra.mxu0 %v6486_v47  ;;  %vm10641_vm7 = vmmov %vm10640_vm4 }
0x1b0d   : > { %6579 = vmatprep.subr.mxu1 %v6490_v61  ;;  %6652 = vmatprep.subr.mxu0 %v8501_v49  ;;  %v6480_v1 = vpop.permute.xlu1 %6479  ;;  %v6423_v28 = vsel %vm10641_vm7, %v10208_v29, %v10215_v33  ;;  %v6402_v29 = vsel %vm10644_vm9, %v10217_v43, %v6398_v31 }
0x1b0e   : > { %6580 = vmatpush1.msra.mxu1 %v6489_v42  ;;  %6653 = vmatpush1.msra.mxu0 %v6480_v1  ;;  %v6488_v2 = vsel %vm10630_vm13, %v10178_v10, %v6480_v1  ;;  %v6465_v10 = vsel %vm10635_vm15, %v10192_v15, %v10188_v13  ;;  %vm10638_vm13 = vmmov %vm10637_vm5  ;;  %v6552_v15 = vpop.permute.xlu0 %6551 }
0x1b0f   : > { %6581 = vmatprep.subr.mxu1 %v6488_v2  ;;  %6654 = vmatprep.subr.mxu0 %v8501_v49  ;;  %vm10645_vm5 = vmmov %vm10644_vm9 }
0x1b10   : > { %6582 = vmatpush1.msra.mxu1 %v6487_v4  ;;  %6655 = vmatpush1.msra.mxu0 %v6464_v45  ;;  %v6401_v30 = vsel %vm10645_vm5, %v10211_v25, %v10217_v43 }
0x1b11   : > { %6583 = vmatprep.subr.mxu1 %v6468_v6  ;;  %6656 = vmatprep.subr.mxu0 %v8501_v49  ;;  %v6458_v9 = vpop.permute.xlu1 %6457 }
0x1b12   : > { %6584 = vmatpush1.msra.mxu1 %v6467_v8  ;;  %6657 = vmatpush1.msra.mxu0 %v6458_v9  ;;  %v6466_v11 = vsel %vm10634_vm0, %v10188_v13, %v6458_v9  ;;  %v6443_v13 = vsel %vm10639_vm1, %v10196_v18, %v10194_v21  ;;  %vm10642_vm0 = vmmov %vm10640_vm4  ;;  %v6544_v26 = vpop.permute.xlu0 %6543  ;;  %vm10648_vm4 = vcmask 416768  }
0x1b13   : > { %6585 = vmatprep.subr.mxu1 %v6466_v11  ;;  %6658 = vmatprep.subr.mxu0 %v8501_v49  ;;  %vm10643_vm15 = vmmov %vm10642_vm0 }
0x1b14   : > { %6586 = vmatpush1.msra.mxu1 %v6465_v10  ;;  %6659 = vmatpush1.msra.mxu0 %v6442_v51  ;;  %v6421_v18 = vsel %vm10643_vm15, %v10200_v22, %v10198_v19  ;;  %vm10647_vm1 = vmmov %vm10645_vm5 }
0x1b15   : > { %6587 = vmatprep.subr.mxu1 %v6446_v12  ;;  %6660 = vmatprep.subr.mxu0 %v8501_v49  ;;  %v6436_v20 = vpop.permute.xlu1 %6435  ;;  %v6399_v22 = vsel %vm10647_vm1, %v10206_v27, %v10202_v58  ;;  %vm10649_vm7 = vmmov %vm10648_vm4 }
0x1b16   : > { %6588 = vmatpush1.msra.mxu1 %v6445_v14  ;;  %6661 = vmatpush1.msra.mxu0 %v6436_v20  ;;  %v6444_v0 = vsel %vm10638_vm13, %v10194_v21, %v6436_v20  ;;  %vm10646_vm13 = vmmov %vm10645_vm5 }
0x1b17   : > { %6589 = vmatprep.subr.mxu1 %v6444_v0  ;;  %6662 = vmatprep.subr.mxu0 %v8501_v49 }
0x1b18   : > { %6590 = vmatpush1.msra.mxu1 %v6443_v13  ;;  %6663 = vmatpush1.msra.mxu0 %v6420_v59  ;;  %v6982_v59 = vld [vmem:[%s10656_s9] sm:$0x3] }
0x1b19   : > { %6591 = vmatprep.subr.mxu1 %v6424_v23  ;;  %6664 = vmatprep.subr.mxu0 %v8501_v49  ;;  %v6414_v60 = vpop.permute.xlu1 %6413 }
0x1b1a   : > { %6592 = vmatpush1.msra.mxu1 %v6423_v28  ;;  %6665 = vmatpush1.msra.mxu0 %v6414_v60  ;;  %v6422_v21 = vsel %vm10642_vm0, %v10198_v19, %v6414_v60  ;;  %vm10650_vm0 = vcmask 736256  }
0x1b1b   : > { %6593 = vmatprep.subr.mxu1 %v6422_v21  ;;  %6666 = vmatprep.subr.mxu0 %v8501_v49  ;;  %vm10651_vm15 = vmmov %vm10650_vm0 }
0x1b1c   : > { %6594 = vmatpush1.msra.mxu1 %v6421_v18  ;;  %6667 = vmatpush1.msra.mxu0 %v6398_v31  ;;  %vm10652_vm9 = vmmov %vm10650_vm0 }
0x1b1d   : > { %6595 = vmatprep.subr.mxu1 %v6402_v29  ;;  %6668 = vmatprep.subr.mxu0 %v8501_v49  ;;  %v6392_v32 = vpop.permute.xlu1 %6391  ;;  %vm10653_vm5 = vmmov %vm10650_vm0 }
0x1b1e   : > { %6596 = vmatpush1.msra.mxu1 %v6401_v30  ;;  %6669 = vmatpush1.msra.mxu0 %v6392_v32  ;;  %v6400_v19 = vsel %vm10646_vm13, %v10202_v58, %v6392_v32  ;;  %v6542_v58 = vpop.permute.xlu0 %6541  ;;  %vm10654_vm13 = vcmask 154624  }
0x1b1f   : > { %6597 = vmatprep.subr.mxu1 %v6400_v19  ;;  %6670 = vmatprep.subr.mxu0 %v8501_v49  ;;  %v6553_v27 = vsel %vm10653_vm5, %v6542_v58, %v6544_v26  ;;  %vm10655_vm1 = vmmov %vm10654_vm13 }
0x1b20   : > { %6598 = vmatpush1.msra.mxu1 %v6399_v22  ;;  %7434 = vmatpush1.msk.msra.mxu0 %vm10648_vm4, %v10125_v62  ;;  %v6556_v62 = vsel %vm10650_vm0, %v10219_v46, %v6552_v15  ;;  %vm10657_vm4 = vmmov %vm10655_vm1 }
0x1b21   : > { %6599 = vmatprep.subr.mxu1 %v10135_v17  ;;  %6672 = vmatprep.subr.mxu0 %v8501_v49  ;;  %v6548_v25 = vpop.permute.xlu1 %6547  ;;  %v6348_v17 = vld [vmem:[%s10620_s8] sm:$0xff] }
0x1b22   : > { %7430 = vmatpush1.msk.msra.mxu1 %vm9109_vm12, %v10115_v57  ;;  %7435 = vmatpush1.msk.msra.mxu0 %vm10649_vm7, %v10162_v5  ;;  %v6555_v57 = vsel %vm10651_vm15, %v6548_v25, %v10219_v46  ;;  %vm10659_vm15 = vmmov %vm10650_vm0 }
0x1b23   : > { %6601 = vmatprep.subr.mxu1 %v10090_v7  ;;  %6702 = vmatprep.subr.mxu0 %v8501_v49 }
0x1b24   : > { %7432 = vmatpush1.msk.msra.mxu1 %vm9109_vm12, %v10084_v50  ;;  %6703 = vmatpush2.msra.mxu0 %v6552_v15 }
0x1b25   : > { %6631 = vmatprep.subr.mxu1 %v6556_v62  ;;  %6704 = vmatprep.subr.mxu0 %v8501_v49  ;;  %v6546_v5 = vpop.permute.xlu1 %6545 }
0x1b26   : > { %6632 = vmatpush2.msra.mxu1 %v6555_v57  ;;  %6705 = vmatpush2.msra.mxu0 %v6546_v5  ;;  %v6554_v7 = vsel %vm10652_vm9, %v6544_v26, %v6546_v5  ;;  %vm10660_vm9 = vcmask 752640  }
0x1b27   : > { %6633 = vmatprep.subr.mxu1 %v6554_v7  ;;  %6707 = vmatmul.mubr.f32.vlgmr.msra.gmra.mxu0 %v6348_v17  ;;  %vm10661_vm5 = vmmov %vm10660_vm9 }
0x1b28   : > { %6634 = vmatpush2.msra.mxu1 %v6553_v27  ;;  %8083 = vmatprep.subr.mxu0 %v8501_v49 }
0x1b29   : > { %6636 = vmatmul.mubr.f32.vlgmr.msra.gmra.mxu1 %v6348_v17  ;;  %8101 = vmatprep.mubr.msk.f32.mxu0 %vm8502_vm3, %v8501_v49 }
0x1b2a   : > { %6898 = vmatprep.mubr.f32.mxu1 %v8501_v49 }
0x1b32   : > { %v6566_v50 = vpop.permute.xlu1 %6565 }
0x1be7   : > { %v6708_v34 = vpop.f32.mrf.mxu0 }
0x1be8   : > { %v6709_v36 = vadd.f32 %v6708_v34, %v6566_v50 }
0x1be9   : > { %v6637_v16 = vpop.f32.mrf.mxu1  ;;  %v6710_v38 = vpop.f32.mrf.mxu0 }
0x1bea   : > { %v6714_v40 = vmax.f32 %v6709_v36, 0.0  ;;  %v6638_v47 = vadd.f32 %v6637_v16, %v6566_v50 }
0x1beb   : > { %v6639_v41 = vpop.f32.mrf.mxu1 }
0x1bec   : > { %v6717_v33 = vsel %vm9008_vm10, %v6714_v40, 0.0  ;;  %v6640_v43 = vadd.f32 %v6639_v41, %v6566_v50  ;;  %v6712_v46 = vmax.f32 %v6638_v47, 0.0 }
0x1bed   : > { %6727 = vrot.lane.b32.xlu1 %v6717_v33, %s10608_s1 }
0x1bee   : > { %v6713_v45 = vmax.f32 %v6640_v43, 0.0  ;;  %v6715_v51 = vsel %vm9025_vm2, %v6712_v46, 0.0 }
0x1bf0   : > { %v6716_v63 = vsel %vm9013_vm11, %v6713_v45, 0.0 }
0x1bf1   : > { %6725 = vrot.lane.b32.xlu0 %v6716_v63, %s10608_s1  ;;  %v6981_v63 = vld [vmem:[#allocation2] sm:$0x3] }
0x1bf5   : > { %6723 = vrot.lane.b32.xlu0 %v6715_v51, %s10608_s1  ;;  %s10658_s1 = sld [smem:[#allocation42_spill]] }
0x1bfb   : > { %v6719_v61 = vld [vmem:[%s10658_s1] sm:$0xff] }
0x1c5f   : > { %v6728_v48 = vpop.permute.xlu1 %6727 }
0x1c63   : > { %v6726_v53 = vpop.permute.xlu0 %6725 }
0x1c64   : > { %v10348_v56 = vsel %vm10657_vm4, %v6726_v53, %v6728_v48 }
0x1c65   : > { %v6735_v52 = vsel %vm10649_vm7, %v10348_v56, 0.0  ;;  %vm10666_vm7 = vcmask 900096  }
0x1c67   : > { %v10322_v54 = vpop.permute.xlu0 %6723 }
0x1c68   : > { %v6734_v24 = vsel %vm10654_vm13, 0.0, %v10322_v54  ;;  %v10334_v55 = vsel %vm10655_vm1, %v10322_v54, %v6726_v53  ;;  %vm10662_vm13 = vcmask 883712  }
0x1c69   : > { %6804 = vrot.lane.b32.xlu0 %v6734_v24, %s10610_s2  ;;  %6815 = vrot.lane.b32.xlu1 %v6734_v24, %s10619_s5  ;;  %vm10663_vm1 = vmmov %vm10662_vm13 }
0x1c6d   : > { %6782 = vrot.lane.b32.xlu0 %v6734_v24, %s10589_s4  ;;  %6793 = vrot.lane.b32.xlu1 %v6734_v24, %s10612_s7 }
0x1c71   : > { %6760 = vrot.lane.b32.xlu0 %v6734_v24, %s10614_s0  ;;  %6771 = vrot.lane.b32.xlu1 %v6734_v24, %s10613_s10 }
0x1c75   : > { %6749 = vrot.lane.b32.xlu1 %v6734_v24, %s10588_s3  ;;  %6806 = vrot.lane.b32.xlu0 %v10334_v55, %s10610_s2 }
0x1c79   : > { %6784 = vrot.lane.b32.xlu0 %v10334_v55, %s10589_s4  ;;  %6817 = vrot.lane.b32.xlu1 %v10334_v55, %s10619_s5 }
0x1c7d   : > { %6762 = vrot.lane.b32.xlu0 %v10334_v55, %s10614_s0  ;;  %6795 = vrot.lane.b32.xlu1 %v10334_v55, %s10612_s7 }
0x1c81   : > { %6740 = vrot.lane.b32.xlu0 %v10334_v55, %s10591_s6  ;;  %6773 = vrot.lane.b32.xlu1 %v10334_v55, %s10613_s10 }
0x1c85   : > { %6819 = vrot.lane.b32.xlu0 %v6735_v52, %s10619_s5  ;;  %6751 = vrot.lane.b32.xlu1 %v10334_v55, %s10588_s3  ;;  %s10668_s5 = sld [smem:[#allocation43_spill]] }
0x1c89   : > { %6797 = vrot.lane.b32.xlu0 %v6735_v52, %s10612_s7  ;;  %6808 = vrot.lane.b32.xlu1 %v6735_v52, %s10610_s2 }
0x1c8b   : > { %v6718_v40 = vld [vmem:[%s10668_s5] sm:$0xff] }
0x1c8d   : > { %6775 = vrot.lane.b32.xlu0 %v6735_v52, %s10613_s10  ;;  %6786 = vrot.lane.b32.xlu1 %v6735_v52, %s10589_s4 }
0x1c91   : > { %6753 = vrot.lane.b32.xlu0 %v6735_v52, %s10588_s3  ;;  %6764 = vrot.lane.b32.xlu1 %v6735_v52, %s10614_s0 }
0x1c95   : > { %6738 = vrot.lane.b32.xlu0 %v6734_v24, %s10591_s6  ;;  %6742 = vrot.lane.b32.xlu1 %v6735_v52, %s10591_s6  ;;  %s8110_s6 = smul.u32 6, %s10675_s28 }
0x1c97   : > { %s1572_s4 = scalar_lea.vmem %s8785_s24, %s8110_s6 }
0x1c99   : > { %6985 = vperm.xlu0 %8281, %v6982_v59   ;;  %6828 = vperm.xlu1 %8270, %v6719_v61  }
0x1cdb   : > { %v6805_v42 = vpop.permute.xlu0 %6804  ;;  %v6816_v1 = vpop.permute.xlu1 %6815 }
0x1cdf   : > { %v6783_v2 = vpop.permute.xlu0 %6782  ;;  %v6794_v4 = vpop.permute.xlu1 %6793 }
0x1ce3   : > { %v6761_v6 = vpop.permute.xlu0 %6760  ;;  %v6772_v8 = vpop.permute.xlu1 %6771 }
0x1ce7   : > { %v6750_v9 = vpop.permute.xlu1 %6749  ;;  %v6807_v31 = vpop.permute.xlu0 %6806 }
0x1ce8   : > { %v6810_v29 = vsel %vm1790_vm8, %v6805_v42, %v6807_v31 }
0x1ceb   : > { %v6785_v11 = vpop.permute.xlu0 %6784  ;;  %v6818_v10 = vpop.permute.xlu1 %6817 }
0x1cec   : > { %v6821_v28 = vsel %vm10659_vm15, %v6816_v1, %v6818_v10  ;;  %v6788_v25 = vsel %vm10663_vm1, %v6783_v2, %v6785_v11  ;;  %vm10669_vm15 = vcmask 1031168   ;;  %vm10673_vm1 = vcmask 416768  }
0x1cef   : > { %v6763_v12 = vpop.permute.xlu0 %6762  ;;  %v6796_v14 = vpop.permute.xlu1 %6795 }
0x1cf0   : > { %v6799_v32 = vsel %vm10661_vm5, %v6794_v4, %v6796_v14  ;;  %vm10671_vm5 = vcmask 1039360  }
0x1cf3   : > { %v6741_v20 = vpop.permute.xlu0 %6740  ;;  %v6774_v0 = vpop.permute.xlu1 %6773 }
0x1cf7   : > { %v6820_v13 = vpop.permute.xlu0 %6819  ;;  %v6752_v15 = vpop.permute.xlu1 %6751 }
0x1cf8   : > { %8084 = vmatpush3.msra.mxu0 %v6820_v13  ;;  %v6822_v23 = vsel %vm10650_vm0, %v6818_v10, %v6820_v13  ;;  %vm10667_vm0 = vmmov %vm10666_vm7 }
0x1cf9   : > { %6848 = vmatprep.subr.mxu1 %v6822_v23  ;;  %8085 = vmatprep.subr.mxu0 %v8501_v49  ;;  %v6766_v7 = vsel %vm10667_vm0, %v6761_v6, %v6763_v12 }
0x1cfa   : > { %6849 = vmatpush1.msra.mxu1 %v6821_v28 }
0x1cfb   : > { %v6798_v60 = vpop.permute.xlu0 %6797  ;;  %v6809_v21 = vpop.permute.xlu1 %6808 }
0x1cfc   : > { %8086 = vmatpush3.msra.mxu0 %v6809_v21  ;;  %v6811_v18 = vsel %vm1790_vm8, %v6807_v31, %v6809_v21  ;;  %v6800_v30 = vsel %vm10660_vm9, %v6796_v14, %v6798_v60  ;;  %vm10664_vm8 = vcmask 891904   ;;  %vm10670_vm9 = vmmov %vm10669_vm15 }
0x1cfd   : > { %6850 = vmatprep.subr.mxu1 %v6811_v18  ;;  %8087 = vmatprep.subr.mxu0 %v8501_v49  ;;  %vm10665_vm4 = vmmov %vm10664_vm8  ;;  %v6755_v50 = vsel %vm10670_vm9, %v6750_v9, %v6752_v15 }
0x1cfe   : > { %6851 = vmatpush1.msra.mxu1 %v6810_v29  ;;  %8088 = vmatpush3.msra.mxu0 %v6798_v60  ;;  %v6777_v62 = vsel %vm10665_vm4, %v6772_v8, %v6774_v0 }
0x1cff   : > { %v6776_v26 = vpop.permute.xlu0 %6775  ;;  %6852 = vmatprep.subr.mxu1 %v6800_v30  ;;  %8089 = vmatprep.subr.mxu0 %v8501_v49  ;;  %v6787_v19 = vpop.permute.xlu1 %6786 }
0x1d00   : > { %6853 = vmatpush1.msra.mxu1 %v6799_v32  ;;  %8090 = vmatpush3.msra.mxu0 %v6787_v19  ;;  %v6789_v22 = vsel %vm10662_vm13, %v6785_v11, %v6787_v19  ;;  %v6778_v58 = vsel %vm10664_vm8, %v6774_v0, %v6776_v26  ;;  %vm10672_vm13 = vmmov %vm10671_vm5 }
0x1d01   : > { %6854 = vmatprep.subr.mxu1 %v6789_v22  ;;  %8091 = vmatprep.subr.mxu0 %v8501_v49 }
0x1d02   : > { %6855 = vmatpush1.msra.mxu1 %v6788_v25  ;;  %8092 = vmatpush3.msra.mxu0 %v6776_v26 }
0x1d03   : > { %v6754_v17 = vpop.permute.xlu0 %6753  ;;  %6856 = vmatprep.subr.mxu1 %v6778_v58  ;;  %8093 = vmatprep.subr.mxu0 %v8501_v49  ;;  %v6765_v57 = vpop.permute.xlu1 %6764 }
0x1d04   : > { %6857 = vmatpush1.msra.mxu1 %v6777_v62  ;;  %8094 = vmatpush3.msra.mxu0 %v6765_v57  ;;  %v6767_v5 = vsel %vm10666_vm7, %v6763_v12, %v6765_v57  ;;  %v6756_v27 = vsel %vm10669_vm15, %v6752_v15, %v6754_v17 }
0x1d05   : > { %6858 = vmatprep.subr.mxu1 %v6767_v5  ;;  %8095 = vmatprep.subr.mxu0 %v8501_v49 }
0x1d06   : > { %6859 = vmatpush1.msra.mxu1 %v6766_v7  ;;  %8096 = vmatpush3.msra.mxu0 %v6754_v17 }
0x1d07   : > { %v6739_v34 = vpop.permute.xlu0 %6738  ;;  %6860 = vmatprep.subr.mxu1 %v6756_v27  ;;  %8097 = vmatprep.subr.mxu0 %v8501_v49  ;;  %v6743_v36 = vpop.permute.xlu1 %6742 }
0x1d08   : > { %v6744_v16 = vsel %vm10671_vm5, %v6739_v34, %v6741_v20  ;;  %6861 = vmatpush1.msra.mxu1 %v6755_v50  ;;  %8098 = vmatpush3.msra.mxu0 %v6743_v36  ;;  %v6745_v38 = vsel %vm10672_vm13, %v6741_v20, %v6743_v36 }
0x1d09   : > { %6862 = vmatprep.subr.mxu1 %v6745_v38  ;;  %8099 = vmatprep.subr.mxu0 %v8501_v49 }
0x1d0a   : > { %6863 = vmatpush1.msra.mxu1 %v6744_v16  ;;  %8100 = vmatpush3.msk.msra.mxu0 %vm10673_vm1, %v10348_v56 }
0x1d0b   : > { %6864 = vmatprep.subr.mxu1 %v10334_v55  ;;  %8102 = vmatmul.mubr.msk.f32.vlgmr.msra.gmra.mxu0 %vm2012_vm14, %v6718_v40  ;;  %v8521_v55 = vmov 1983009808  }
0x1d0c   : > { %7438 = vmatpush1.msk.msra.mxu1 %vm9109_vm12, %v10322_v54  ;;  %8104 = vmatprep.subr.mxu0 %v8501_v49  ;;  %v7137_v48 = vunpack.c.l.s4 %v8521_v55 }
0x1d0d   : > { %7439 = vmatmul.mubr.msk.f32.vlgmr.msra.gmra.mxu1 %vm2012_vm14, %v6718_v40  ;;  %8106 = vmatprep.mubr.msk.f32.mxu0 %vm8502_vm3, %v8501_v49  ;;  %vm7152_vm14 = vcmask 1041408  }
0x1d0e   : > { %7055 = vmatprep.mubr.f32.mxu1 %v8501_v49  ;;  %v7138_v52 = vunpack.c.0.s8 %v7137_v48 }
0x1d10   : > { %v7141_v39 = vsub.s32 %v7138_v52, %v8881_v3 }
0x1d14   : > { %v6829_v41 = vpop.permute.xlu1 %6828  ;;  %v6986_v59 = vpop.permute.xlu0 %6985 }
0x1dcb   : > { %v6971_v33 = vpop.f32.mrf.mxu0 }
0x1dcc   : > { %v6972_v47 = vadd.f32 %v6971_v33, %v6829_v41 }
0x1dcd   : > { %v6900_v43 = vpop.f32.mrf.mxu1  ;;  %v8103_v45 = vpop.f32.mrf.mxu0 }
0x1dce   : > { %v6977_v46 = vmax.f32 %v6972_v47, 0.0  ;;  %v6901_v51 = vadd.f32 %v6900_v43, %v6829_v41 }
0x1dcf   : > { %v6902_v53 = vpop.f32.mrf.mxu1 }
0x1dd0   : > { %v6903_v37 = vadd.f32 %v6902_v53, %v6829_v41  ;;  %8105 = vmatpush3.msk.msra.mxu0 %vm9008_vm10, %v6977_v46  ;;  %v6975_v24 = vmax.f32 %v6901_v51, 0.0  ;;  %vm7153_vm10 = vcmask 1043458  }
0x1dd1   : > { %8107 = vmatmul.mubr.msk.f32.vlgmr.msra.gmra.mxu0 %vm5441_vm6, %v6981_v63 }
0x1dd2   : > { %v6976_v54 = vmax.f32 %v6903_v37, 0.0 }
0x1dd4   : > { %7442 = vmatprep.subr.msk.mxu1 %vm9013_vm11, %v6976_v54  ;;  %vm7154_vm11 = vmor %vm7153_vm10, %vm7152_vm14 }
0x1dd5   : > { %7443 = vmatpush1.msk.msra.mxu1 %vm9025_vm2, %v6975_v24  ;;  %vm7155_vm2 = vcmask 259076  }
0x1dd6   : > { %7444 = vmatmul.mubr.msk.f32.vlgmr.msra.gmra.mxu1 %vm5441_vm6, %v6981_v63  ;;  %vm7156_vm3 = vmor %vm7155_vm2, %vm7154_vm11 }
0x1e91   : > { %v7128_v49 = vpop.f32.mrf.mxu0 }
0x1e92   : > { %v7129_v42 = vadd.f32 %v7128_v49, %v6986_v59 }
0x1e93   : > { %v8108_v56 = vpop.f32.mrf.mxu0 }
0x1e94   : > { %v7149_v4 = vrot.slane %v7129_v42, %v7141_v39 }
0x1e96   : > { %v7057_v35 = vpop.f32.mrf.mxu1 }
0x1e97   : > { %v7058_v1 = vadd.f32 %v7057_v35, %v6986_v59 }
0x1e98   : > { %v7059_v61 = vpop.f32.mrf.mxu1 }
0x1e99   : > { %v7060_v44 = vadd.f32 %v7059_v61, %v6986_v59 }
0x1e9b   : > { %v7135_v2 = vcombine.low %v7058_v1, %v7060_v44 }
0x1e9d   : > { %v7142_v6 = vrot.slane %v7135_v2, %v7141_v39 }
0x1e9f   : > { %v7150_v8 = vcombine.low %v7142_v6, %v7149_v4 }
0x1ea1   : > { %7157 = vst.msk [vmem:[%s1572_s4] sm:$0x3f] %vm7156_vm3, %v7150_v8 }
0x1ea2 PF: > { %s116_s22 = sadd.s32 1, %s8424_s22  }
0x1ea3   : > { %p113_p2 = scmp.ge.s32.totalorder %s116_s22, 4  }
0x1ea5   :  { %115 = sbr.rel (!%p113_p2) target bundleno = 102 (0x66), region = 322 }
0x1eaa   :  { %7179 = vsyncpa [#allocation3], 1 }
0x1eab   :  { %7181 = vsyncpa [#allocation3 + $0x1], 1 }
0x1eac   :  { %7182 = vsyncpa [#allocation5], 1 }
0x1ead   :  { %7183 = vsyncpa [#allocation8], 1 }

</bundles_post_ra>
